<compile_context>
chip_gen: v7x
topology: tpu7x:2x2x1
jax: 0.10.0
libtpu: 0.0.40
codegen_flags: <defaults>
</compile_context>

<pallas_src>
import math

import jax
import jax.numpy as jnp
from jax.experimental import pallas as pl
from jax.experimental.pallas import tpu as pltpu

# ---- model hyper-parameters (small, consistent with the module) ----
VOCAB = 100
D_MODEL = 32
HEADS = 4
DK = D_MODEL // HEADS
D_FF = 2048          # FeedForward default d_ff
N_LAYERS = 2
EPS = 1e-6
MAX_SEQ_LEN = 300
VEC_PER_LAYER = 6    # rows per layer in the packed (*, D_MODEL) vector slab


# ----------------------------------------------------------------------------
# helpers used inside the kernel
# ----------------------------------------------------------------------------
def _norm(x, alpha, bias):
    # matches torch: alpha * (x - mean) / (x.std(-1, keepdim=True) + eps) + bias
    # torch.std uses Bessel's correction (ddof = 1).  Exact reciprocal on this
    # path: the norm rescales the residual stream, so approximation error
    # would compound across layers.
    d = x.shape[-1]
    mean = jnp.mean(x, axis=-1, keepdims=True)
    xc = x - mean
    var = jnp.sum(xc * xc, axis=-1, keepdims=True) * (1.0 / (d - 1))
    return alpha * xc / (jnp.sqrt(var) + EPS) + bias


# ----------------------------------------------------------------------------
# fused encoder kernel (all layers + final norm in one launch)
# ----------------------------------------------------------------------------
def encoder_kernel(x_ref, mask_ref, vec_ref, bqkv_ref, b1_ref,
                   wqkv_ref, wo_ref, w1_ref, w2_ref, o_ref):
    x = x_ref[...]                 # (M, D)  f32 residual stream, M = B*S
    mask_add = mask_ref[...]       # (H*B, 1, S) additive mask (0 / -1e9)
    vec = vec_ref[...]             # (N_LAYERS*6 + 2, D) packed small vectors

    M, D = x.shape
    HB, _, S = mask_add.shape
    B = M // S
    H = HB // B
    dk = D // H
    scale = 1.0 / math.sqrt(dk)

    for l in range(N_LAYERS):
        r = l * VEC_PER_LAYER
        n1a, n1b = vec[r + 0:r + 1], vec[r + 1:r + 2]
        n2a, n2b = vec[r + 2:r + 3], vec[r + 3:r + 4]
        bo, b2 = vec[r + 4:r + 5], vec[r + 5:r + 6]

        # ---- sublayer 1: pre-norm + multi-head self-attention + residual ----
        x2 = _norm(x, n1a, n1b)                                          # (M, D)

        # fused Q/K/V projection: ONE MXU matmul with 3*D output lanes
        qkv = jnp.dot(x2, wqkv_ref[l],
                      preferred_element_type=jnp.float32) + bqkv_ref[l]  # (M, 3D)

        def split_heads(off):
            # lanes [off, off+D) of qkv -> (H*B, S, dk) with n = h*B + b
            parts = [qkv[:, off + h * dk: off + (h + 1) * dk].reshape(B, S, dk)
                     for h in range(H)]
            return jnp.concatenate(parts, axis=0)

        q = split_heads(0 * D)                                           # (HB,S,dk)
        k = split_heads(1 * D)
        v = split_heads(2 * D)

        # scores for all heads/batches in one batched matmul + additive mask
        s = jnp.einsum('nqd,nkd->nqk', q, k,
                       preferred_element_type=jnp.float32) * scale + mask_add

        # single stacked softmax over all (head, batch) score blocks
        s = s - jnp.max(s, axis=-1, keepdims=True)
        e = jnp.exp(s)
        p = e * pl.reciprocal(jnp.sum(e, axis=-1, keepdims=True), approx=True)

        o = jnp.einsum('nqk,nkd->nqd', p, v,
                       preferred_element_type=jnp.float32)               # (HB,S,dk)

        # concat heads back onto lanes -> ONE (M, D) @ (D, D) output projection
        concat = jnp.concatenate(
            [o[h * B:(h + 1) * B].reshape(M, dk) for h in range(H)], axis=-1)
        attn = jnp.dot(concat, wo_ref[l],
                       preferred_element_type=jnp.float32) + bo          # (M, D)
        x = x + attn

        # ---- sublayer 2: pre-norm + feed-forward + residual ----
        x2 = _norm(x, n2a, n2b)
        h1 = jnp.dot(x2, w1_ref[l],
                     preferred_element_type=jnp.float32) + b1_ref[l]     # (M, d_ff)
        h1 = jnp.maximum(h1, 0.0)                                        # ReLU
        ff = jnp.dot(h1, w2_ref[l],
                     preferred_element_type=jnp.float32) + b2            # (M, D)
        x = x + ff

    # final Norm
    r = N_LAYERS * VEC_PER_LAYER
    o_ref[...] = _norm(x, vec[r:r + 1], vec[r + 1:r + 2])


def encoder_fused(x_flat, mask_add, packed):
    # Grid-less: activations + all layer params stay resident in VMEM for the
    # whole forward pass -> one launch, one HBM round-trip for x.
    M, D = x_flat.shape
    return pl.pallas_call(
        encoder_kernel,
        out_shape=jax.ShapeDtypeStruct((M, D), jnp.float32),
        compiler_params=pltpu.CompilerParams(
            vmem_limit_bytes=32 * 1024 * 1024),
    )(x_flat, mask_add, *packed)


# ----------------------------------------------------------------------------
# deterministic parameter construction + host-side packing (plain JAX glue)
# ----------------------------------------------------------------------------
def positional_encoding(max_len, d_model):
    # matches the torch double loop exactly (note the 2*i and 2*(i+1) exponents)
    pos = jnp.arange(max_len, dtype=jnp.float32)[:, None]              # (L, 1)
    i = jnp.arange(0, d_model, 2, dtype=jnp.float32)[None, :]          # (1, D/2)
    pe_sin = jnp.sin(pos / (10000.0 ** (2.0 * i / d_model)))
    pe_cos = jnp.cos(pos / (10000.0 ** (2.0 * (i + 1.0) / d_model)))
    return jnp.stack([pe_sin, pe_cos], axis=-1).reshape(max_len, d_model)


def init_layer_params(key):
    """Raw parameters: Linear stored as (in, out) weight + (out,) bias
    (y = x @ W + b, equivalent to PyTorch y = x @ W_pt.T + b)."""
    ks = jax.random.split(key, 12)

    def lin(kw, kb, fan_in, fan_out):
        bound = 1.0 / math.sqrt(fan_in)
        w = jax.random.uniform(kw, (fan_in, fan_out), jnp.float32, -bound, bound)
        b = jax.random.uniform(kb, (fan_out,), jnp.float32, -bound, bound)
        return w, b

    wq, bq = lin(ks[0], ks[1], D_MODEL, D_MODEL)
    wk, bk = lin(ks[2], ks[3], D_MODEL, D_MODEL)
    wv, bv = lin(ks[4], ks[5], D_MODEL, D_MODEL)
    wo, bo = lin(ks[6], ks[7], D_MODEL, D_MODEL)
    w1, b1 = lin(ks[8], ks[9], D_MODEL, D_FF)
    w2, b2 = lin(ks[10], ks[11], D_FF, D_MODEL)
    alpha = jnp.ones((D_MODEL,), jnp.float32)     # Norm.alpha init
    beta = jnp.zeros((D_MODEL,), jnp.float32)     # Norm.bias  init
    return (alpha, beta, alpha, beta, wq, bq, wk, bk, wv, bv, wo, bo, w1, b1, w2, b2)


def pack_params(layer_raws, final_alpha, final_bias):
    """One-time host-side packing for the fused kernel:
      * vec slab:  all (D,)-sized vectors (norm alpha/bias, bo, b2) stacked
      * bqkv slab: fused q/k/v bias per layer, (N, 1, 3D)
      * b1 slab:   FF hidden bias per layer, (N, 1, d_ff)
      * wqkv slab: fused [Wq | Wk | Wv] per layer, (N, D, 3D)
      * wo / w1 / w2 slabs stacked over layers (no per-batch replication)."""
    vec_rows, bqkv_rows, b1_rows = [], [], []
    wqkv_l, wo_l, w1_l, w2_l = [], [], [], []
    for (n1a, n1b, n2a, n2b, wq, bq, wk, bk, wv, bv,
         wo, bo, w1, b1, w2, b2) in layer_raws:
        vec_rows += [n1a, n1b, n2a, n2b, bo, b2]
        bqkv_rows.append(jnp.concatenate([bq, bk, bv])[None, :])        # (1, 3D)
        b1_rows.append(b1[None, :])                                     # (1, d_ff)
        wqkv_l.append(jnp.concatenate([wq, wk, wv], axis=1))            # (D, 3D)
        wo_l.append(wo)                                                 # (D, D)
        w1_l.append(w1)                                                 # (D, d_ff)
        w2_l.append(w2)                                                 # (d_ff, D)
    vec_rows += [final_alpha, final_bias]
    return (jnp.stack(vec_rows),             # (6*N + 2, D)
            jnp.stack(bqkv_rows),            # (N, 1, 3D)
            jnp.stack(b1_rows),              # (N, 1, d_ff)
            jnp.stack(wqkv_l),               # (N, D, 3D)
            jnp.stack(wo_l),                 # (N, D, D)
            jnp.stack(w1_l),                 # (N, D, d_ff)
            jnp.stack(w2_l))                 # (N, d_ff, D)


def encoder_forward(src, mask, embed_w, packed):
    B, S = src.shape
    # TODO(synk): embedding gather + positional-encoding add stay in plain JAX
    # (tiny data-dependent gather; not expressible as a clean BlockSpec tile).
    x = embed_w[src] * math.sqrt(D_MODEL)                      # (B, S, D)
    pe = positional_encoding(MAX_SEQ_LEN, D_MODEL)
    x = (x + pe[None, :S, :]).reshape(B * S, D_MODEL)          # batch folded in rows

    # additive attention mask (0 keep / -1e9 masked), replicated per head
    # (n = h*B + b ordering); 256 B total, prepared once per call.
    mask_add = (mask.reshape(B, 1, S) - 1.0) * 1e9
    mask_add = jnp.broadcast_to(mask_add[None], (HEADS, B, 1, S)
                                ).reshape(HEADS * B, 1, S)

    out = encoder_fused(x, mask_add, packed)
    return out.reshape(B, S, D_MODEL)


# ----------------------------------------------------------------------------
# pure-JAX reference (mirrors the PyTorch module, eval mode) for validation
# ----------------------------------------------------------------------------
def encoder_reference(src, mask, embed_w, layer_raws, final_alpha, final_bias):
    B, S = src.shape
    x = embed_w[src] * math.sqrt(D_MODEL)
    x = x + positional_encoding(MAX_SEQ_LEN, D_MODEL)[None, :S, :]

    def norm(t, a, b):
        mean = t.mean(-1, keepdims=True)
        var = jnp.sum((t - mean) ** 2, -1, keepdims=True) / (D_MODEL - 1)
        return a * (t - mean) / (jnp.sqrt(var) + EPS) + b

    m4 = mask.reshape(B, 1, 1, S)
    for (n1a, n1b, n2a, n2b, wq, bq, wk, bk, wv, bv,
         wo, bo, w1, b1, w2, b2) in layer_raws:
        x2 = norm(x, n1a, n1b)

        def heads(t):
            return t.reshape(B, S, HEADS, DK).transpose(0, 2, 1, 3)

        q, k, v = heads(x2 @ wq + bq), heads(x2 @ wk + bk), heads(x2 @ wv + bv)
        sc = jnp.einsum('bhqd,bhkd->bhqk', q, k) / math.sqrt(DK)
        sc = jnp.where(m4 == 0.0, -1e9, sc)
        p = jax.nn.softmax(sc, axis=-1)
        o = jnp.einsum('bhqk,bhkd->bhqd', p, v)
        cat = o.transpose(0, 2, 1, 3).reshape(B, S, D_MODEL)
        x = x + cat @ wo + bo
        x2 = norm(x, n2a, n2b)
        x = x + jnp.maximum(x2 @ w1 + b1, 0.0) @ w2 + b2
    return norm(x, final_alpha, final_bias)


# ----------------------------------------------------------------------------
if __name__ == "__main__":
    key = jax.random.PRNGKey(0)
    k_src, k_par = jax.random.split(key)

    B, S = 2, 8
    src = jax.random.randint(k_src, (B, S), 0, VOCAB)                  # token ids
    mask = jnp.ones((B, 1, S), jnp.float32)
    mask = mask.at[1, 0, 6:].set(0.0)                                  # mask tail of batch 1

    pkeys = jax.random.split(k_par, N_LAYERS + 1)
    embed_w = 0.02 * jax.random.normal(pkeys[0], (VOCAB, D_MODEL), jnp.float32)
    layer_raws = [init_layer_params(pkeys[i + 1]) for i in range(N_LAYERS)]
    final_alpha = jnp.ones((D_MODEL,), jnp.float32)
    final_bias = jnp.zeros((D_MODEL,), jnp.float32)

    packed = pack_params(layer_raws, final_alpha, final_bias)

    out = encoder_forward(src, mask, embed_w, packed)
    out = jax.block_until_ready(out)
    assert out.shape == (B, S, D_MODEL)
    assert bool(jnp.all(jnp.isfinite(out)))

    ref = encoder_reference(src, mask, embed_w, layer_raws, final_alpha, final_bias)
    ref = jax.block_until_ready(ref)
    assert float(jnp.max(jnp.abs(out - ref))) < 5e-2

    print("KERNEL_OK")
</pallas_src>

<mosaic_0001>
module attributes {stable_mosaic.version = 11 : i64} {
  func.func @encoder_kernel(%arg0: memref<16x32xf32, #tpu.memory_space<vmem>>, %arg1: memref<8x1x8xf32, #tpu.memory_space<vmem>>, %arg2: memref<14x32xf32, #tpu.memory_space<vmem>>, %arg3: memref<2x1x96xf32, #tpu.memory_space<vmem>>, %arg4: memref<2x1x2048xf32, #tpu.memory_space<vmem>>, %arg5: memref<2x32x96xf32, #tpu.memory_space<vmem>>, %arg6: memref<2x32x32xf32, #tpu.memory_space<vmem>>, %arg7: memref<2x32x2048xf32, #tpu.memory_space<vmem>>, %arg8: memref<2x2048x32xf32, #tpu.memory_space<vmem>>, %arg9: memref<16x32xf32, #tpu.memory_space<vmem>>) attributes {dimension_semantics = [], scalar_prefetch = 0 : i64, scratch_operands = 0 : i64, tpu.core_type = #tpu.core_type<tc>} {
    %c0 = arith.constant 0 : index
    %c0_0 = arith.constant 0 : index
    %0 = vector.load %arg0[%c0, %c0_0] : memref<16x32xf32, #tpu.memory_space<vmem>>, vector<16x32xf32>
    %c0_1 = arith.constant 0 : index
    %c0_2 = arith.constant 0 : index
    %c0_3 = arith.constant 0 : index
    %1 = vector.load %arg1[%c0_1, %c0_2, %c0_3] : memref<8x1x8xf32, #tpu.memory_space<vmem>>, vector<8x1x8xf32>
    %c0_4 = arith.constant 0 : index
    %c0_5 = arith.constant 0 : index
    %2 = vector.load %arg2[%c0_4, %c0_5] : memref<14x32xf32, #tpu.memory_space<vmem>>, vector<14x32xf32>
    %3 = vector.extract_strided_slice %2 {offsets = [0, 0], sizes = [1, 32], strides = [1, 1]} : vector<14x32xf32> to vector<1x32xf32>
    %4 = vector.extract_strided_slice %2 {offsets = [1, 0], sizes = [1, 32], strides = [1, 1]} : vector<14x32xf32> to vector<1x32xf32>
    %5 = vector.extract_strided_slice %2 {offsets = [2, 0], sizes = [1, 32], strides = [1, 1]} : vector<14x32xf32> to vector<1x32xf32>
    %6 = vector.extract_strided_slice %2 {offsets = [3, 0], sizes = [1, 32], strides = [1, 1]} : vector<14x32xf32> to vector<1x32xf32>
    %7 = vector.extract_strided_slice %2 {offsets = [4, 0], sizes = [1, 32], strides = [1, 1]} : vector<14x32xf32> to vector<1x32xf32>
    %8 = vector.extract_strided_slice %2 {offsets = [5, 0], sizes = [1, 32], strides = [1, 1]} : vector<14x32xf32> to vector<1x32xf32>
    %cst = arith.constant dense<0.000000e+00> : vector<16xf32>
    %9 = vector.multi_reduction <add>, %0, %cst [1] : vector<16x32xf32> to vector<16xf32>
    %10 = vector.shape_cast %9 : vector<16xf32> to vector<16x1xf32>
    %cst_6 = arith.constant 3.200000e+01 : f32
    %11 = vector.broadcast %cst_6 : f32 to vector<16x1xf32>
    %12 = arith.divf %10, %11 : vector<16x1xf32>
    %13 = vector.broadcast %12 : vector<16x1xf32> to vector<16x32xf32>
    %14 = arith.subf %0, %13 : vector<16x32xf32>
    %15 = arith.mulf %14, %14 : vector<16x32xf32>
    %cst_7 = arith.constant dense<0.000000e+00> : vector<16xf32>
    %16 = vector.multi_reduction <add>, %15, %cst_7 [1] : vector<16x32xf32> to vector<16xf32>
    %17 = vector.shape_cast %16 : vector<16xf32> to vector<16x1xf32>
    %cst_8 = arith.constant 0.0322580636 : f32
    %18 = vector.broadcast %cst_8 : f32 to vector<16x1xf32>
    %19 = arith.mulf %17, %18 : vector<16x1xf32>
    %20 = vector.broadcast %3 : vector<1x32xf32> to vector<16x32xf32>
    %21 = arith.mulf %20, %14 : vector<16x32xf32>
    %22 = math.sqrt %19 : vector<16x1xf32>
    %cst_9 = arith.constant 9.99999997E-7 : f32
    %23 = vector.broadcast %cst_9 : f32 to vector<16x1xf32>
    %24 = arith.addf %22, %23 : vector<16x1xf32>
    %25 = vector.broadcast %24 : vector<16x1xf32> to vector<16x32xf32>
    %26 = arith.divf %21, %25 : vector<16x32xf32>
    %27 = vector.broadcast %4 : vector<1x32xf32> to vector<16x32xf32>
    %28 = arith.addf %26, %27 : vector<16x32xf32>
    %c0_10 = arith.constant 0 : index
    %c0_11 = arith.constant 0 : index
    %c0_12 = arith.constant 0 : index
    %29 = vector.load %arg5[%c0_10, %c0_11, %c0_12] : memref<2x32x96xf32, #tpu.memory_space<vmem>>, vector<1x32x96xf32>
    %30 = vector.shape_cast %29 : vector<1x32x96xf32> to vector<32x96xf32>
    %cst_13 = arith.constant dense<0.000000e+00> : vector<16x96xf32>
    %31 = tpu.matmul %28, %30, %cst_13 {dimension_numbers = #tpu.dot_dimension_numbers<[1], [0], [0], [1], [0, 0, 1, 1], [], []>} : vector<16x32xf32>, vector<32x96xf32>, vector<16x96xf32> -> vector<16x96xf32>
    %c0_14 = arith.constant 0 : index
    %c0_15 = arith.constant 0 : index
    %c0_16 = arith.constant 0 : index
    %32 = vector.load %arg3[%c0_14, %c0_15, %c0_16] : memref<2x1x96xf32, #tpu.memory_space<vmem>>, vector<1x1x96xf32>
    %33 = vector.shape_cast %32 : vector<1x1x96xf32> to vector<1x96xf32>
    %34 = vector.broadcast %33 : vector<1x96xf32> to vector<16x96xf32>
    %35 = arith.addf %31, %34 : vector<16x96xf32>
    %36 = vector.extract_strided_slice %35 {offsets = [0, 0], sizes = [16, 8], strides = [1, 1]} : vector<16x96xf32> to vector<16x8xf32>
    %37 = vector.shape_cast %36 : vector<16x8xf32> to vector<2x8x8xf32>
    %38 = vector.extract_strided_slice %35 {offsets = [0, 8], sizes = [16, 8], strides = [1, 1]} : vector<16x96xf32> to vector<16x8xf32>
    %39 = vector.shape_cast %38 : vector<16x8xf32> to vector<2x8x8xf32>
    %40 = vector.extract_strided_slice %35 {offsets = [0, 16], sizes = [16, 8], strides = [1, 1]} : vector<16x96xf32> to vector<16x8xf32>
    %41 = vector.shape_cast %40 : vector<16x8xf32> to vector<2x8x8xf32>
    %42 = vector.extract_strided_slice %35 {offsets = [0, 24], sizes = [16, 8], strides = [1, 1]} : vector<16x96xf32> to vector<16x8xf32>
    %43 = vector.shape_cast %42 : vector<16x8xf32> to vector<2x8x8xf32>
    %44 = tpu.concatenate %37, %39, %41, %43 in 0 : vector<2x8x8xf32>, vector<2x8x8xf32>, vector<2x8x8xf32>, vector<2x8x8xf32> -> vector<8x8x8xf32>
    %45 = vector.extract_strided_slice %35 {offsets = [0, 32], sizes = [16, 8], strides = [1, 1]} : vector<16x96xf32> to vector<16x8xf32>
    %46 = vector.shape_cast %45 : vector<16x8xf32> to vector<2x8x8xf32>
    %47 = vector.extract_strided_slice %35 {offsets = [0, 40], sizes = [16, 8], strides = [1, 1]} : vector<16x96xf32> to vector<16x8xf32>
    %48 = vector.shape_cast %47 : vector<16x8xf32> to vector<2x8x8xf32>
    %49 = vector.extract_strided_slice %35 {offsets = [0, 48], sizes = [16, 8], strides = [1, 1]} : vector<16x96xf32> to vector<16x8xf32>
    %50 = vector.shape_cast %49 : vector<16x8xf32> to vector<2x8x8xf32>
    %51 = vector.extract_strided_slice %35 {offsets = [0, 56], sizes = [16, 8], strides = [1, 1]} : vector<16x96xf32> to vector<16x8xf32>
    %52 = vector.shape_cast %51 : vector<16x8xf32> to vector<2x8x8xf32>
    %53 = tpu.concatenate %46, %48, %50, %52 in 0 : vector<2x8x8xf32>, vector<2x8x8xf32>, vector<2x8x8xf32>, vector<2x8x8xf32> -> vector<8x8x8xf32>
    %54 = vector.extract_strided_slice %35 {offsets = [0, 64], sizes = [16, 8], strides = [1, 1]} : vector<16x96xf32> to vector<16x8xf32>
    %55 = vector.shape_cast %54 : vector<16x8xf32> to vector<2x8x8xf32>
    %56 = vector.extract_strided_slice %35 {offsets = [0, 72], sizes = [16, 8], strides = [1, 1]} : vector<16x96xf32> to vector<16x8xf32>
    %57 = vector.shape_cast %56 : vector<16x8xf32> to vector<2x8x8xf32>
    %58 = vector.extract_strided_slice %35 {offsets = [0, 80], sizes = [16, 8], strides = [1, 1]} : vector<16x96xf32> to vector<16x8xf32>
    %59 = vector.shape_cast %58 : vector<16x8xf32> to vector<2x8x8xf32>
    %60 = vector.extract_strided_slice %35 {offsets = [0, 88], sizes = [16, 8], strides = [1, 1]} : vector<16x96xf32> to vector<16x8xf32>
    %61 = vector.shape_cast %60 : vector<16x8xf32> to vector<2x8x8xf32>
    %62 = tpu.concatenate %55, %57, %59, %61 in 0 : vector<2x8x8xf32>, vector<2x8x8xf32>, vector<2x8x8xf32>, vector<2x8x8xf32> -> vector<8x8x8xf32>
    "tpu.trace_start"() <{level = 10 : i32, message = "nqd,nkd->nqk"}> : () -> ()
    %cst_17 = arith.constant dense<0.000000e+00> : vector<8x8x8xf32>
    %63 = tpu.matmul %44, %53, %cst_17 {dimension_numbers = #tpu.dot_dimension_numbers<[2], [2], [1], [1], [0, 0, 0, 1, 1, 1], [0], [0]>} : vector<8x8x8xf32>, vector<8x8x8xf32>, vector<8x8x8xf32> -> vector<8x8x8xf32>
    "tpu.trace_stop"() : () -> ()
    %cst_18 = arith.constant 0.353553385 : f32
    %64 = vector.broadcast %cst_18 : f32 to vector<8x8x8xf32>
    %65 = arith.mulf %63, %64 : vector<8x8x8xf32>
    %66 = vector.broadcast %1 : vector<8x1x8xf32> to vector<8x8x8xf32>
    %67 = arith.addf %65, %66 : vector<8x8x8xf32>
    %cst_19 = arith.constant dense<0xFF800000> : vector<8x8xf32>
    %68 = vector.multi_reduction <maximumf>, %67, %cst_19 [2] : vector<8x8x8xf32> to vector<8x8xf32>
    %69 = vector.shape_cast %68 : vector<8x8xf32> to vector<8x8x1xf32>
    %70 = vector.broadcast %69 : vector<8x8x1xf32> to vector<8x8x8xf32>
    %71 = arith.subf %67, %70 : vector<8x8x8xf32>
    %72 = math.exp %71 : vector<8x8x8xf32>
    %cst_20 = arith.constant dense<0.000000e+00> : vector<8x8xf32>
    %73 = vector.multi_reduction <add>, %72, %cst_20 [2] : vector<8x8x8xf32> to vector<8x8xf32>
    %74 = vector.shape_cast %73 : vector<8x8xf32> to vector<8x8x1xf32>
    %75 = tpu.reciprocal %74 {approx = true} : vector<8x8x1xf32> -> vector<8x8x1xf32>
    %76 = vector.broadcast %75 : vector<8x8x1xf32> to vector<8x8x8xf32>
    %77 = arith.mulf %72, %76 : vector<8x8x8xf32>
    "tpu.trace_start"() <{level = 10 : i32, message = "nqk,nkd->nqd"}> : () -> ()
    %cst_21 = arith.constant dense<0.000000e+00> : vector<8x8x8xf32>
    %78 = tpu.matmul %77, %62, %cst_21 {dimension_numbers = #tpu.dot_dimension_numbers<[2], [1], [1], [2], [0, 0, 0, 1, 1, 2], [0], [0]>} : vector<8x8x8xf32>, vector<8x8x8xf32>, vector<8x8x8xf32> -> vector<8x8x8xf32>
    "tpu.trace_stop"() : () -> ()
    %79 = vector.extract_strided_slice %78 {offsets = [0, 0, 0], sizes = [2, 8, 8], strides = [1, 1, 1]} : vector<8x8x8xf32> to vector<2x8x8xf32>
    %80 = vector.shape_cast %79 : vector<2x8x8xf32> to vector<16x8xf32>
    %81 = vector.extract_strided_slice %78 {offsets = [2, 0, 0], sizes = [2, 8, 8], strides = [1, 1, 1]} : vector<8x8x8xf32> to vector<2x8x8xf32>
    %82 = vector.shape_cast %81 : vector<2x8x8xf32> to vector<16x8xf32>
    %83 = vector.extract_strided_slice %78 {offsets = [4, 0, 0], sizes = [2, 8, 8], strides = [1, 1, 1]} : vector<8x8x8xf32> to vector<2x8x8xf32>
    %84 = vector.shape_cast %83 : vector<2x8x8xf32> to vector<16x8xf32>
    %85 = vector.extract_strided_slice %78 {offsets = [6, 0, 0], sizes = [2, 8, 8], strides = [1, 1, 1]} : vector<8x8x8xf32> to vector<2x8x8xf32>
    %86 = vector.shape_cast %85 : vector<2x8x8xf32> to vector<16x8xf32>
    %87 = tpu.concatenate %80, %82, %84, %86 in 1 : vector<16x8xf32>, vector<16x8xf32>, vector<16x8xf32>, vector<16x8xf32> -> vector<16x32xf32>
    %c0_22 = arith.constant 0 : index
    %c0_23 = arith.constant 0 : index
    %c0_24 = arith.constant 0 : index
    %88 = vector.load %arg6[%c0_22, %c0_23, %c0_24] : memref<2x32x32xf32, #tpu.memory_space<vmem>>, vector<1x32x32xf32>
    %89 = vector.shape_cast %88 : vector<1x32x32xf32> to vector<32x32xf32>
    %cst_25 = arith.constant dense<0.000000e+00> : vector<16x32xf32>
    %90 = tpu.matmul %87, %89, %cst_25 {dimension_numbers = #tpu.dot_dimension_numbers<[1], [0], [0], [1], [0, 0, 1, 1], [], []>} : vector<16x32xf32>, vector<32x32xf32>, vector<16x32xf32> -> vector<16x32xf32>
    %91 = vector.broadcast %7 : vector<1x32xf32> to vector<16x32xf32>
    %92 = arith.addf %90, %91 : vector<16x32xf32>
    %93 = arith.addf %0, %92 : vector<16x32xf32>
    %cst_26 = arith.constant dense<0.000000e+00> : vector<16xf32>
    %94 = vector.multi_reduction <add>, %93, %cst_26 [1] : vector<16x32xf32> to vector<16xf32>
    %95 = vector.shape_cast %94 : vector<16xf32> to vector<16x1xf32>
    %cst_27 = arith.constant 3.200000e+01 : f32
    %96 = vector.broadcast %cst_27 : f32 to vector<16x1xf32>
    %97 = arith.divf %95, %96 : vector<16x1xf32>
    %98 = vector.broadcast %97 : vector<16x1xf32> to vector<16x32xf32>
    %99 = arith.subf %93, %98 : vector<16x32xf32>
    %100 = arith.mulf %99, %99 : vector<16x32xf32>
    %cst_28 = arith.constant dense<0.000000e+00> : vector<16xf32>
    %101 = vector.multi_reduction <add>, %100, %cst_28 [1] : vector<16x32xf32> to vector<16xf32>
    %102 = vector.shape_cast %101 : vector<16xf32> to vector<16x1xf32>
    %cst_29 = arith.constant 0.0322580636 : f32
    %103 = vector.broadcast %cst_29 : f32 to vector<16x1xf32>
    %104 = arith.mulf %102, %103 : vector<16x1xf32>
    %105 = vector.broadcast %5 : vector<1x32xf32> to vector<16x32xf32>
    %106 = arith.mulf %105, %99 : vector<16x32xf32>
    %107 = math.sqrt %104 : vector<16x1xf32>
    %cst_30 = arith.constant 9.99999997E-7 : f32
    %108 = vector.broadcast %cst_30 : f32 to vector<16x1xf32>
    %109 = arith.addf %107, %108 : vector<16x1xf32>
    %110 = vector.broadcast %109 : vector<16x1xf32> to vector<16x32xf32>
    %111 = arith.divf %106, %110 : vector<16x32xf32>
    %112 = vector.broadcast %6 : vector<1x32xf32> to vector<16x32xf32>
    %113 = arith.addf %111, %112 : vector<16x32xf32>
    %c0_31 = arith.constant 0 : index
    %c0_32 = arith.constant 0 : index
    %c0_33 = arith.constant 0 : index
    %114 = vector.load %arg7[%c0_31, %c0_32, %c0_33] : memref<2x32x2048xf32, #tpu.memory_space<vmem>>, vector<1x32x2048xf32>
    %115 = vector.shape_cast %114 : vector<1x32x2048xf32> to vector<32x2048xf32>
    %cst_34 = arith.constant dense<0.000000e+00> : vector<16x2048xf32>
    %116 = tpu.matmul %113, %115, %cst_34 {dimension_numbers = #tpu.dot_dimension_numbers<[1], [0], [0], [1], [0, 0, 1, 1], [], []>} : vector<16x32xf32>, vector<32x2048xf32>, vector<16x2048xf32> -> vector<16x2048xf32>
    %c0_35 = arith.constant 0 : index
    %c0_36 = arith.constant 0 : index
    %c0_37 = arith.constant 0 : index
    %117 = vector.load %arg4[%c0_35, %c0_36, %c0_37] : memref<2x1x2048xf32, #tpu.memory_space<vmem>>, vector<1x1x2048xf32>
    %118 = vector.shape_cast %117 : vector<1x1x2048xf32> to vector<1x2048xf32>
    %119 = vector.broadcast %118 : vector<1x2048xf32> to vector<16x2048xf32>
    %120 = arith.addf %116, %119 : vector<16x2048xf32>
    %cst_38 = arith.constant 0.000000e+00 : f32
    %121 = vector.broadcast %cst_38 : f32 to vector<16x2048xf32>
    %122 = arith.maximumf %120, %121 : vector<16x2048xf32>
    %c0_39 = arith.constant 0 : index
    %c0_40 = arith.constant 0 : index
    %c0_41 = arith.constant 0 : index
    %123 = vector.load %arg8[%c0_39, %c0_40, %c0_41] : memref<2x2048x32xf32, #tpu.memory_space<vmem>>, vector<1x2048x32xf32>
    %124 = vector.shape_cast %123 : vector<1x2048x32xf32> to vector<2048x32xf32>
    %cst_42 = arith.constant dense<0.000000e+00> : vector<16x32xf32>
    %125 = tpu.matmul %122, %124, %cst_42 {dimension_numbers = #tpu.dot_dimension_numbers<[1], [0], [0], [1], [0, 0, 1, 1], [], []>} : vector<16x2048xf32>, vector<2048x32xf32>, vector<16x32xf32> -> vector<16x32xf32>
    %126 = vector.broadcast %8 : vector<1x32xf32> to vector<16x32xf32>
    %127 = arith.addf %125, %126 : vector<16x32xf32>
    %128 = arith.addf %93, %127 : vector<16x32xf32>
    %129 = vector.extract_strided_slice %2 {offsets = [6, 0], sizes = [1, 32], strides = [1, 1]} : vector<14x32xf32> to vector<1x32xf32>
    %130 = vector.extract_strided_slice %2 {offsets = [7, 0], sizes = [1, 32], strides = [1, 1]} : vector<14x32xf32> to vector<1x32xf32>
    %131 = vector.extract_strided_slice %2 {offsets = [8, 0], sizes = [1, 32], strides = [1, 1]} : vector<14x32xf32> to vector<1x32xf32>
    %132 = vector.extract_strided_slice %2 {offsets = [9, 0], sizes = [1, 32], strides = [1, 1]} : vector<14x32xf32> to vector<1x32xf32>
    %133 = vector.extract_strided_slice %2 {offsets = [10, 0], sizes = [1, 32], strides = [1, 1]} : vector<14x32xf32> to vector<1x32xf32>
    %134 = vector.extract_strided_slice %2 {offsets = [11, 0], sizes = [1, 32], strides = [1, 1]} : vector<14x32xf32> to vector<1x32xf32>
    %cst_43 = arith.constant dense<0.000000e+00> : vector<16xf32>
    %135 = vector.multi_reduction <add>, %128, %cst_43 [1] : vector<16x32xf32> to vector<16xf32>
    %136 = vector.shape_cast %135 : vector<16xf32> to vector<16x1xf32>
    %cst_44 = arith.constant 3.200000e+01 : f32
    %137 = vector.broadcast %cst_44 : f32 to vector<16x1xf32>
    %138 = arith.divf %136, %137 : vector<16x1xf32>
    %139 = vector.broadcast %138 : vector<16x1xf32> to vector<16x32xf32>
    %140 = arith.subf %128, %139 : vector<16x32xf32>
    %141 = arith.mulf %140, %140 : vector<16x32xf32>
    %cst_45 = arith.constant dense<0.000000e+00> : vector<16xf32>
    %142 = vector.multi_reduction <add>, %141, %cst_45 [1] : vector<16x32xf32> to vector<16xf32>
    %143 = vector.shape_cast %142 : vector<16xf32> to vector<16x1xf32>
    %cst_46 = arith.constant 0.0322580636 : f32
    %144 = vector.broadcast %cst_46 : f32 to vector<16x1xf32>
    %145 = arith.mulf %143, %144 : vector<16x1xf32>
    %146 = vector.broadcast %129 : vector<1x32xf32> to vector<16x32xf32>
    %147 = arith.mulf %146, %140 : vector<16x32xf32>
    %148 = math.sqrt %145 : vector<16x1xf32>
    %cst_47 = arith.constant 9.99999997E-7 : f32
    %149 = vector.broadcast %cst_47 : f32 to vector<16x1xf32>
    %150 = arith.addf %148, %149 : vector<16x1xf32>
    %151 = vector.broadcast %150 : vector<16x1xf32> to vector<16x32xf32>
    %152 = arith.divf %147, %151 : vector<16x32xf32>
    %153 = vector.broadcast %130 : vector<1x32xf32> to vector<16x32xf32>
    %154 = arith.addf %152, %153 : vector<16x32xf32>
    %c1 = arith.constant 1 : index
    %c0_48 = arith.constant 0 : index
    %c0_49 = arith.constant 0 : index
    %155 = vector.load %arg5[%c1, %c0_48, %c0_49] : memref<2x32x96xf32, #tpu.memory_space<vmem>>, vector<1x32x96xf32>
    %156 = vector.shape_cast %155 : vector<1x32x96xf32> to vector<32x96xf32>
    %cst_50 = arith.constant dense<0.000000e+00> : vector<16x96xf32>
    %157 = tpu.matmul %154, %156, %cst_50 {dimension_numbers = #tpu.dot_dimension_numbers<[1], [0], [0], [1], [0, 0, 1, 1], [], []>} : vector<16x32xf32>, vector<32x96xf32>, vector<16x96xf32> -> vector<16x96xf32>
    %c1_51 = arith.constant 1 : index
    %c0_52 = arith.constant 0 : index
    %c0_53 = arith.constant 0 : index
    %158 = vector.load %arg3[%c1_51, %c0_52, %c0_53] : memref<2x1x96xf32, #tpu.memory_space<vmem>>, vector<1x1x96xf32>
    %159 = vector.shape_cast %158 : vector<1x1x96xf32> to vector<1x96xf32>
    %160 = vector.broadcast %159 : vector<1x96xf32> to vector<16x96xf32>
    %161 = arith.addf %157, %160 : vector<16x96xf32>
    %162 = vector.extract_strided_slice %161 {offsets = [0, 0], sizes = [16, 8], strides = [1, 1]} : vector<16x96xf32> to vector<16x8xf32>
    %163 = vector.shape_cast %162 : vector<16x8xf32> to vector<2x8x8xf32>
    %164 = vector.extract_strided_slice %161 {offsets = [0, 8], sizes = [16, 8], strides = [1, 1]} : vector<16x96xf32> to vector<16x8xf32>
    %165 = vector.shape_cast %164 : vector<16x8xf32> to vector<2x8x8xf32>
    %166 = vector.extract_strided_slice %161 {offsets = [0, 16], sizes = [16, 8], strides = [1, 1]} : vector<16x96xf32> to vector<16x8xf32>
    %167 = vector.shape_cast %166 : vector<16x8xf32> to vector<2x8x8xf32>
    %168 = vector.extract_strided_slice %161 {offsets = [0, 24], sizes = [16, 8], strides = [1, 1]} : vector<16x96xf32> to vector<16x8xf32>
    %169 = vector.shape_cast %168 : vector<16x8xf32> to vector<2x8x8xf32>
    %170 = tpu.concatenate %163, %165, %167, %169 in 0 : vector<2x8x8xf32>, vector<2x8x8xf32>, vector<2x8x8xf32>, vector<2x8x8xf32> -> vector<8x8x8xf32>
    %171 = vector.extract_strided_slice %161 {offsets = [0, 32], sizes = [16, 8], strides = [1, 1]} : vector<16x96xf32> to vector<16x8xf32>
    %172 = vector.shape_cast %171 : vector<16x8xf32> to vector<2x8x8xf32>
    %173 = vector.extract_strided_slice %161 {offsets = [0, 40], sizes = [16, 8], strides = [1, 1]} : vector<16x96xf32> to vector<16x8xf32>
    %174 = vector.shape_cast %173 : vector<16x8xf32> to vector<2x8x8xf32>
    %175 = vector.extract_strided_slice %161 {offsets = [0, 48], sizes = [16, 8], strides = [1, 1]} : vector<16x96xf32> to vector<16x8xf32>
    %176 = vector.shape_cast %175 : vector<16x8xf32> to vector<2x8x8xf32>
    %177 = vector.extract_strided_slice %161 {offsets = [0, 56], sizes = [16, 8], strides = [1, 1]} : vector<16x96xf32> to vector<16x8xf32>
    %178 = vector.shape_cast %177 : vector<16x8xf32> to vector<2x8x8xf32>
    %179 = tpu.concatenate %172, %174, %176, %178 in 0 : vector<2x8x8xf32>, vector<2x8x8xf32>, vector<2x8x8xf32>, vector<2x8x8xf32> -> vector<8x8x8xf32>
    %180 = vector.extract_strided_slice %161 {offsets = [0, 64], sizes = [16, 8], strides = [1, 1]} : vector<16x96xf32> to vector<16x8xf32>
    %181 = vector.shape_cast %180 : vector<16x8xf32> to vector<2x8x8xf32>
    %182 = vector.extract_strided_slice %161 {offsets = [0, 72], sizes = [16, 8], strides = [1, 1]} : vector<16x96xf32> to vector<16x8xf32>
    %183 = vector.shape_cast %182 : vector<16x8xf32> to vector<2x8x8xf32>
    %184 = vector.extract_strided_slice %161 {offsets = [0, 80], sizes = [16, 8], strides = [1, 1]} : vector<16x96xf32> to vector<16x8xf32>
    %185 = vector.shape_cast %184 : vector<16x8xf32> to vector<2x8x8xf32>
    %186 = vector.extract_strided_slice %161 {offsets = [0, 88], sizes = [16, 8], strides = [1, 1]} : vector<16x96xf32> to vector<16x8xf32>
    %187 = vector.shape_cast %186 : vector<16x8xf32> to vector<2x8x8xf32>
    %188 = tpu.concatenate %181, %183, %185, %187 in 0 : vector<2x8x8xf32>, vector<2x8x8xf32>, vector<2x8x8xf32>, vector<2x8x8xf32> -> vector<8x8x8xf32>
    "tpu.trace_start"() <{level = 10 : i32, message = "nqd,nkd->nqk"}> : () -> ()
    %cst_54 = arith.constant dense<0.000000e+00> : vector<8x8x8xf32>
    %189 = tpu.matmul %170, %179, %cst_54 {dimension_numbers = #tpu.dot_dimension_numbers<[2], [2], [1], [1], [0, 0, 0, 1, 1, 1], [0], [0]>} : vector<8x8x8xf32>, vector<8x8x8xf32>, vector<8x8x8xf32> -> vector<8x8x8xf32>
    "tpu.trace_stop"() : () -> ()
    %cst_55 = arith.constant 0.353553385 : f32
    %190 = vector.broadcast %cst_55 : f32 to vector<8x8x8xf32>
    %191 = arith.mulf %189, %190 : vector<8x8x8xf32>
    %192 = vector.broadcast %1 : vector<8x1x8xf32> to vector<8x8x8xf32>
    %193 = arith.addf %191, %192 : vector<8x8x8xf32>
    %cst_56 = arith.constant dense<0xFF800000> : vector<8x8xf32>
    %194 = vector.multi_reduction <maximumf>, %193, %cst_56 [2] : vector<8x8x8xf32> to vector<8x8xf32>
    %195 = vector.shape_cast %194 : vector<8x8xf32> to vector<8x8x1xf32>
    %196 = vector.broadcast %195 : vector<8x8x1xf32> to vector<8x8x8xf32>
    %197 = arith.subf %193, %196 : vector<8x8x8xf32>
    %198 = math.exp %197 : vector<8x8x8xf32>
    %cst_57 = arith.constant dense<0.000000e+00> : vector<8x8xf32>
    %199 = vector.multi_reduction <add>, %198, %cst_57 [2] : vector<8x8x8xf32> to vector<8x8xf32>
    %200 = vector.shape_cast %199 : vector<8x8xf32> to vector<8x8x1xf32>
    %201 = tpu.reciprocal %200 {approx = true} : vector<8x8x1xf32> -> vector<8x8x1xf32>
    %202 = vector.broadcast %201 : vector<8x8x1xf32> to vector<8x8x8xf32>
    %203 = arith.mulf %198, %202 : vector<8x8x8xf32>
    "tpu.trace_start"() <{level = 10 : i32, message = "nqk,nkd->nqd"}> : () -> ()
    %cst_58 = arith.constant dense<0.000000e+00> : vector<8x8x8xf32>
    %204 = tpu.matmul %203, %188, %cst_58 {dimension_numbers = #tpu.dot_dimension_numbers<[2], [1], [1], [2], [0, 0, 0, 1, 1, 2], [0], [0]>} : vector<8x8x8xf32>, vector<8x8x8xf32>, vector<8x8x8xf32> -> vector<8x8x8xf32>
    "tpu.trace_stop"() : () -> ()
    %205 = vector.extract_strided_slice %204 {offsets = [0, 0, 0], sizes = [2, 8, 8], strides = [1, 1, 1]} : vector<8x8x8xf32> to vector<2x8x8xf32>
    %206 = vector.shape_cast %205 : vector<2x8x8xf32> to vector<16x8xf32>
    %207 = vector.extract_strided_slice %204 {offsets = [2, 0, 0], sizes = [2, 8, 8], strides = [1, 1, 1]} : vector<8x8x8xf32> to vector<2x8x8xf32>
    %208 = vector.shape_cast %207 : vector<2x8x8xf32> to vector<16x8xf32>
    %209 = vector.extract_strided_slice %204 {offsets = [4, 0, 0], sizes = [2, 8, 8], strides = [1, 1, 1]} : vector<8x8x8xf32> to vector<2x8x8xf32>
    %210 = vector.shape_cast %209 : vector<2x8x8xf32> to vector<16x8xf32>
    %211 = vector.extract_strided_slice %204 {offsets = [6, 0, 0], sizes = [2, 8, 8], strides = [1, 1, 1]} : vector<8x8x8xf32> to vector<2x8x8xf32>
    %212 = vector.shape_cast %211 : vector<2x8x8xf32> to vector<16x8xf32>
    %213 = tpu.concatenate %206, %208, %210, %212 in 1 : vector<16x8xf32>, vector<16x8xf32>, vector<16x8xf32>, vector<16x8xf32> -> vector<16x32xf32>
    %c1_59 = arith.constant 1 : index
    %c0_60 = arith.constant 0 : index
    %c0_61 = arith.constant 0 : index
    %214 = vector.load %arg6[%c1_59, %c0_60, %c0_61] : memref<2x32x32xf32, #tpu.memory_space<vmem>>, vector<1x32x32xf32>
    %215 = vector.shape_cast %214 : vector<1x32x32xf32> to vector<32x32xf32>
    %cst_62 = arith.constant dense<0.000000e+00> : vector<16x32xf32>
    %216 = tpu.matmul %213, %215, %cst_62 {dimension_numbers = #tpu.dot_dimension_numbers<[1], [0], [0], [1], [0, 0, 1, 1], [], []>} : vector<16x32xf32>, vector<32x32xf32>, vector<16x32xf32> -> vector<16x32xf32>
    %217 = vector.broadcast %133 : vector<1x32xf32> to vector<16x32xf32>
    %218 = arith.addf %216, %217 : vector<16x32xf32>
    %219 = arith.addf %128, %218 : vector<16x32xf32>
    %cst_63 = arith.constant dense<0.000000e+00> : vector<16xf32>
    %220 = vector.multi_reduction <add>, %219, %cst_63 [1] : vector<16x32xf32> to vector<16xf32>
    %221 = vector.shape_cast %220 : vector<16xf32> to vector<16x1xf32>
    %cst_64 = arith.constant 3.200000e+01 : f32
    %222 = vector.broadcast %cst_64 : f32 to vector<16x1xf32>
    %223 = arith.divf %221, %222 : vector<16x1xf32>
    %224 = vector.broadcast %223 : vector<16x1xf32> to vector<16x32xf32>
    %225 = arith.subf %219, %224 : vector<16x32xf32>
    %226 = arith.mulf %225, %225 : vector<16x32xf32>
    %cst_65 = arith.constant dense<0.000000e+00> : vector<16xf32>
    %227 = vector.multi_reduction <add>, %226, %cst_65 [1] : vector<16x32xf32> to vector<16xf32>
    %228 = vector.shape_cast %227 : vector<16xf32> to vector<16x1xf32>
    %cst_66 = arith.constant 0.0322580636 : f32
    %229 = vector.broadcast %cst_66 : f32 to vector<16x1xf32>
    %230 = arith.mulf %228, %229 : vector<16x1xf32>
    %231 = vector.broadcast %131 : vector<1x32xf32> to vector<16x32xf32>
    %232 = arith.mulf %231, %225 : vector<16x32xf32>
    %233 = math.sqrt %230 : vector<16x1xf32>
    %cst_67 = arith.constant 9.99999997E-7 : f32
    %234 = vector.broadcast %cst_67 : f32 to vector<16x1xf32>
    %235 = arith.addf %233, %234 : vector<16x1xf32>
    %236 = vector.broadcast %235 : vector<16x1xf32> to vector<16x32xf32>
    %237 = arith.divf %232, %236 : vector<16x32xf32>
    %238 = vector.broadcast %132 : vector<1x32xf32> to vector<16x32xf32>
    %239 = arith.addf %237, %238 : vector<16x32xf32>
    %c1_68 = arith.constant 1 : index
    %c0_69 = arith.constant 0 : index
    %c0_70 = arith.constant 0 : index
    %240 = vector.load %arg7[%c1_68, %c0_69, %c0_70] : memref<2x32x2048xf32, #tpu.memory_space<vmem>>, vector<1x32x2048xf32>
    %241 = vector.shape_cast %240 : vector<1x32x2048xf32> to vector<32x2048xf32>
    %cst_71 = arith.constant dense<0.000000e+00> : vector<16x2048xf32>
    %242 = tpu.matmul %239, %241, %cst_71 {dimension_numbers = #tpu.dot_dimension_numbers<[1], [0], [0], [1], [0, 0, 1, 1], [], []>} : vector<16x32xf32>, vector<32x2048xf32>, vector<16x2048xf32> -> vector<16x2048xf32>
    %c1_72 = arith.constant 1 : index
    %c0_73 = arith.constant 0 : index
    %c0_74 = arith.constant 0 : index
    %243 = vector.load %arg4[%c1_72, %c0_73, %c0_74] : memref<2x1x2048xf32, #tpu.memory_space<vmem>>, vector<1x1x2048xf32>
    %244 = vector.shape_cast %243 : vector<1x1x2048xf32> to vector<1x2048xf32>
    %245 = vector.broadcast %244 : vector<1x2048xf32> to vector<16x2048xf32>
    %246 = arith.addf %242, %245 : vector<16x2048xf32>
    %cst_75 = arith.constant 0.000000e+00 : f32
    %247 = vector.broadcast %cst_75 : f32 to vector<16x2048xf32>
    %248 = arith.maximumf %246, %247 : vector<16x2048xf32>
    %c1_76 = arith.constant 1 : index
    %c0_77 = arith.constant 0 : index
    %c0_78 = arith.constant 0 : index
    %249 = vector.load %arg8[%c1_76, %c0_77, %c0_78] : memref<2x2048x32xf32, #tpu.memory_space<vmem>>, vector<1x2048x32xf32>
    %250 = vector.shape_cast %249 : vector<1x2048x32xf32> to vector<2048x32xf32>
    %cst_79 = arith.constant dense<0.000000e+00> : vector<16x32xf32>
    %251 = tpu.matmul %248, %250, %cst_79 {dimension_numbers = #tpu.dot_dimension_numbers<[1], [0], [0], [1], [0, 0, 1, 1], [], []>} : vector<16x2048xf32>, vector<2048x32xf32>, vector<16x32xf32> -> vector<16x32xf32>
    %252 = vector.broadcast %134 : vector<1x32xf32> to vector<16x32xf32>
    %253 = arith.addf %251, %252 : vector<16x32xf32>
    %254 = arith.addf %219, %253 : vector<16x32xf32>
    %255 = vector.extract_strided_slice %2 {offsets = [12, 0], sizes = [1, 32], strides = [1, 1]} : vector<14x32xf32> to vector<1x32xf32>
    %256 = vector.extract_strided_slice %2 {offsets = [13, 0], sizes = [1, 32], strides = [1, 1]} : vector<14x32xf32> to vector<1x32xf32>
    %cst_80 = arith.constant dense<0.000000e+00> : vector<16xf32>
    %257 = vector.multi_reduction <add>, %254, %cst_80 [1] : vector<16x32xf32> to vector<16xf32>
    %258 = vector.shape_cast %257 : vector<16xf32> to vector<16x1xf32>
    %cst_81 = arith.constant 3.200000e+01 : f32
    %259 = vector.broadcast %cst_81 : f32 to vector<16x1xf32>
    %260 = arith.divf %258, %259 : vector<16x1xf32>
    %261 = vector.broadcast %260 : vector<16x1xf32> to vector<16x32xf32>
    %262 = arith.subf %254, %261 : vector<16x32xf32>
    %263 = arith.mulf %262, %262 : vector<16x32xf32>
    %cst_82 = arith.constant dense<0.000000e+00> : vector<16xf32>
    %264 = vector.multi_reduction <add>, %263, %cst_82 [1] : vector<16x32xf32> to vector<16xf32>
    %265 = vector.shape_cast %264 : vector<16xf32> to vector<16x1xf32>
    %cst_83 = arith.constant 0.0322580636 : f32
    %266 = vector.broadcast %cst_83 : f32 to vector<16x1xf32>
    %267 = arith.mulf %265, %266 : vector<16x1xf32>
    %268 = vector.broadcast %255 : vector<1x32xf32> to vector<16x32xf32>
    %269 = arith.mulf %268, %262 : vector<16x32xf32>
    %270 = math.sqrt %267 : vector<16x1xf32>
    %cst_84 = arith.constant 9.99999997E-7 : f32
    %271 = vector.broadcast %cst_84 : f32 to vector<16x1xf32>
    %272 = arith.addf %270, %271 : vector<16x1xf32>
    %273 = vector.broadcast %272 : vector<16x1xf32> to vector<16x32xf32>
    %274 = arith.divf %269, %273 : vector<16x32xf32>
    %275 = vector.broadcast %256 : vector<1x32xf32> to vector<16x32xf32>
    %276 = arith.addf %274, %275 : vector<16x32xf32>
    %c0_85 = arith.constant 0 : index
    %c0_86 = arith.constant 0 : index
    %277 = vector.load %arg9[%c0_85, %c0_86] : memref<16x32xf32, #tpu.memory_space<vmem>>, vector<16x32xf32>
    tpu.vector_store %arg9[%c0_85, %c0_86], %276 {strides = array<i32>} : memref<16x32xf32, #tpu.memory_space<vmem>>, vector<16x32xf32>,
    return
  }
}

</mosaic_0001>

<bundles_post_ra>
// kernel: tpu_custom_call.1
= control target key start
LH: loop header
LB: loop body
LE: loop exit
PB: predicated region body
PF: predicated region fallthrough
CT: control target
= control target key end

     0   :  { %vm45_vm0 = vcmask 261120   ;;  %s11958_s0 = inlined_call_operand.vmem [shape: f32[16,32], index: 0, kind: input, shape index: {}]   ;;  %s11959_s1 = inlined_call_operand.vmem [shape: f32[8,1,8], index: 1, kind: input, shape index: {}]   ;;  %s11960_s2 = inlined_call_operand.vmem [shape: f32[14,32], index: 2, kind: input, shape index: {}]   ;;  %s11961_s3 = inlined_call_operand.vmem [shape: f32[2,1,96], index: 3, kind: input, shape index: {}]   ;;  %s11962_s4 = inlined_call_operand.vmem [shape: f32[2,1,2048], index: 4, kind: input, shape index: {}]   ;;  %s11963_s5 = inlined_call_operand.vmem [shape: f32[2,32,96], index: 5, kind: input, shape index: {}]   ;;  %s11964_s6 = inlined_call_operand.vmem [shape: f32[2,32,32], index: 6, kind: input, shape index: {}]   ;;  %s11965_s7 = inlined_call_operand.vmem [shape: f32[2,32,2048], index: 7, kind: input, shape index: {}]   ;;  %s11966_s8 = inlined_call_operand.vmem [shape: f32[2,2048,32], index: 8, kind: input, shape index: {}]   ;;  %s11967_s9 = inlined_call_operand.hbm [shape: f32[16,32], index: 9, kind: output, shape index: {}]  }
   0x1   :  { %v9020_v0 = vld [vmem:[%s11958_s0] sm:$0xff]  ;;  %v9025_v1 = vld [vmem:[%s11958_s0 + $0x8] sm:$0xff] }
   0x2   :  { %14 = vsyncpa [#allocation3], 0  ;;  %v46_v2 = vsel %vm45_vm0, %v9020_v0, 0.0  ;;  %v49_v3 = vsel %vm45_vm0, %v9025_v1, 0.0  ;;  %v99_v14 = vld [vmem:[%s11963_s5] sm:$0xff]  ;;  %v100_v15 = vld [vmem:[%s11963_s5 + $0x8] sm:$0xff]  ;;  %v67_v25 = vlaneseq }
   0x3   :  { %47 = vadd.xlane.f32.xlu0 %v46_v2  ;;  %v101_v16 = vld [vmem:[%s11963_s5 + $0x10] sm:$0xff]  ;;  %v8133_v17 = vpack.c.bf16 %v100_v15, %v99_v14  ;;  %v102_v18 = vld [vmem:[%s11963_s5 + $0x18] sm:$0xff]  ;;  %v9055_v38 = vld [vmem:[%s11960_s2] sm:$0xff]  ;;  %v8955_v52 = vmov 0.0   ;;  %vm8956_vm5 = vmmov 0   ;;  %s8957_s24 = smov 120  }
   0x4   :  { %v8137_v19 = vpack.c.bf16 %v102_v18, %v101_v16  ;;  %v9047_v30 = vshrl.u32 %v67_v25, 7  ;;  %v6804_v51 = vld [vmem:[%s11961_s3] ss:$0 sm:$0xff]  ;;  %7940 = vmatprep.subr.mxu1 %v8955_v52  ;;  %7942 = vmatprep.mubr.msk.f32.mxu1 %vm8956_vm5, %v8955_v52  ;;  %s8958_s25 = smov 112   ;;  %s8959_s26 = smov 104   ;;  %vm207_vm6 = vcmask 64512  }
   0x5   :  { %8134 = vmatprep.subr.bf16.mxu0 %v8133_v17  ;;  %s8960_s27 = smov 96   ;;  %v6824_v16 = vld [vmem:[%s11959_s1 + $0x1] ss:$0 sm:$0xff]  ;;  %s8961_s22 = smov 64   ;;  %vm1600_vm7 = vcmask 130048   ;;  %vm1603_vm8 = vcmask 195584  }
   0x6   :  { %8136 = vmatpush3.bf16.msra.mxu0 %v8133_v17  ;;  %v9050_v36 = vsub.s32 0, %v9047_v30  ;;  %v9060_v41 = vsub.s32 1, %v9047_v30  ;;  %s8962_s13 = smov 8   ;;  %s8963_s14 = smov 16  }
   0x7   :  { %50 = vadd.xlane.f32.xlu0 %v49_v3  ;;  %8138 = vmatprep.subr.bf16.mxu0 %v8137_v19  ;;  %s8964_s15 = smov 24  }
   0x8   :  { %v70_v40 = vrot.slane %v9055_v38, %v9050_v36  ;;  %v96_v43 = vrot.slane %v9055_v38, %v9060_v41 }
   0xa   :  { %8140 = vmatpush3.bf16.msra.mxu0 %v8137_v19 }
   0xb   :  { %7950 = vmatprep.subr.mxu0 %v8955_v52 }
  0x90   :  { %v48_v4 = vpop.xlane.xlu0 %47 }
  0x91   :  { %v53_v5 = vmul.f32 0.03125, %v48_v4 }
  0x93   :  { %v55_v6 = vsub.f32 %v9020_v0, %v53_v5 }
  0x94   :  { %v51_v7 = vpop.xlane.xlu0 %50 }
  0x95   :  { %v54_v8 = vmul.f32 0.03125, %v51_v7  ;;  %v57_v9 = vmul.f32 %v55_v6, %v55_v6  ;;  %v71_v42 = vmul.f32 %v70_v40, %v55_v6 }
  0x97   :  { %v56_v10 = vsub.f32 %v9025_v1, %v54_v8  ;;  %v59_v11 = vsel %vm45_vm0, %v57_v9, 0.0 }
  0x98   :  { %60 = vadd.xlane.f32.xlu1 %v59_v11 }
  0x99   :  { %v58_v12 = vmul.f32 %v56_v10, %v56_v10  ;;  %v72_v46 = vmul.f32 %v70_v40, %v56_v10  ;;  %v6823_v10 = vld [vmem:[%s11959_s1] ss:$0 sm:$0xff]  ;;  %v6828_v40 = vld [vmem:[%s11959_s1 + $0x5] ss:$0 sm:$0xff] }
  0x9b   :  { %v62_v13 = vsel %vm45_vm0, %v58_v12, 0.0 }
  0x9c   :  { %63 = vadd.xlane.f32.xlu1 %v62_v13 }
 0x125   :  { %v61_v20 = vpop.xlane.xlu1 %60 }
 0x126   :  { %v65_v21 = vmul.f32 0.032258064, %v61_v20 }
 0x128   :  { %8817 = vrsqrt.f32 %v65_v21  ;;  %vm75_vm1 = vcmp.eq.f32.partialorder %v65_v21, inf  ;;  %v78_v27 = vand.u32 2147483648, %v65_v21  ;;  %vm77_vm2 = vcmp.eq.f32.partialorder %v65_v21, 0.0 }
 0x129   :  { %v64_v22 = vpop.xlane.xlu1 %63 }
 0x12a   :  { %v66_v23 = vmul.f32 0.032258064, %v64_v22  ;;  %v6826_v22 = vld [vmem:[%s11959_s1 + $0x3] ss:$0 sm:$0xff] }
 0x12c   :  { %8819 = vrsqrt.f32 %v66_v23  ;;  %vm82_vm3 = vcmp.eq.f32.partialorder %v66_v23, inf  ;;  %v85_v34 = vand.u32 2147483648, %v66_v23  ;;  %vm84_vm4 = vcmp.eq.f32.partialorder %v66_v23, 0.0 }
 0x132   :  { %v8818_v24 = vpop.eup %8817 }
 0x133   :  { %v74_v26 = vmul.f32 %v8818_v24, %v65_v21 }
 0x135   :  { %v76_v28 = vsel %vm75_vm1, %v65_v21, %v74_v26 }
 0x136   :  { %v8820_v29 = vpop.eup %8819  ;;  %v79_v31 = vsel %vm77_vm2, %v78_v27, %v76_v28  ;;  %v6825_v28 = vld [vmem:[%s11959_s1 + $0x2] ss:$0 sm:$0xff] }
 0x137   :  { %v81_v32 = vmul.f32 %v8820_v29, %v66_v23  ;;  %v87_v33 = vadd.f32 1e-06, %v79_v31 }
 0x139   :  { %v83_v35 = vsel %vm82_vm3, %v66_v23, %v81_v32  ;;  %8821 = vrcp.f32 %v87_v33 }
 0x13a   :  { %v86_v37 = vsel %vm84_vm4, %v85_v34, %v83_v35 }
 0x13b   :  { %v88_v39 = vadd.f32 1e-06, %v86_v37  ;;  %v6827_v37 = vld [vmem:[%s11959_s1 + $0x4] ss:$0 sm:$0xff] }
 0x13d   :  { %8823 = vrcp.f32 %v88_v39 }
 0x143   :  { %v8822_v44 = vpop.eup %8821 }
 0x144   :  { %v90_v45 = vmul.f32 %v8822_v44, %v71_v42 }
 0x146   :  { %v97_v47 = vadd.f32 %v96_v43, %v90_v45 }
 0x147   :  { %v8824_v48 = vpop.eup %8823 }
 0x148   :  { %v92_v49 = vmul.f32 %v8824_v48, %v72_v46  ;;  %7937 = vmatprep.mubr.msk.f32.mxu0 %vm45_vm0, %v97_v47 }
 0x14a   :  { %v98_v50 = vadd.f32 %v96_v43, %v92_v49  ;;  %v6829_v49 = vld [vmem:[%s11959_s1 + $0x6] ss:$0 sm:$0xff] }
 0x14c   :  { %7938 = vmatmul.mubr.msk.f32.vlgmr.msra.gmra.mrb[0].mxu0 %vm45_vm0, %v98_v50 }
 0x14d   :  { %7952 = vmatprep.mubr.msk.f32.mxu0 %vm8956_vm5, %v8955_v52 }
 0x21f   :  { %v7939_v53 = vpop.f32.mrb[0].mxu0 }
 0x220   :  { %v9075_v54 = vadd.f32 %v7939_v53, %v6804_v51  ;;  %v182_v55 = vpop.f32.mrb[1].mxu0  ;;  %v6830_v53 = vld [vmem:[%s11959_s1 + $0x7] ss:$0 sm:$0xff] }
 0x221   :  { %v9077_v56 = vadd.f32 %v6804_v51, %v182_v55 }
 0x222   :  { %195 = vrot.lane.b32.xlu1 %v9075_v54, %s8957_s24 }
 0x223   :  { %193 = vrot.lane.b32.xlu0 %v9077_v56, %s8957_s24 }
 0x226   :  { %197 = vrot.lane.b32.xlu1 %v9077_v56, %s8958_s25 }
 0x227   :  { %201 = vrot.lane.b32.xlu0 %v9077_v56, %s8959_s26 }
 0x22a   :  { %199 = vrot.lane.b32.xlu1 %v9075_v54, %s8958_s25 }
 0x22b   :  { %205 = vrot.lane.b32.xlu0 %v9077_v56, %s8960_s27 }
 0x22e   :  { %203 = vrot.lane.b32.xlu1 %v9075_v54, %s8959_s26 }
 0x232   :  { %282 = vrot.lane.b32.xlu1 %v9075_v54, %s8960_s27 }
 0x294   :  { %v9095_v57 = vpop.permute.xlu1 %195 }
 0x295   :  { %434 = vrot.lane.b32.xlu1 %v9095_v57, %s8960_s27  ;;  %v9099_v58 = vpop.permute.xlu0 %193 }
 0x296   :  { %358 = vrot.lane.b32.xlu0 %v9099_v58, %s8960_s27 }
 0x298   :  { %v9103_v59 = vpop.permute.xlu1 %197 }
 0x299   :  { %v9105_v60 = vpop.permute.xlu0 %201 }
 0x29a   :  { %510 = vrot.lane.b32.xlu0 %v9103_v59, %s8960_s27 }
 0x29c   :  { %v9109_v61 = vpop.permute.xlu1 %199 }
 0x29d   :  { %586 = vrot.lane.b32.xlu1 %v9109_v61, %s8960_s27  ;;  %v206_v62 = vpop.permute.xlu0 %205 }
 0x29e   :  { %662 = vrot.lane.b32.xlu0 %v9105_v60, %s8960_s27  ;;  %7941 = vmatpush3.xpose.msk.msra.mxu1 %vm207_vm6, %v206_v62 }
 0x29f   :  { %7945 = vmatprep.subr.mxu1 %v8955_v52 }
 0x2a0   :  { %v9117_v63 = vpop.permute.xlu1 %203 }
 0x2a1   :  { %738 = vrot.lane.b32.xlu1 %v9117_v63, %s8960_s27  ;;  %7943 = vmatmul.mubr.msk.f32.vlgmr.msra.gmra.mrb[0].mxu1 %vm207_vm6, %v9077_v56 }
 0x2a2   :  { %7947 = vmatprep.mubr.msk.f32.mxu1 %vm8956_vm5, %v8955_v52 }
 0x2a4   :  { %v283_v2 = vpop.permute.xlu1 %282 }
 0x2a5   :  { %7946 = vmatpush3.xpose.msk.msra.mxu1 %vm207_vm6, %v283_v2 }
 0x2a6   :  { %7955 = vmatprep.subr.mxu1 %v8955_v52 }
 0x2a8   :  { %7948 = vmatmul.mubr.msk.f32.vlgmr.msra.gmra.mrb[2].mxu1 %vm207_vm6, %v9075_v54 }
 0x2a9   :  { %7957 = vmatprep.mubr.msk.f32.mxu1 %vm8956_vm5, %v8955_v52 }
 0x307   :  { %v435_v3 = vpop.permute.xlu1 %434 }
 0x308   :  { %7956 = vmatpush3.xpose.msk.msra.mxu1 %vm207_vm6, %v435_v3  ;;  %v359_v4 = vpop.permute.xlu0 %358 }
 0x309   :  { %7951 = vmatpush3.xpose.msk.msra.mxu0 %vm207_vm6, %v359_v4  ;;  %7965 = vmatprep.subr.mxu1 %v8955_v52 }
 0x30a   :  { %7960 = vmatprep.subr.mxu0 %v8955_v52 }
 0x30b   :  { %7958 = vmatmul.mubr.msk.f32.vlgmr.msra.gmra.mrb[4].mxu1 %vm207_vm6, %v9095_v57 }
 0x30c   :  { %7953 = vmatmul.mubr.msk.f32.vlgmr.msra.gmra.mrb[2].mxu0 %vm207_vm6, %v9099_v58  ;;  %v511_v5 = vpop.permute.xlu0 %510  ;;  %7967 = vmatprep.mubr.msk.f32.mxu1 %vm8956_vm5, %v8955_v52 }
 0x30d   :  { %7961 = vmatpush3.xpose.msk.msra.mxu0 %vm207_vm6, %v511_v5  ;;  %7962 = vmatprep.mubr.msk.f32.mxu0 %vm8956_vm5, %v8955_v52 }
 0x30e   :  { %7970 = vmatprep.subr.mxu0 %v8955_v52 }
 0x30f   :  { %v587_v6 = vpop.permute.xlu1 %586 }
 0x310   :  { %7963 = vmatmul.mubr.msk.f32.vlgmr.msra.gmra.mrb[4].mxu0 %vm207_vm6, %v9103_v59  ;;  %7966 = vmatpush3.xpose.msk.msra.mxu1 %vm207_vm6, %v587_v6  ;;  %v663_v7 = vpop.permute.xlu0 %662 }
 0x311   :  { %7971 = vmatpush3.xpose.msk.msra.mxu0 %vm207_vm6, %v663_v7  ;;  %7972 = vmatprep.mubr.msk.f32.mxu0 %vm8956_vm5, %v8955_v52 }
 0x312   :  { %7975 = vmatprep.subr.mxu1 %v8955_v52  ;;  %7980 = vmatprep.subr.mxu0 %v8955_v52 }
 0x313   :  { %v739_v8 = vpop.permute.xlu1 %738  ;;  %7968 = vmatmul.mubr.msk.f32.vlgmr.msra.gmra.mrb[6].mxu1 %vm207_vm6, %v9109_v61 }
 0x314   :  { %7973 = vmatmul.mubr.msk.f32.vlgmr.msra.gmra.mrb[6].mxu0 %vm207_vm6, %v9105_v60  ;;  %7976 = vmatpush3.xpose.msk.msra.mxu1 %vm207_vm6, %v739_v8 }
 0x315   :  { %7977 = vmatprep.mubr.msk.f32.mxu1 %vm8956_vm5, %v8955_v52  ;;  %7985 = vmatprep.subr.mxu1 %v8955_v52 }
 0x316   :  { %7982 = vmatprep.mubr.msk.f32.mxu0 %vm8956_vm5, %v8955_v52 }
 0x317   :  { %7978 = vmatmul.mubr.msk.f32.vlgmr.msra.gmra.mrb[8].mxu1 %vm207_vm6, %v9117_v63 }
 0x318   :  { %7987 = vmatprep.mubr.msk.f32.mxu1 %vm8956_vm5, %v8955_v52 }
 0x374   :  { %v278_v9 = vpop.f32.mrb[0].mxu1 }
 0x375   :  { %v814_v11 = vmul.f32 0.35355338, %v278_v9  ;;  %v7944_v12 = vpop.f32.mrb[1].mxu1 }
 0x377   :  { %v870_v13 = vadd.f32 %v6823_v10, %v814_v11 }
 0x379   :  { %v878_v14 = vsel %vm207_vm6, %v870_v13, -inf }
 0x37a   :  { %879 = vmax.xlane.f32.xlu0 %v878_v14 }
 0x37b   :  { %v354_v15 = vpop.f32.mrb[2].mxu1 }
 0x37c   :  { %v815_v17 = vmul.f32 0.35355338, %v354_v15  ;;  %v7949_v18 = vpop.f32.mrb[3].mxu1 }
 0x37e   :  { %v871_v19 = vadd.f32 %v6824_v16, %v815_v17 }
 0x380   :  { %v881_v20 = vsel %vm207_vm6, %v871_v19, -inf }
 0x381   :  { %882 = vmax.xlane.f32.xlu1 %v881_v20 }
 0x3de   :  { %v506_v21 = vpop.f32.mrb[4].mxu1 }
 0x3df   :  { %v817_v23 = vmul.f32 0.35355338, %v506_v21  ;;  %v430_v24 = vpop.f32.mrb[2].mxu0  ;;  %v7959_v25 = vpop.f32.mrb[5].mxu1 }
 0x3e0   :  { %v816_v26 = vmul.f32 0.35355338, %v430_v24  ;;  %v7954_v27 = vpop.f32.mrb[3].mxu0 }
 0x3e1   :  { %v873_v29 = vadd.f32 %v6826_v22, %v817_v23 }
 0x3e2   :  { %v872_v33 = vadd.f32 %v6825_v28, %v816_v26 }
 0x3e3   :  { %v582_v31 = vpop.f32.mrb[4].mxu0  ;;  %v887_v32 = vsel %vm207_vm6, %v873_v29, -inf }
 0x3e4   :  { %v818_v34 = vmul.f32 0.35355338, %v582_v31  ;;  %888 = vmax.xlane.f32.xlu0 %v887_v32  ;;  %v7964_v35 = vpop.f32.mrb[5].mxu0  ;;  %v884_v45 = vsel %vm207_vm6, %v872_v33, -inf }
 0x3e6   :  { %v658_v39 = vpop.f32.mrb[6].mxu1  ;;  %v874_v46 = vadd.f32 %v6827_v37, %v818_v34 }
 0x3e7   :  { %v819_v42 = vmul.f32 0.35355338, %v658_v39  ;;  %v7969_v43 = vpop.f32.mrb[7].mxu1  ;;  %v734_v44 = vpop.f32.mrb[6].mxu0 }
 0x3e8   :  { %v820_v47 = vmul.f32 0.35355338, %v734_v44  ;;  %885 = vmax.xlane.f32.xlu0 %v884_v45  ;;  %v7974_v48 = vpop.f32.mrb[7].mxu0  ;;  %v890_v3 = vsel %vm207_vm6, %v874_v46, -inf }
 0x3e9   :  { %v875_v50 = vadd.f32 %v6828_v40, %v819_v42 }
 0x3ea   :  { %v810_v51 = vpop.f32.mrb[8].mxu1  ;;  %v876_v4 = vadd.f32 %v6829_v49, %v820_v47 }
 0x3eb   :  { %v821_v55 = vmul.f32 0.35355338, %v810_v51  ;;  %v7979_v62 = vpop.f32.mrb[9].mxu1  ;;  %v893_v2 = vsel %vm207_vm6, %v875_v50, -inf }
 0x3ec   :  { %894 = vmax.xlane.f32.xlu1 %v893_v2  ;;  %891 = vmax.xlane.f32.xlu0 %v890_v3  ;;  %v896_v7 = vsel %vm207_vm6, %v876_v4, -inf }
 0x3ed   :  { %v877_v5 = vadd.f32 %v6830_v53, %v821_v55 }
 0x3ef   :  { %v899_v6 = vsel %vm207_vm6, %v877_v5, -inf }
 0x3f0   :  { %900 = vmax.xlane.f32.xlu1 %v899_v6  ;;  %897 = vmax.xlane.f32.xlu0 %v896_v7 }
 0x401   :  { %1042 = vrot.lane.b32.xlu1 %v9075_v54, %s8961_s22 }
 0x405   :  { %1118 = vrot.lane.b32.xlu1 %v9099_v58, %s8961_s22 }
 0x406   :  { %966 = vrot.lane.b32.xlu0 %v9077_v56, %s8961_s22 }
 0x407   :  { %v880_v8 = vpop.xlane.xlu0 %879 }
 0x408   :  { %v902_v9 = vsub.f32 %v870_v13, %v880_v8 }
 0x409   :  { %1194 = vrot.lane.b32.xlu1 %v9095_v57, %s8961_s22 }
 0x40a   :  { %1270 = vrot.lane.b32.xlu0 %v9103_v59, %s8961_s22  ;;  %v910_v10 = vmul.f32 1.442695, %v902_v9 }
 0x40c   :  { %8825 = vpow2.f32 %v910_v10 }
 0x40d   :  { %1346 = vrot.lane.b32.xlu1 %v9109_v61, %s8961_s22 }
 0x40e   :  { %v883_v11 = vpop.xlane.xlu1 %882 }
 0x40f   :  { %v903_v54 = vsub.f32 %v871_v19, %v883_v11 }
 0x411   :  { %v912_v12 = vmul.f32 1.442695, %v903_v54 }
 0x413   :  { %8827 = vpow2.f32 %v912_v12 }
 0x416   :  { %v9211_v58 = vpop.eup %8825 }
 0x417   :  { %v926_v56 = vsel %vm207_vm6, %v9211_v58, 0.0 }
 0x41d   :  { %v9215_v57 = vpop.eup %8827 }
 0x41e   :  { %v929_v59 = vsel %vm207_vm6, %v9215_v57, 0.0 }
 0x429   :  { %927 = vadd.xlane.f32.xlu0 %v926_v56 }
 0x431   :  { %930 = vadd.xlane.f32.xlu1 %v929_v59 }
 0x471   :  { %v889_v61 = vpop.xlane.xlu0 %888 }
 0x472   :  { %v905_v13 = vsub.f32 %v873_v29, %v889_v61 }
 0x474   :  { %v916_v14 = vmul.f32 1.442695, %v905_v13 }
 0x475   :  { %v886_v15 = vpop.xlane.xlu0 %885 }
 0x476   :  { %8829 = vpow2.f32 %v916_v14  ;;  %v904_v16 = vsub.f32 %v872_v33, %v886_v15 }
 0x478   :  { %v914_v17 = vmul.f32 1.442695, %v904_v16 }
 0x479   :  { %v895_v18 = vpop.xlane.xlu1 %894  ;;  %v892_v19 = vpop.xlane.xlu0 %891 }
 0x47a   :  { %8831 = vpow2.f32 %v914_v17  ;;  %v907_v20 = vsub.f32 %v875_v50, %v895_v18  ;;  %v906_v21 = vsub.f32 %v874_v46, %v892_v19 }
 0x47c   :  { %v920_v22 = vmul.f32 1.442695, %v907_v20  ;;  %v918_v23 = vmul.f32 1.442695, %v906_v21  ;;  %v1606_v21 = vld [vmem:[%s11964_s6] sm:$0xff] }
 0x47d   :  { %v901_v24 = vpop.xlane.xlu1 %900  ;;  %v898_v25 = vpop.xlane.xlu0 %897 }
 0x47e   :  { %8833 = vpow2.f32 %v920_v22  ;;  %v909_v26 = vsub.f32 %v877_v5, %v901_v24  ;;  %v908_v27 = vsub.f32 %v876_v4, %v898_v25  ;;  %v1607_v22 = vld [vmem:[%s11964_s6 + $0x8] sm:$0xff]  ;;  %v1608_v24 = vld [vmem:[%s11964_s6 + $0x10] sm:$0xff]  ;;  %v1609_v25 = vld [vmem:[%s11964_s6 + $0x18] sm:$0xff] }
 0x47f   :  { %8835 = vpow2.f32 %v918_v23  ;;  %v8141_v23 = vpack.c.bf16 %v1607_v22, %v1606_v21  ;;  %v1751_v21 = vld [vmem:[%s11965_s7 + $0x10] sm:$0xff] }
 0x480   :  { %v8830_v28 = vpop.eup %8829  ;;  %v924_v29 = vmul.f32 1.442695, %v909_v26  ;;  %v922_v31 = vmul.f32 1.442695, %v908_v27  ;;  %v8145_v26 = vpack.c.bf16 %v1609_v25, %v1608_v24  ;;  %v1767_v22 = vld [vmem:[%s11965_s7 + $0x90] sm:$0xff]  ;;  %v1782_v24 = vld [vmem:[%s11965_s7 + $0x108] sm:$0xff] }
 0x481   :  { %v1043_v32 = vpop.permute.xlu1 %1042  ;;  %v967_v34 = vpop.permute.xlu0 %966  ;;  %v935_v33 = vsel %vm207_vm6, %v8830_v28, 0.0  ;;  %v1798_v25 = vld [vmem:[%s11965_s7 + $0x188] sm:$0xff] }
 0x482   :  { %8837 = vpow2.f32 %v924_v29  ;;  %7986 = vmatpush3.msra.mxu1 %v1043_v32  ;;  %936 = vadd.xlane.f32.xlu1 %v935_v33 }
 0x483   :  { %8839 = vpow2.f32 %v922_v31  ;;  %7981 = vmatpush3.msra.mxu0 %v967_v34  ;;  %7995 = vmatprep.subr.mxu1 %v8955_v52 }
 0x484   :  { %v8832_v35 = vpop.eup %8831  ;;  %7990 = vmatprep.subr.mxu0 %v8955_v52 }
 0x485   :  { %v932_v37 = vsel %vm207_vm6, %v8832_v35, 0.0  ;;  %v1119_v48 = vpop.permute.xlu1 %1118  ;;  %v1271_v49 = vpop.permute.xlu0 %1270 }
 0x486   :  { %933 = vadd.xlane.f32.xlu0 %v932_v37 }
 0x488   :  { %v8834_v39 = vpop.eup %8833 }
 0x489   :  { %v8836_v40 = vpop.eup %8835  ;;  %v941_v42 = vsel %vm207_vm6, %v8834_v39, 0.0  ;;  %v1195_v50 = vpop.permute.xlu1 %1194 }
 0x48a   :  { %942 = vadd.xlane.f32.xlu1 %v941_v42  ;;  %v938_v43 = vsel %vm207_vm6, %v8836_v40, 0.0 }
 0x48b   :  { %939 = vadd.xlane.f32.xlu0 %v938_v43 }
 0x48c   :  { %v9225_v44 = vpop.eup %8837 }
 0x48d   :  { %v9227_v45 = vpop.eup %8839  ;;  %v947_v46 = vsel %vm207_vm6, %v9225_v44, 0.0  ;;  %v1347_v53 = vpop.permute.xlu1 %1346 }
 0x48e   :  { %948 = vadd.xlane.f32.xlu1 %v947_v46  ;;  %v944_v47 = vsel %vm207_vm6, %v9227_v45, 0.0 }
 0x48f   :  { %945 = vadd.xlane.f32.xlu0 %v944_v47 }
 0x49f   :  { %1498 = vrot.lane.b32.xlu1 %v9117_v63, %s8961_s22 }
 0x4a5   :  { %1422 = vrot.lane.b32.xlu0 %v9105_v60, %s8961_s22 }
 0x4b6   :  { %v928_v51 = vpop.xlane.xlu0 %927 }
 0x4b7   :  { %8841 = vrcp.f32 %v928_v51 }
 0x4be   :  { %v931_v55 = vpop.xlane.xlu1 %930 }
 0x4bf   :  { %8843 = vrcp.f32 %v931_v55 }
 0x4c1   :  { %v8842_v62 = vpop.eup %8841 }
 0x4c2   :  { %v958_v2 = vmul.f32 %v8842_v62, %v9211_v58 }
 0x4c4   :  { %7983 = vmatmul.mubr.msk.f32.vlgmr.msra.gmra.mrb[8].mxu0 %vm207_vm6, %v958_v2  ;;  %v9294_v2 = vsub.s32 4, %v9047_v30 }
 0x4c5   :  { %7991 = vmatpush3.msra.mxu0 %v1119_v48  ;;  %7992 = vmatprep.mubr.msk.f32.mxu0 %vm8956_vm5, %v8955_v52 }
 0x4c6   :  { %8000 = vmatprep.subr.mxu0 %v8955_v52 }
 0x4c9   :  { %v8844_v60 = vpop.eup %8843 }
 0x4ca   :  { %v959_v63 = vmul.f32 %v8844_v60, %v9215_v57  ;;  %v1613_v60 = vrot.slane %v9055_v38, %v9294_v2 }
 0x4cc   :  { %7988 = vmatmul.mubr.msk.f32.vlgmr.msra.gmra.mrb[10].mxu1 %vm207_vm6, %v959_v63 }
 0x4cd   :  { %7996 = vmatpush3.msra.mxu1 %v1195_v50  ;;  %7997 = vmatprep.mubr.msk.f32.mxu1 %vm8956_vm5, %v8955_v52 }
 0x4ce   :  { %8005 = vmatprep.subr.mxu1 %v8955_v52 }
 0x50f   :  { %v937_v3 = vpop.xlane.xlu1 %936 }
 0x510   :  { %8845 = vrcp.f32 %v937_v3 }
 0x513   :  { %v934_v4 = vpop.xlane.xlu0 %933 }
 0x514   :  { %8847 = vrcp.f32 %v934_v4 }
 0x517   :  { %v943_v5 = vpop.xlane.xlu1 %942 }
 0x518   :  { %8849 = vrcp.f32 %v943_v5  ;;  %v940_v6 = vpop.xlane.xlu0 %939 }
 0x519   :  { %8851 = vrcp.f32 %v940_v6 }
 0x51a   :  { %v8846_v7 = vpop.eup %8845 }
 0x51b   :  { %v961_v8 = vmul.f32 %v8846_v7, %v8830_v28  ;;  %v949_v9 = vpop.xlane.xlu1 %948 }
 0x51c   :  { %8853 = vrcp.f32 %v949_v9  ;;  %v946_v10 = vpop.xlane.xlu0 %945 }
 0x51d   :  { %8855 = vrcp.f32 %v946_v10  ;;  %7998 = vmatmul.mubr.msk.f32.vlgmr.msra.gmra.mrb[12].mxu1 %vm207_vm6, %v961_v8 }
 0x51e   :  { %v8848_v11 = vpop.eup %8847  ;;  %8006 = vmatpush3.msra.mxu1 %v1347_v53  ;;  %8007 = vmatprep.mubr.msk.f32.mxu1 %vm8956_vm5, %v8955_v52 }
 0x51f   :  { %v960_v54 = vmul.f32 %v8848_v11, %v8832_v35  ;;  %8015 = vmatprep.subr.mxu1 %v8955_v52  ;;  %v1499_v59 = vpop.permute.xlu1 %1498 }
 0x520   :  { %v1423_v13 = vpop.permute.xlu0 %1422 }
 0x521   :  { %7993 = vmatmul.mubr.msk.f32.vlgmr.msra.gmra.mrb[10].mxu0 %vm207_vm6, %v960_v54 }
 0x522   :  { %v8850_v12 = vpop.eup %8849  ;;  %8001 = vmatpush3.msra.mxu0 %v1271_v49  ;;  %8002 = vmatprep.mubr.msk.f32.mxu0 %vm8956_vm5, %v8955_v52 }
 0x523   :  { %v8852_v58 = vpop.eup %8851  ;;  %v963_v56 = vmul.f32 %v8850_v12, %v8834_v39  ;;  %8010 = vmatprep.subr.mxu0 %v8955_v52 }
 0x524   :  { %v962_v57 = vmul.f32 %v8852_v58, %v8836_v40 }
 0x525   :  { %8008 = vmatmul.mubr.msk.f32.vlgmr.msra.gmra.mrb[14].mxu1 %vm207_vm6, %v963_v56 }
 0x526   :  { %v8854_v61 = vpop.eup %8853  ;;  %8003 = vmatmul.mubr.msk.f32.vlgmr.msra.gmra.mrb[12].mxu0 %vm207_vm6, %v962_v57  ;;  %8016 = vmatpush3.msra.mxu1 %v1499_v59 }
 0x527   :  { %v8856_v14 = vpop.eup %8855  ;;  %v965_v15 = vmul.f32 %v8854_v61, %v9225_v44  ;;  %8011 = vmatpush3.msra.mxu0 %v1423_v13  ;;  %8012 = vmatprep.mubr.msk.f32.mxu0 %vm8956_vm5, %v8955_v52  ;;  %v1750_v61 = vld [vmem:[%s11965_s7 + $0x8] sm:$0xff] }
 0x528   :  { %v964_v16 = vmul.f32 %v8856_v14, %v9227_v45  ;;  %8017 = vmatprep.mubr.msk.f32.mxu1 %vm8956_vm5, %v8955_v52  ;;  %8142 = vmatprep.subr.bf16.mxu0 %v8141_v23  ;;  %v1766_v13 = vld [vmem:[%s11965_s7 + $0x88] sm:$0xff]  ;;  %v1752_v14 = vld [vmem:[%s11965_s7 + $0x18] sm:$0xff] }
 0x529   :  { %8018 = vmatmul.mubr.msk.f32.vlgmr.msra.gmra.mrb[16].mxu1 %vm207_vm6, %v965_v15  ;;  %v8149_v15 = vpack.c.bf16 %v1766_v13, %v1750_v61  ;;  %v1771_v61 = vld [vmem:[%s11965_s7 + $0xb0] sm:$0xff] }
 0x52a   :  { %8013 = vmatmul.mubr.msk.f32.vlgmr.msra.gmra.mrb[14].mxu0 %vm207_vm6, %v964_v16  ;;  %1967 = vmatprep.mubr.f32.mxu1 %v8955_v52  ;;  %v1768_v16 = vld [vmem:[%s11965_s7 + $0x98] sm:$0xff] }
 0x52b   :  { %8144 = vmatpush3.bf16.msra.mxu0 %v8141_v23  ;;  %8150 = vmatprep.subr.bf16.mxu1 %v8149_v15  ;;  %v8159_v23 = vpack.c.bf16 %v1767_v22, %v1751_v21  ;;  %v1788_v15 = vld [vmem:[%s11965_s7 + $0x138] sm:$0xff]  ;;  %v1801_v22 = vld [vmem:[%s11965_s7 + $0x1a0] sm:$0xff] }
 0x52c   :  { %8146 = vmatprep.subr.bf16.mxu0 %v8145_v26 }
 0x52f   :  { %8148 = vmatpush3.bf16.msra.mxu0 %v8145_v26  ;;  %v1784_v26 = vld [vmem:[%s11965_s7 + $0x118] sm:$0xff] }
 0x597   :  { %v1038_v17 = vpop.f32.mrb[8].mxu0 }
 0x598   :  { %v7984_v18 = vpop.f32.mrb[9].mxu0 }
 0x599   :  { %v1765_v18 = vld [vmem:[%s11965_s7 + $0x80] sm:$0xff] }
 0x59f   :  { %v1114_v19 = vpop.f32.mrb[10].mxu1 }
 0x5a0   :  { %v7989_v20 = vpop.f32.mrb[11].mxu1 }
 0x5f0   :  { %v1266_v27 = vpop.f32.mrb[12].mxu1 }
 0x5f1   :  { %1578 = vrot.lane.b32.xlu1 %v1266_v27, %s8962_s13  ;;  %v7999_v28 = vpop.f32.mrb[13].mxu1  ;;  %v8153_v27 = vpack.c.bf16 %v1798_v25, %v1782_v24  ;;  %v1803_v24 = vld [vmem:[%s11965_s7 + $0x1b0] sm:$0xff] }
 0x5f2   :  { %v1800_v28 = vld [vmem:[%s11965_s7 + $0x198] sm:$0xff] }
 0x5f4   :  { %v1190_v29 = vpop.f32.mrb[10].mxu0 }
 0x5f5   :  { %1576 = vrot.lane.b32.xlu0 %v1190_v29, %s8962_s13  ;;  %v7994_v31 = vpop.f32.mrb[11].mxu0  ;;  %v1781_v29 = vld [vmem:[%s11965_s7 + $0x100] sm:$0xff] }
 0x5f6   :  { %v1797_v31 = vld [vmem:[%s11965_s7 + $0x180] sm:$0xff] }
 0x5f8   :  { %v1418_v32 = vpop.f32.mrb[14].mxu1 }
 0x5f9   :  { %v1342_v34 = vpop.f32.mrb[12].mxu0  ;;  %1586 = vrot.lane.b32.xlu1 %v1418_v32, %s8963_s14  ;;  %v8009_v33 = vpop.f32.mrb[15].mxu1  ;;  %v8161_v32 = vpack.c.bf16 %v1800_v28, %v1784_v26 }
 0x5fa   :  { %1584 = vrot.lane.b32.xlu0 %v1342_v34, %s8963_s14  ;;  %v8004_v35 = vpop.f32.mrb[13].mxu0  ;;  %v8155_v34 = vpack.c.bf16 %v1797_v31, %v1781_v29  ;;  %v1783_v33 = vld [vmem:[%s11965_s7 + $0x110] sm:$0xff]  ;;  %v1774_v29 = vld [vmem:[%s11965_s7 + $0xc8] sm:$0xff]  ;;  %v1760_v31 = vld [vmem:[%s11965_s7 + $0x58] sm:$0xff] }
 0x5fb   :  { %v1799_v35 = vld [vmem:[%s11965_s7 + $0x190] sm:$0xff] }
 0x5fc   :  { %v1570_v37 = vpop.f32.mrb[16].mxu1 }
 0x5fd   :  { %v1494_v39 = vpop.f32.mrb[14].mxu0  ;;  %1594 = vrot.lane.b32.xlu1 %v1570_v37, %s8964_s15  ;;  %v8019_v40 = vpop.f32.mrb[17].mxu1  ;;  %v8163_v37 = vpack.c.bf16 %v1799_v35, %v1783_v33  ;;  %v1757_v35 = vld [vmem:[%s11965_s7 + $0x40] sm:$0xff] }
 0x5fe   :  { %1592 = vrot.lane.b32.xlu0 %v1494_v39, %s8964_s15  ;;  %v8014_v42 = vpop.f32.mrb[15].mxu0  ;;  %v1754_v39 = vld [vmem:[%s11965_s7 + $0x28] sm:$0xff] }
 0x5ff   :  { %v1770_v40 = vld [vmem:[%s11965_s7 + $0xa8] sm:$0xff]  ;;  %v1756_v42 = vld [vmem:[%s11965_s7 + $0x38] sm:$0xff] }
 0x663   :  { %v1579_v43 = vpop.permute.xlu1 %1578 }
 0x664   :  { %v1599_v47 = vsel %vm207_vm6, %v1114_v19, %v1579_v43  ;;  %v8157_v19 = vpack.c.bf16 %v1768_v16, %v1752_v14  ;;  %v8165_v43 = vpack.c.bf16 %v1770_v40, %v1754_v39  ;;  %v1804_v16 = vld [vmem:[%s11965_s7 + $0x1b8] sm:$0xff]  ;;  %v1773_v39 = vld [vmem:[%s11965_s7 + $0xc0] sm:$0xff]  ;;  %v1759_v40 = vld [vmem:[%s11965_s7 + $0x50] sm:$0xff] }
 0x666   :  { %8158 = vmatprep.subr.bf16.mxu0 %v8157_v19  ;;  %v1785_v19 = vld [vmem:[%s11965_s7 + $0x120] sm:$0xff] }
 0x667   :  { %v1577_v44 = vpop.permute.xlu0 %1576 }
 0x668   :  { %v1598_v48 = vsel %vm207_vm6, %v1038_v17, %v1577_v44  ;;  %v1749_v17 = vld [vmem:[%s11965_s7] sm:$0xff]  ;;  %v1772_v44 = vld [vmem:[%s11965_s7 + $0xb8] sm:$0xff] }
 0x669   :  { %v8151_v20 = vpack.c.bf16 %v1765_v18, %v1749_v17 }
 0x66b   :  { %v1587_v45 = vpop.permute.xlu1 %1586  ;;  %8152 = vmatpush1.bf16.msra.mxu1 %v8151_v20 }
 0x66c   :  { %v1585_v46 = vpop.permute.xlu0 %1584  ;;  %v1602_v49 = vsel %vm1600_vm7, %v1599_v47, %v1587_v45  ;;  %8154 = vmatprep.subr.bf16.mxu1 %v8153_v27  ;;  %v8173_v45 = vpack.c.bf16 %v1772_v44, %v1756_v42  ;;  %v8177_v27 = vpack.c.bf16 %v1804_v16, %v1788_v15  ;;  %v1775_v42 = vld [vmem:[%s11965_s7 + $0xd0] sm:$0xff] }
 0x66d   :  { %v1601_v51 = vsel %vm1600_vm7, %v1598_v48, %v1585_v46 }
 0x66f   :  { %v1595_v50 = vpop.permute.xlu1 %1594  ;;  %8156 = vmatpush1.bf16.msra.mxu1 %v8155_v34  ;;  %v8171_v34 = vpack.c.bf16 %v1801_v22, %v1785_v19  ;;  %v1795_v19 = vld [vmem:[%s11965_s7 + $0x170] sm:$0xff] }
 0x670   :  { %v1605_v53 = vsel %vm1603_vm8, %v1602_v49, %v1595_v50  ;;  %v1593_v55 = vpop.permute.xlu0 %1592  ;;  %8166 = vmatprep.subr.bf16.mxu1 %v8165_v43 }
 0x671   :  { %v1604_v62 = vsel %vm1603_vm8, %v1601_v51, %v1593_v55 }
 0x672   :  { %8028 = vmatprep.mubr.msk.f32.mxu0 %vm45_vm0, %v1604_v62 }
 0x673   :  { %8029 = vmatmul.mubr.msk.f32.vlgmr.msra.gmra.mrb[16].mxu0 %vm45_vm0, %v1605_v53 }
 0x674   :  { %2044 = vmatprep.mubr.f32.mxu0 %v8955_v52  ;;  %8160 = vmatpush1.bf16.msra.mxu0 %v8159_v23  ;;  %v1787_v23 = vld [vmem:[%s11965_s7 + $0x130] sm:$0xff] }
 0x675   :  { %8162 = vmatprep.subr.bf16.mxu0 %v8161_v32  ;;  %v1776_v32 = vld [vmem:[%s11965_s7 + $0xd8] sm:$0xff]  ;;  %v8179_v33 = vpack.c.bf16 %v1803_v24, %v1787_v23  ;;  %v2567_v24 = vld [vmem:[%s11966_s8 + $0x80] sm:$0xff] }
 0x676   :  { %v8189_v44 = vpack.c.bf16 %v1776_v32, %v1760_v31  ;;  %v2552_v31 = vld [vmem:[%s11966_s8 + $0x8] sm:$0xff] }
 0x678   :  { %8164 = vmatpush1.bf16.msra.mxu0 %v8163_v37 }
 0x679   :  { %8174 = vmatprep.subr.bf16.mxu0 %v8173_v45  ;;  %v1790_v45 = vld [vmem:[%s11965_s7 + $0x148] sm:$0xff] }
 0x746   :  { %v8030_v63 = vpop.f32.mrb[16].mxu0 }
 0x747   :  { %v1692_v3 = vadd.f32 %v8030_v63, %v1613_v60  ;;  %v1686_v4 = vpop.f32.mrb[17].mxu0 }
 0x748   :  { %v1687_v5 = vadd.f32 %v1686_v4, %v1613_v60 }
 0x749   :  { %v9299_v6 = vadd.f32 %v1692_v3, %v9025_v1 }
 0x74a   :  { %v9302_v7 = vadd.f32 %v1687_v5, %v9020_v0 }
 0x74b   :  { %v1700_v8 = vsel %vm45_vm0, %v9299_v6, 0.0 }
 0x74c   :  { %1701 = vadd.xlane.f32.xlu1 %v1700_v8  ;;  %v1697_v9 = vsel %vm45_vm0, %v9302_v7, 0.0  ;;  %v9381_v8 = vsub.s32 2, %v9047_v30 }
 0x74d   :  { %1698 = vadd.xlane.f32.xlu0 %v1697_v9 }
 0x7d9   :  { %v1702_v10 = vpop.xlane.xlu1 %1701 }
 0x7da   :  { %v1704_v11 = vmul.f32 0.03125, %v1702_v10  ;;  %v1699_v54 = vpop.xlane.xlu0 %1698 }
 0x7db   :  { %v1703_v12 = vmul.f32 0.03125, %v1699_v54  ;;  %v9386_v54 = vsub.s32 3, %v9047_v30 }
 0x7dc   :  { %v9309_v58 = vsub.f32 %v9299_v6, %v1704_v11  ;;  %v1720_v11 = vrot.slane %v9055_v38, %v9381_v8 }
 0x7dd   :  { %v9312_v1 = vsub.f32 %v9302_v7, %v1703_v12  ;;  %v1753_v12 = vld [vmem:[%s11965_s7 + $0x20] sm:$0xff] }
 0x7de   :  { %v1708_v57 = vmul.f32 %v9309_v58, %v9309_v58  ;;  %v1722_v20 = vmul.f32 %v1720_v11, %v9309_v58  ;;  %v1758_v58 = vld [vmem:[%s11965_s7 + $0x48] sm:$0xff] }
 0x7df   :  { %v1707_v0 = vmul.f32 %v9312_v1, %v9312_v1  ;;  %v8181_v43 = vpack.c.bf16 %v1774_v29, %v1758_v58  ;;  %v2551_v29 = vld [vmem:[%s11966_s8] sm:$0xff] }
 0x7e0   :  { %v1712_v59 = vsel %vm45_vm0, %v1708_v57, 0.0  ;;  %v1769_v57 = vld [vmem:[%s11965_s7 + $0xa0] sm:$0xff] }
 0x7e1   :  { %v1709_v56 = vsel %vm45_vm0, %v1707_v0, 0.0  ;;  %v1721_v0 = vmul.f32 %v1720_v11, %v9312_v1  ;;  %v1786_v1 = vld [vmem:[%s11965_s7 + $0x128] sm:$0xff]  ;;  %v8167_v17 = vpack.c.bf16 %v1769_v57, %v1753_v12  ;;  %v1761_v12 = vld [vmem:[%s11965_s7 + $0x60] sm:$0xff]  ;;  %v1779_v57 = vld [vmem:[%s11965_s7 + $0xf0] sm:$0xff] }
 0x7e2   :  { %1710 = vadd.xlane.f32.xlu0 %v1709_v56  ;;  %v1746_v56 = vrot.slane %v9055_v38, %v9386_v54  ;;  %v1802_v38 = vld [vmem:[%s11965_s7 + $0x1a8] sm:$0xff] }
 0x7e3   :  { %v8169_v26 = vpack.c.bf16 %v1802_v38, %v1786_v1  ;;  %v1810_v1 = vld [vmem:[%s11965_s7 + $0x1e8] sm:$0xff]  ;;  %v1812_v38 = vld [vmem:[%s11965_s7 + $0x1f8] sm:$0xff] }
 0x7e6   :  { %1713 = vadd.xlane.f32.xlu0 %v1712_v59  ;;  %v1755_v59 = vld [vmem:[%s11965_s7 + $0x30] sm:$0xff] }
 0x7e7   :  { %v8175_v18 = vpack.c.bf16 %v1771_v61, %v1755_v59 }
 0x86f   :  { %v1711_v46 = vpop.xlane.xlu0 %1710 }
 0x870   :  { %v1715_v47 = vmul.f32 0.032258064, %v1711_v46  ;;  %v1806_v46 = vld [vmem:[%s11965_s7 + $0x1c8] sm:$0xff] }
 0x872   :  { %8857 = vrsqrt.f32 %v1715_v47  ;;  %vm1725_vm9 = vcmp.eq.f32.partialorder %v1715_v47, inf  ;;  %v1728_v53 = vand.u32 2147483648, %v1715_v47  ;;  %vm1727_vm10 = vcmp.eq.f32.partialorder %v1715_v47, 0.0 }
 0x873   :  { %v1714_v48 = vpop.xlane.xlu0 %1713 }
 0x874   :  { %v1716_v49 = vmul.f32 0.032258064, %v1714_v48  ;;  %v1808_v48 = vld [vmem:[%s11965_s7 + $0x1d8] sm:$0xff] }
 0x876   :  { %8859 = vrsqrt.f32 %v1716_v49  ;;  %vm1732_vm11 = vcmp.eq.f32.partialorder %v1716_v49, inf  ;;  %v1735_v4 = vand.u32 2147483648, %v1716_v49  ;;  %vm1734_vm12 = vcmp.eq.f32.partialorder %v1716_v49, 0.0 }
 0x87c   :  { %v8858_v50 = vpop.eup %8857 }
 0x87d   :  { %v1724_v51 = vmul.f32 %v8858_v50, %v1715_v47  ;;  %v8191_v50 = vpack.c.bf16 %v1775_v42, %v1759_v40  ;;  %v2570_v40 = vld [vmem:[%s11966_s8 + $0x98] sm:$0xff]  ;;  %v2601_v42 = vld [vmem:[%s11966_s8 + $0x190] sm:$0xff] }
 0x87f   :  { %v1726_v55 = vsel %vm1725_vm9, %v1715_v47, %v1724_v51  ;;  %v1792_v47 = vld [vmem:[%s11965_s7 + $0x158] sm:$0xff]  ;;  %v1789_v51 = vld [vmem:[%s11965_s7 + $0x140] sm:$0xff] }
 0x880   :  { %v8860_v62 = vpop.eup %8859  ;;  %v1729_v60 = vsel %vm1727_vm10, %v1728_v53, %v1726_v55  ;;  %v1805_v53 = vld [vmem:[%s11965_s7 + $0x1c0] sm:$0xff]  ;;  %v1791_v55 = vld [vmem:[%s11965_s7 + $0x150] sm:$0xff] }
 0x881   :  { %v1737_v63 = vadd.f32 1e-06, %v1729_v60  ;;  %v1731_v3 = vmul.f32 %v8860_v62, %v1716_v49  ;;  %v1807_v62 = vld [vmem:[%s11965_s7 + $0x1d0] sm:$0xff]  ;;  %v8185_v60 = vpack.c.bf16 %v1806_v46, %v1790_v45 }
 0x882   :  { %v8195_v11 = vpack.c.bf16 %v1807_v62, %v1791_v55  ;;  %v2553_v46 = vld [vmem:[%s11966_s8 + $0x10] sm:$0xff]  ;;  %v2572_v55 = vld [vmem:[%s11966_s8 + $0xa8] sm:$0xff]  ;;  %v2603_v62 = vld [vmem:[%s11966_s8 + $0x1a0] sm:$0xff] }
 0x883   :  { %8861 = vrcp.f32 %v1737_v63  ;;  %v1733_v5 = vsel %vm1732_vm11, %v1716_v49, %v1731_v3  ;;  %v8183_v49 = vpack.c.bf16 %v1773_v39, %v1757_v35  ;;  %v8193_v63 = vpack.c.bf16 %v1808_v48, %v1792_v47  ;;  %v1762_v3 = vld [vmem:[%s11965_s7 + $0x68] sm:$0xff]  ;;  %v2569_v39 = vld [vmem:[%s11966_s8 + $0x90] sm:$0xff]  ;;  %v2554_v47 = vld [vmem:[%s11966_s8 + $0x18] sm:$0xff] }
 0x884   :  { %v1736_v9 = vsel %vm1734_vm12, %v1735_v4, %v1733_v5  ;;  %v1778_v4 = vld [vmem:[%s11965_s7 + $0xe8] sm:$0xff]  ;;  %v1764_v5 = vld [vmem:[%s11965_s7 + $0x78] sm:$0xff]  ;;  %v8217_v48 = vpack.c.bf16 %v2570_v40, %v2569_v39 }
 0x885   :  { %v1738_v10 = vadd.f32 1e-06, %v1736_v9  ;;  %v1780_v9 = vld [vmem:[%s11965_s7 + $0xf8] sm:$0xff]  ;;  %v8197_v59 = vpack.c.bf16 %v1778_v4, %v1762_v3  ;;  %v2584_v35 = vld [vmem:[%s11966_s8 + $0x108] sm:$0xff]  ;;  %v2555_v3 = vld [vmem:[%s11966_s8 + $0x20] sm:$0xff] }
 0x886   :  { %v8205_v61 = vpack.c.bf16 %v1780_v9, %v1764_v5  ;;  %v2556_v4 = vld [vmem:[%s11966_s8 + $0x28] sm:$0xff]  ;;  %v2562_v39 = vld [vmem:[%s11966_s8 + $0x58] sm:$0xff] }
 0x887   :  { %8863 = vrcp.f32 %v1738_v10  ;;  %v8187_v10 = vpack.c.bf16 %v1805_v53, %v1789_v51  ;;  %v2586_v51 = vld [vmem:[%s11966_s8 + $0x118] sm:$0xff]  ;;  %v2571_v53 = vld [vmem:[%s11966_s8 + $0xa0] sm:$0xff] }
 0x888   :  { %v8221_v5 = vpack.c.bf16 %v2572_v55, %v2571_v53 }
 0x88d   :  { %v8862_v13 = vpop.eup %8861 }
 0x88e   :  { %v1740_v14 = vmul.f32 %v8862_v13, %v1721_v0  ;;  %v1777_v0 = vld [vmem:[%s11965_s7 + $0xe0] sm:$0xff]  ;;  %v1794_v13 = vld [vmem:[%s11965_s7 + $0x168] sm:$0xff] }
 0x88f   :  { %v8199_v15 = vpack.c.bf16 %v1777_v0, %v1761_v12  ;;  %v8201_v22 = vpack.c.bf16 %v1810_v1, %v1794_v13  ;;  %v2573_v12 = vld [vmem:[%s11966_s8 + $0xb0] sm:$0xff]  ;;  %v2574_v0 = vld [vmem:[%s11966_s8 + $0xb8] sm:$0xff] }
 0x890   :  { %v9419_v21 = vadd.f32 %v1746_v56, %v1740_v14  ;;  %v1796_v14 = vld [vmem:[%s11965_s7 + $0x178] sm:$0xff]  ;;  %v8225_v1 = vpack.c.bf16 %v2574_v0, %v2573_v12  ;;  %v2565_v12 = vld [vmem:[%s11966_s8 + $0x70] sm:$0xff] }
 0x891   :  { %v8864_v25 = vpop.eup %8863  ;;  %v8209_v23 = vpack.c.bf16 %v1812_v38, %v1796_v14  ;;  %v2558_v13 = vld [vmem:[%s11966_s8 + $0x38] sm:$0xff]  ;;  %v2589_v38 = vld [vmem:[%s11966_s8 + $0x130] sm:$0xff] }
 0x892   :  { %v1742_v28 = vmul.f32 %v8864_v25, %v1722_v20  ;;  %6841 = vmatmul.mubr.msk.f32.vlgmr.msra.gmra.mrb[18].mxu1 %vm45_vm0, %v9419_v21  ;;  %6843 = vmatmul.mubr.msk.f32.vlgmr.msra.gmra.mrb[18].mxu0 %vm45_vm0, %v9419_v21  ;;  %v1811_v20 = vld [vmem:[%s11965_s7 + $0x1f0] sm:$0xff]  ;;  %v2568_v25 = vld [vmem:[%s11966_s8 + $0x88] sm:$0xff]  ;;  %v2566_v0 = vld [vmem:[%s11966_s8 + $0x78] sm:$0xff] }
 0x893   :  { %8168 = vmatpush1.bf16.msra.mxu1 %v8167_v17  ;;  %8176 = vmatpush1.bf16.msra.mxu0 %v8175_v18  ;;  %v1793_v17 = vld [vmem:[%s11965_s7 + $0x160] sm:$0xff]  ;;  %v8213_v32 = vpack.c.bf16 %v2568_v25, %v2567_v24  ;;  %v2560_v24 = vld [vmem:[%s11966_s8 + $0x48] sm:$0xff] }
 0x894   :  { %1973 = vmatprep.mubr.f32.mxu1 %v8955_v52  ;;  %2050 = vmatprep.mubr.f32.mxu0 %v8955_v52  ;;  %v9451_v37 = vadd.f32 %v1746_v56, %v1742_v28  ;;  %v1763_v56 = vld [vmem:[%s11965_s7 + $0x70] sm:$0xff]  ;;  %v1809_v18 = vld [vmem:[%s11965_s7 + $0x1e0] sm:$0xff]  ;;  %v8211_v28 = vpack.c.bf16 %v1811_v20, %v1795_v19  ;;  %v2608_v19 = vld [vmem:[%s11966_s8 + $0x1c8] sm:$0xff] }
 0x895   :  { %8170 = vmatprep.subr.bf16.mxu1 %v8169_v26  ;;  %8178 = vmatprep.subr.bf16.mxu0 %v8177_v27  ;;  %v8207_v16 = vpack.c.bf16 %v1779_v57, %v1763_v56  ;;  %v2599_v26 = vld [vmem:[%s11966_s8 + $0x180] sm:$0xff]  ;;  %v2600_v27 = vld [vmem:[%s11966_s8 + $0x188] sm:$0xff]  ;;  %v8203_v58 = vpack.c.bf16 %v1809_v18, %v1793_v17  ;;  %v2605_v56 = vld [vmem:[%s11966_s8 + $0x1b0] sm:$0xff] }
 0x896   :  { %6842 = vmatmul.mubr.msk.f32.gmra.mrb[20].mxu1 %vm45_vm0, %v9451_v37  ;;  %6844 = vmatmul.mubr.msk.f32.gmra.mrb[20].mxu0 %vm45_vm0, %v9451_v37  ;;  %v2606_v57 = vld [vmem:[%s11966_s8 + $0x1b8] sm:$0xff]  ;;  %v2576_v17 = vld [vmem:[%s11966_s8 + $0xc8] sm:$0xff]  ;;  %v2607_v18 = vld [vmem:[%s11966_s8 + $0x1c0] sm:$0xff] }
 0x897   :  { %8172 = vmatpush1.bf16.msra.mxu1 %v8171_v34  ;;  %8180 = vmatpush1.bf16.msra.mxu0 %v8179_v33  ;;  %v8245_v34 = vpack.c.bf16 %v2600_v27, %v2599_v26  ;;  %v2583_v33 = vld [vmem:[%s11966_s8 + $0x100] sm:$0xff]  ;;  %v8257_v14 = vpack.c.bf16 %v2606_v57, %v2605_v56  ;;  %v8261_v26 = vpack.c.bf16 %v2608_v19, %v2607_v18 }
 0x898   :  { %2121 = vmatprep.mubr.f32.mxu1 %v8955_v52  ;;  %2198 = vmatprep.mubr.f32.mxu0 %v8955_v52  ;;  %v8247_v45 = vpack.c.bf16 %v2584_v35, %v2583_v33  ;;  %v2591_v27 = vld [vmem:[%s11966_s8 + $0x140] sm:$0xff]  ;;  %v2561_v35 = vld [vmem:[%s11966_s8 + $0x50] sm:$0xff]  ;;  %v8243_v57 = vpack.c.bf16 %v2566_v0, %v2565_v12 }
 0x899   :  { %8182 = vmatprep.subr.bf16.mxu1 %v8181_v43  ;;  %8190 = vmatprep.subr.bf16.mxu0 %v8189_v44  ;;  %v2602_v43 = vld [vmem:[%s11966_s8 + $0x198] sm:$0xff]  ;;  %v8215_v44 = vpack.c.bf16 %v2552_v31, %v2551_v29  ;;  %v2609_v31 = vld [vmem:[%s11966_s8 + $0x1d0] sm:$0xff]  ;;  %v2635_v12 = vld [vmem:[%s11966_s8 + $0x2a0] sm:$0xff] }
 0x89a   :  { %6845 = vmatmul.mubr.msk.f32.vlgmr.msra.gmra.mrb[22].mxu1 %vm45_vm0, %v9419_v21  ;;  %6847 = vmatmul.mubr.msk.f32.vlgmr.msra.gmra.mrb[22].mxu0 %vm45_vm0, %v9419_v21  ;;  %v2578_v29 = vld [vmem:[%s11966_s8 + $0xd8] sm:$0xff] }
 0x89b   :  { %8184 = vmatpush1.bf16.msra.mxu1 %v8183_v49  ;;  %8192 = vmatpush1.bf16.msra.mxu0 %v8191_v50  ;;  %v8249_v49 = vpack.c.bf16 %v2602_v43, %v2601_v42  ;;  %v2585_v50 = vld [vmem:[%s11966_s8 + $0x110] sm:$0xff] }
 0x89c   :  { %2127 = vmatprep.mubr.f32.mxu1 %v8955_v52  ;;  %2204 = vmatprep.mubr.f32.mxu0 %v8955_v52  ;;  %v2593_v43 = vld [vmem:[%s11966_s8 + $0x150] sm:$0xff] }
 0x89d   :  { %8186 = vmatprep.subr.bf16.mxu1 %v8185_v60  ;;  %8194 = vmatprep.subr.bf16.mxu0 %v8193_v63  ;;  %v2604_v60 = vld [vmem:[%s11966_s8 + $0x1a8] sm:$0xff]  ;;  %v8219_v63 = vpack.c.bf16 %v2554_v47, %v2553_v46  ;;  %v2611_v47 = vld [vmem:[%s11966_s8 + $0x1e0] sm:$0xff] }
 0x89e   :  { %6846 = vmatmul.mubr.msk.f32.gmra.mrb[24].mxu1 %vm45_vm0, %v9451_v37  ;;  %6848 = vmatmul.mubr.msk.f32.gmra.mrb[24].mxu0 %vm45_vm0, %v9451_v37  ;;  %v8253_v9 = vpack.c.bf16 %v2604_v60, %v2603_v62  ;;  %v2580_v46 = vld [vmem:[%s11966_s8 + $0xe8] sm:$0xff]  ;;  %v2595_v60 = vld [vmem:[%s11966_s8 + $0x160] sm:$0xff] }
 0x89f   :  { %8188 = vmatpush1.bf16.msra.mxu1 %v8187_v10  ;;  %8196 = vmatpush1.bf16.msra.mxu0 %v8195_v11  ;;  %v2587_v10 = vld [vmem:[%s11966_s8 + $0x120] sm:$0xff]  ;;  %v2588_v11 = vld [vmem:[%s11966_s8 + $0x128] sm:$0xff] }
 0x8a0   :  { %2275 = vmatprep.mubr.f32.mxu1 %v8955_v52  ;;  %2352 = vmatprep.mubr.f32.mxu0 %v8955_v52  ;;  %v2564_v62 = vld [vmem:[%s11966_s8 + $0x68] sm:$0xff] }
 0x8a1   :  { %8198 = vmatprep.subr.bf16.mxu1 %v8197_v59  ;;  %8206 = vmatprep.subr.bf16.mxu0 %v8205_v61  ;;  %v8223_v59 = vpack.c.bf16 %v2556_v4, %v2555_v3  ;;  %v8255_v61 = vpack.c.bf16 %v2588_v11, %v2587_v10  ;;  %v2581_v4 = vld [vmem:[%s11966_s8 + $0xf0] sm:$0xff]  ;;  %v2614_v11 = vld [vmem:[%s11966_s8 + $0x1f8] sm:$0xff] }
 0x8a2   :  { %6849 = vmatmul.mubr.msk.f32.vlgmr.msra.gmra.mrb[26].mxu1 %vm45_vm0, %v9419_v21  ;;  %6851 = vmatmul.mubr.msk.f32.vlgmr.msra.gmra.mrb[26].mxu0 %vm45_vm0, %v9419_v21 }
 0x8a3   :  { %8200 = vmatpush1.bf16.msra.mxu1 %v8199_v15  ;;  %8208 = vmatpush1.bf16.msra.mxu0 %v8207_v16  ;;  %v2590_v15 = vld [vmem:[%s11966_s8 + $0x138] sm:$0xff]  ;;  %v2575_v16 = vld [vmem:[%s11966_s8 + $0xc0] sm:$0xff] }
 0x8a4   :  { %2281 = vmatprep.mubr.f32.mxu1 %v8955_v52  ;;  %2358 = vmatprep.mubr.f32.mxu0 %v8955_v52  ;;  %v8229_v25 = vpack.c.bf16 %v2576_v17, %v2575_v16  ;;  %v9781_v17 = vld [vmem:[%s11962_s4] sm:$0xff] }
 0x8a5   :  { %8202 = vmatprep.subr.bf16.mxu1 %v8201_v22  ;;  %8210 = vmatprep.subr.bf16.mxu0 %v8209_v23  ;;  %v8259_v22 = vpack.c.bf16 %v2590_v15, %v2589_v38  ;;  %v2559_v23 = vld [vmem:[%s11966_s8 + $0x40] sm:$0xff]  ;;  %v2664_v15 = vld [vmem:[%s11966_s8 + $0x388] sm:$0xff]  ;;  %v1820_v18 = vrot.slane %v9781_v17, %v9050_v36  ;;  %v1828_v19 = vrot.slane %v9781_v17, %v9381_v8 }
 0x8a6   :  { %6850 = vmatmul.mubr.msk.f32.gmra.mrb[28].mxu1 %vm45_vm0, %v9451_v37  ;;  %6852 = vmatmul.mubr.msk.f32.gmra.mrb[28].mxu0 %vm45_vm0, %v9451_v37 }
 0x8a7   :  { %8204 = vmatpush1.bf16.msra.mxu1 %v8203_v58  ;;  %8212 = vmatpush1.bf16.msra.mxu0 %v8211_v28  ;;  %v2592_v58 = vld [vmem:[%s11966_s8 + $0x148] sm:$0xff]  ;;  %v2577_v28 = vld [vmem:[%s11966_s8 + $0xd0] sm:$0xff] }
 0x8a8   :  { %2429 = vmatprep.mubr.f32.mxu1 %v8955_v52  ;;  %2506 = vmatprep.mubr.f32.mxu0 %v8955_v52  ;;  %v8263_v33 = vpack.c.bf16 %v2592_v58, %v2591_v27  ;;  %v8233_v40 = vpack.c.bf16 %v2578_v29, %v2577_v28  ;;  %v2647_v58 = vld [vmem:[%s11966_s8 + $0x300] sm:$0xff]  ;;  %v2648_v28 = vld [vmem:[%s11966_s8 + $0x308] sm:$0xff]  ;;  %v2633_v29 = vld [vmem:[%s11966_s8 + $0x290] sm:$0xff] }
 0x8a9   :  { %8214 = vmatprep.subr.bf16.mxu1 %v8213_v32  ;;  %8246 = vmatprep.subr.bf16.mxu0 %v8245_v34  ;;  %v2610_v32 = vld [vmem:[%s11966_s8 + $0x1d8] sm:$0xff]  ;;  %v8231_v34 = vpack.c.bf16 %v2560_v24, %v2559_v23  ;;  %v2615_v23 = vld [vmem:[%s11966_s8 + $0x200] sm:$0xff]  ;;  %v2616_v24 = vld [vmem:[%s11966_s8 + $0x208] sm:$0xff] }
 0x8aa   :  { %6853 = vmatmul.mubr.msk.f32.vlgmr.msra.gmra.mrb[30].mxu1 %vm45_vm0, %v9419_v21  ;;  %6855 = vmatmul.mubr.msk.f32.vlgmr.msra.gmra.mrb[30].mxu0 %vm45_vm0, %v9419_v21  ;;  %v8251_v21 = vpack.c.bf16 %v2586_v51, %v2585_v50  ;;  %v8265_v42 = vpack.c.bf16 %v2610_v32, %v2609_v31  ;;  %v2563_v51 = vld [vmem:[%s11966_s8 + $0x60] sm:$0xff] }
 0x8ab   :  { %2435 = vmatprep.mubr.f32.mxu1 %v8955_v52  ;;  %2512 = vmatprep.mubr.f32.mxu0 %v8955_v52 }
 0x8ac   :  { %8216 = vmatpush3.bf16.msra.mxu1 %v8215_v44  ;;  %8248 = vmatpush3.bf16.msra.mxu0 %v8247_v45  ;;  %v2594_v44 = vld [vmem:[%s11966_s8 + $0x158] sm:$0xff]  ;;  %v2579_v45 = vld [vmem:[%s11966_s8 + $0xe0] sm:$0xff] }
 0x8ad   :  { %8218 = vmatprep.subr.bf16.mxu1 %v8217_v48  ;;  %8250 = vmatprep.subr.bf16.mxu0 %v8249_v49  ;;  %v2612_v48 = vld [vmem:[%s11966_s8 + $0x1e8] sm:$0xff]  ;;  %v8235_v49 = vpack.c.bf16 %v2562_v39, %v2561_v35  ;;  %v8267_v50 = vpack.c.bf16 %v2594_v44, %v2593_v43  ;;  %v8237_v53 = vpack.c.bf16 %v2580_v46, %v2579_v45  ;;  %v2634_v35 = vld [vmem:[%s11966_s8 + $0x298] sm:$0xff]  ;;  %v2665_v39 = vld [vmem:[%s11966_s8 + $0x390] sm:$0xff]  ;;  %v9819_v44 = vsub.s32 7, %v9047_v30 }
 0x8ae   :  { %6854 = vmatmul.mubr.msk.f32.gmra.mrb[32].mxu1 %vm45_vm0, %v9451_v37  ;;  %6856 = vmatmul.mubr.msk.f32.gmra.mrb[32].mxu0 %vm45_vm0, %v9451_v37  ;;  %v2557_v37 = vld [vmem:[%s11966_s8 + $0x30] sm:$0xff]  ;;  %v8269_v55 = vpack.c.bf16 %v2612_v48, %v2611_v47  ;;  %v8279_v45 = vpack.c.bf16 %v2616_v24, %v2615_v23  ;;  %v8311_v46 = vpack.c.bf16 %v2648_v28, %v2647_v58  ;;  %v2652_v28 = vld [vmem:[%s11966_s8 + $0x328] sm:$0xff] }
 0x8af   :  { %v8227_v20 = vpack.c.bf16 %v2558_v13, %v2557_v37  ;;  %v2631_v13 = vld [vmem:[%s11966_s8 + $0x280] sm:$0xff]  ;;  %v2617_v48 = vld [vmem:[%s11966_s8 + $0x210] sm:$0xff] }
 0x8b0   :  { %8220 = vmatpush3.bf16.msra.mxu1 %v8219_v63  ;;  %8252 = vmatpush3.bf16.msra.mxu0 %v8251_v21  ;;  %v2596_v63 = vld [vmem:[%s11966_s8 + $0x168] sm:$0xff]  ;;  %v8239_v21 = vpack.c.bf16 %v2564_v62, %v2563_v51 }
 0x8b1   :  { %8222 = vmatprep.subr.bf16.mxu1 %v8221_v5  ;;  %8254 = vmatprep.subr.bf16.mxu0 %v8253_v9  ;;  %v8271_v3 = vpack.c.bf16 %v2596_v63, %v2595_v60  ;;  %v2582_v5 = vld [vmem:[%s11966_s8 + $0xf8] sm:$0xff]  ;;  %v2613_v9 = vld [vmem:[%s11966_s8 + $0x1f0] sm:$0xff] }
 0x8b2   :  { %v8241_v10 = vpack.c.bf16 %v2582_v5, %v2581_v4  ;;  %v8273_v56 = vpack.c.bf16 %v2614_v11, %v2613_v9  ;;  %v2618_v60 = vld [vmem:[%s11966_s8 + $0x218] sm:$0xff]  ;;  %v2649_v63 = vld [vmem:[%s11966_s8 + $0x310] sm:$0xff] }
 0x8b3   :  { %v2650_v11 = vld [vmem:[%s11966_s8 + $0x318] sm:$0xff] }
 0x8b4   :  { %8224 = vmatpush3.bf16.msra.mxu1 %v8223_v59  ;;  %8256 = vmatpush3.bf16.msra.mxu0 %v8255_v61  ;;  %v2597_v59 = vld [vmem:[%s11966_s8 + $0x170] sm:$0xff]  ;;  %v2598_v61 = vld [vmem:[%s11966_s8 + $0x178] sm:$0xff] }
 0x8b5   :  { %8226 = vmatprep.subr.bf16.mxu1 %v8225_v1  ;;  %8258 = vmatprep.subr.bf16.mxu0 %v8257_v14  ;;  %v8275_v37 = vpack.c.bf16 %v2598_v61, %v2597_v59  ;;  %v2632_v1 = vld [vmem:[%s11966_s8 + $0x288] sm:$0xff]  ;;  %v2663_v14 = vld [vmem:[%s11966_s8 + $0x380] sm:$0xff] }
 0x8b6   :  { %v8277_v38 = vpack.c.bf16 %v2632_v1, %v2631_v13  ;;  %v8309_v16 = vpack.c.bf16 %v2664_v15, %v2663_v14  ;;  %v2636_v59 = vld [vmem:[%s11966_s8 + $0x2a8] sm:$0xff]  ;;  %v2667_v61 = vld [vmem:[%s11966_s8 + $0x3a0] sm:$0xff] }
 0x8b7   :  { %v2619_v13 = vld [vmem:[%s11966_s8 + $0x220] sm:$0xff] }
 0x8b8   :  { %8228 = vmatpush3.bf16.msra.mxu1 %v8227_v20  ;;  %8260 = vmatpush3.bf16.msra.mxu0 %v8259_v22  ;;  %v1824_v20 = vrot.slane %v9781_v17, %v9060_v41  ;;  %v1832_v22 = vrot.slane %v9781_v17, %v9386_v54 }
 0x8b9   :  { %8230 = vmatprep.subr.bf16.mxu1 %v8229_v25  ;;  %8262 = vmatprep.subr.bf16.mxu0 %v8261_v26  ;;  %v9798_v25 = vsub.s32 5, %v9047_v30 }
 0x8bb   :  { %v9823_v47 = vrot.slane %v9781_v17, %v9798_v25 }
 0x8bc   :  { %8232 = vmatpush3.bf16.msra.mxu1 %v8231_v34  ;;  %8264 = vmatpush3.bf16.msra.mxu0 %v8263_v33 }
 0x8bd   :  { %8234 = vmatprep.subr.bf16.mxu1 %v8233_v40  ;;  %8266 = vmatprep.subr.bf16.mxu0 %v8265_v42  ;;  %v2666_v40 = vld [vmem:[%s11966_s8 + $0x398] sm:$0xff] }
 0x8be   :  { %v8313_v62 = vpack.c.bf16 %v2666_v40, %v2665_v39 }
 0x8c0   :  { %8236 = vmatpush3.bf16.msra.mxu1 %v8235_v49  ;;  %8268 = vmatpush3.bf16.msra.mxu0 %v8267_v50 }
 0x8c1   :  { %8238 = vmatprep.subr.bf16.mxu1 %v8237_v53  ;;  %8270 = vmatprep.subr.bf16.mxu0 %v8269_v55  ;;  %v8281_v55 = vpack.c.bf16 %v2634_v35, %v2633_v29  ;;  %v2637_v29 = vld [vmem:[%s11966_s8 + $0x2b0] sm:$0xff]  ;;  %v2670_v35 = vld [vmem:[%s11966_s8 + $0x3b8] sm:$0xff] }
 0x8c4   :  { %8240 = vmatpush3.bf16.msra.mxu1 %v8239_v21  ;;  %8272 = vmatpush3.bf16.msra.mxu0 %v8271_v3 }
 0x8c5   :  { %8242 = vmatprep.subr.bf16.mxu1 %v8241_v10  ;;  %8274 = vmatprep.subr.bf16.mxu0 %v8273_v56 }
 0x8c8   :  { %8244 = vmatpush3.bf16.msra.mxu1 %v8243_v57  ;;  %8276 = vmatpush3.bf16.msra.mxu0 %v8275_v37  ;;  %v9842_v57 = vrot.slane %v9781_v17, %v9819_v44  ;;  %v2668_v37 = vld [vmem:[%s11966_s8 + $0x3a8] sm:$0xff] }
 0x8c9   :  { %8278 = vmatprep.subr.bf16.mxu1 %v8277_v38  ;;  %8310 = vmatprep.subr.bf16.mxu0 %v8309_v16  ;;  %v8283_v16 = vpack.c.bf16 %v2618_v60, %v2617_v48  ;;  %v8317_v58 = vpack.c.bf16 %v2668_v37, %v2667_v61  ;;  %v2621_v48 = vld [vmem:[%s11966_s8 + $0x230] sm:$0xff]  ;;  %v2654_v60 = vld [vmem:[%s11966_s8 + $0x338] sm:$0xff] }
 0x965   :  { %v1969_v26 = vpop.f32.mrb[18].mxu1  ;;  %v2046_v27 = vpop.f32.mrb[18].mxu0 }
 0x966   :  { %v1970_v31 = vadd.f32 %v1969_v26, %v1820_v18  ;;  %v2047_v32 = vadd.f32 %v2046_v27, %v1828_v19  ;;  %v1971_v34 = vpop.f32.mrb[19].mxu1  ;;  %v2048_v33 = vpop.f32.mrb[19].mxu0  ;;  %v8285_v27 = vpack.c.bf16 %v2636_v59, %v2635_v12  ;;  %v2623_v12 = vld [vmem:[%s11966_s8 + $0x240] sm:$0xff] }
 0x967   :  { %v1972_v42 = vadd.f32 %v1971_v34, %v1824_v20  ;;  %v2049_v43 = vadd.f32 %v2048_v33, %v1832_v22  ;;  %v2638_v34 = vld [vmem:[%s11966_s8 + $0x2b8] sm:$0xff]  ;;  %v2669_v33 = vld [vmem:[%s11966_s8 + $0x3b0] sm:$0xff] }
 0x968   :  { %v2519_v21 = vmax.f32 %v1970_v31, 0.0  ;;  %v2521_v3 = vmax.f32 %v2047_v32, 0.0 }
 0x969   :  { %v2520_v49 = vmax.f32 %v1972_v42, 0.0  ;;  %v2522_v50 = vmax.f32 %v2049_v43, 0.0  ;;  %v1975_v51 = vpop.f32.mrb[20].mxu1  ;;  %v2052_v53 = vpop.f32.mrb[20].mxu0 }
 0x96a   :  { %v1976_v4 = vadd.f32 %v1975_v51, %v1820_v18  ;;  %v2053_v5 = vadd.f32 %v2052_v53, %v1828_v19  ;;  %v1977_v9 = vpop.f32.mrb[21].mxu1  ;;  %v2054_v10 = vpop.f32.mrb[21].mxu0  ;;  %v8315_v18 = vpack.c.bf16 %v2650_v11, %v2649_v63  ;;  %v2620_v19 = vld [vmem:[%s11966_s8 + $0x228] sm:$0xff]  ;;  %v8289_v53 = vpack.c.bf16 %v2638_v34, %v2637_v29  ;;  %v2639_v63 = vld [vmem:[%s11966_s8 + $0x2c0] sm:$0xff]  ;;  %v2658_v34 = vld [vmem:[%s11966_s8 + $0x358] sm:$0xff] }
 0x96b   :  { %v1978_v0 = vadd.f32 %v1977_v9, %v1824_v20  ;;  %v2055_v56 = vadd.f32 %v2054_v10, %v1832_v22  ;;  %2875 = vmatprep.mubr.f32.mxu1 %v2520_v49  ;;  %2950 = vmatprep.mubr.f32.mxu0 %v2522_v50  ;;  %v2651_v20 = vld [vmem:[%s11966_s8 + $0x320] sm:$0xff]  ;;  %v2622_v49 = vld [vmem:[%s11966_s8 + $0x238] sm:$0xff] }
 0x96c   :  { %2876 = vmatmul.mubr.f32.vlgmr.msra.gmra.mrb[34].mxu1 %v2519_v21  ;;  %2951 = vmatmul.mubr.f32.vlgmr.msra.gmra.mrb[34].mxu0 %v2521_v3  ;;  %v2535_v22 = vmax.f32 %v1976_v4, 0.0  ;;  %v2537_v23 = vmax.f32 %v2053_v5, 0.0  ;;  %v2640_v21 = vld [vmem:[%s11966_s8 + $0x2c8] sm:$0xff]  ;;  %v2671_v3 = vld [vmem:[%s11966_s8 + $0x3c0] sm:$0xff]  ;;  %v8291_v10 = vpack.c.bf16 %v2622_v49, %v2621_v48 }
 0x96d   :  { %v2536_v1 = vmax.f32 %v1978_v0, 0.0  ;;  %v2538_v14 = vmax.f32 %v2055_v56, 0.0  ;;  %8280 = vmatpush3.bf16.msra.mxu1 %v8279_v45  ;;  %8312 = vmatpush3.bf16.msra.mxu0 %v8311_v46  ;;  %v9856_v38 = vpop.f32.mrb[22].mxu1  ;;  %v9858_v15 = vpop.f32.mrb[22].mxu0  ;;  %v8287_v45 = vpack.c.bf16 %v2620_v19, %v2619_v13  ;;  %v8319_v46 = vpack.c.bf16 %v2652_v28, %v2651_v20  ;;  %v2672_v4 = vld [vmem:[%s11966_s8 + $0x3c8] sm:$0xff]  ;;  %v2655_v13 = vld [vmem:[%s11966_s8 + $0x340] sm:$0xff] }
 0x96e   :  { %v2125_v24 = vpop.f32.mrb[23].mxu1  ;;  %v2202_v26 = vpop.f32.mrb[23].mxu0  ;;  %8282 = vmatprep.subr.bf16.mxu1 %v8281_v55  ;;  %8314 = vmatprep.subr.bf16.mxu0 %v8313_v62  ;;  %v8321_v55 = vpack.c.bf16 %v2670_v35, %v2669_v33  ;;  %v2653_v62 = vld [vmem:[%s11966_s8 + $0x330] sm:$0xff]  ;;  %v2624_v0 = vld [vmem:[%s11966_s8 + $0x248] sm:$0xff]  ;;  %v8293_v61 = vpack.c.bf16 %v2640_v21, %v2639_v63  ;;  %v8325_v37 = vpack.c.bf16 %v2672_v4, %v2671_v3  ;;  %v2674_v19 = vld [vmem:[%s11966_s8 + $0x3d8] sm:$0xff] }
 0x96f   :  { %v2126_v31 = vadd.f32 %v2125_v24, %v9823_v47  ;;  %v2203_v32 = vadd.f32 %v2202_v26, %v9842_v57  ;;  %2880 = vmatprep.mubr.f32.mxu1 %v2536_v1  ;;  %2955 = vmatprep.mubr.f32.mxu0 %v2538_v14  ;;  %v8323_v11 = vpack.c.bf16 %v2654_v60, %v2653_v62  ;;  %v2656_v1 = vld [vmem:[%s11966_s8 + $0x348] sm:$0xff]  ;;  %v2641_v14 = vld [vmem:[%s11966_s8 + $0x2d0] sm:$0xff]  ;;  %v2643_v33 = vld [vmem:[%s11966_s8 + $0x2e0] sm:$0xff]  ;;  %v9990_v62 = vsub.s32 6, %v9047_v30 }
 0x970   :  { %2881 = vmatmul.mubr.f32.gmra.mrb[36].mxu1 %v2535_v22  ;;  %2956 = vmatmul.mubr.f32.gmra.mrb[36].mxu0 %v2537_v23  ;;  %v8295_v23 = vpack.c.bf16 %v2624_v0, %v2623_v12  ;;  %v8327_v24 = vpack.c.bf16 %v2656_v1, %v2655_v13  ;;  %v2625_v26 = vld [vmem:[%s11966_s8 + $0x250] sm:$0xff]  ;;  %v2644_v35 = vld [vmem:[%s11966_s8 + $0x2e8] sm:$0xff]  ;;  %v2659_v4 = vld [vmem:[%s11966_s8 + $0x360] sm:$0xff] }
 0x971   :  { %v2524_v39 = vmax.f32 %v2126_v31, 0.0  ;;  %v2526_v40 = vmax.f32 %v2203_v32, 0.0  ;;  %8284 = vmatpush3.bf16.msra.mxu1 %v8283_v16  ;;  %8316 = vmatpush3.bf16.msra.mxu0 %v8315_v18  ;;  %v9883_v42 = vpop.f32.mrb[24].mxu1  ;;  %v9885_v43 = vpop.f32.mrb[24].mxu0  ;;  %v2642_v16 = vld [vmem:[%s11966_s8 + $0x2d8] sm:$0xff]  ;;  %v2673_v18 = vld [vmem:[%s11966_s8 + $0x3d0] sm:$0xff]  ;;  %v8301_v21 = vpack.c.bf16 %v2644_v35, %v2643_v33 }
 0x972   :  { %v9893_v50 = vpop.f32.mrb[25].mxu1  ;;  %v9895_v51 = vpop.f32.mrb[25].mxu0  ;;  %8286 = vmatprep.subr.bf16.mxu1 %v8285_v27  ;;  %8318 = vmatprep.subr.bf16.mxu0 %v8317_v58  ;;  %v2626_v27 = vld [vmem:[%s11966_s8 + $0x258] sm:$0xff]  ;;  %v8297_v29 = vpack.c.bf16 %v2642_v16, %v2641_v14  ;;  %v8329_v31 = vpack.c.bf16 %v2674_v19, %v2673_v18  ;;  %v2657_v32 = vld [vmem:[%s11966_s8 + $0x350] sm:$0xff]  ;;  %v2728_v33 = vld [vmem:[%s11966_s8 + $0x588] sm:$0xff] }
 0x973   :  { %3025 = vmatprep.mubr.f32.mxu1 %v2524_v39  ;;  %3100 = vmatprep.mubr.f32.mxu0 %v2526_v40  ;;  %v2675_v39 = vld [vmem:[%s11966_s8 + $0x3e0] sm:$0xff]  ;;  %v2676_v40 = vld [vmem:[%s11966_s8 + $0x3e8] sm:$0xff]  ;;  %v8299_v48 = vpack.c.bf16 %v2626_v27, %v2625_v26  ;;  %v8331_v49 = vpack.c.bf16 %v2658_v34, %v2657_v32  ;;  %v2645_v30 = vld [vmem:[%s11966_s8 + $0x2f0] sm:$0xff] }
 0x974   :  { %v8333_v3 = vpack.c.bf16 %v2676_v40, %v2675_v39  ;;  %v2677_v12 = vld [vmem:[%s11966_s8 + $0x3f0] sm:$0xff]  ;;  %v2678_v0 = vld [vmem:[%s11966_s8 + $0x3f8] sm:$0xff]  ;;  %v2695_v32 = vld [vmem:[%s11966_s8 + $0x480] sm:$0xff] }
 0x975   :  { %8288 = vmatpush3.bf16.msra.mxu1 %v8287_v45  ;;  %8320 = vmatpush3.bf16.msra.mxu0 %v8319_v46  ;;  %v9915_v5 = vpop.f32.mrb[26].mxu1  ;;  %v9917_v9 = vpop.f32.mrb[26].mxu0  ;;  %v2629_v16 = vld [vmem:[%s11966_s8 + $0x270] sm:$0xff]  ;;  %v2630_v18 = vld [vmem:[%s11966_s8 + $0x278] sm:$0xff]  ;;  %v2727_v34 = vld [vmem:[%s11966_s8 + $0x580] sm:$0xff] }
 0x976   :  { %v9925_v56 = vpop.f32.mrb[27].mxu1  ;;  %v9927_v59 = vpop.f32.mrb[27].mxu0  ;;  %8290 = vmatprep.subr.bf16.mxu1 %v8289_v53  ;;  %8322 = vmatprep.subr.bf16.mxu0 %v8321_v55  ;;  %v2627_v53 = vld [vmem:[%s11966_s8 + $0x260] sm:$0xff]  ;;  %v2628_v55 = vld [vmem:[%s11966_s8 + $0x268] sm:$0xff]  ;;  %v2661_v19 = vld [vmem:[%s11966_s8 + $0x370] sm:$0xff] }
 0x977   :  { %v8303_v1 = vpack.c.bf16 %v2628_v55, %v2627_v53  ;;  %v10053_v35 = vld [vmem:[%s11962_s4 + $0x8] sm:$0xff]  ;;  %v2679_v39 = vld [vmem:[%s11966_s8 + $0x400] sm:$0xff] }
 0x978   :  { %v2680_v40 = vld [vmem:[%s11966_s8 + $0x408] sm:$0xff]  ;;  %v2711_v55 = vld [vmem:[%s11966_s8 + $0x500] sm:$0xff] }
 0x979   :  { %8292 = vmatpush3.bf16.msra.mxu1 %v8291_v10  ;;  %8324 = vmatpush3.bf16.msra.mxu0 %v8323_v11  ;;  %v9947_v20 = vpop.f32.mrb[28].mxu1  ;;  %v9949_v22 = vpop.f32.mrb[28].mxu0  ;;  %v2660_v10 = vld [vmem:[%s11966_s8 + $0x368] sm:$0xff]  ;;  %v2646_v11 = vld [vmem:[%s11966_s8 + $0x2f8] sm:$0xff] }
 0x97a   :  { %v9957_v58 = vpop.f32.mrb[29].mxu1  ;;  %v9959_v28 = vpop.f32.mrb[29].mxu0  ;;  %8294 = vmatprep.subr.bf16.mxu1 %v8293_v61  ;;  %8326 = vmatprep.subr.bf16.mxu0 %v8325_v37  ;;  %v1836_v61 = vrot.slane %v9781_v17, %v9294_v2  ;;  %v8335_v14 = vpack.c.bf16 %v2660_v10, %v2659_v4  ;;  %v8305_v27 = vpack.c.bf16 %v2646_v11, %v2645_v30  ;;  %v2698_v11 = vld [vmem:[%s11966_s8 + $0x498] sm:$0xff] }
 0x97b   :  { %v8373_v30 = vpack.c.bf16 %v2728_v33, %v2727_v34  ;;  %v2732_v33 = vld [vmem:[%s11966_s8 + $0x5a8] sm:$0xff] }
 0x97c   :  { %v2124_v4 = vadd.f32 %v9856_v38, %v1836_v61  ;;  %v2132_v38 = vadd.f32 %v9893_v50, %v9823_v47  ;;  %v2130_v47 = vadd.f32 %v9883_v42, %v1836_v61  ;;  %v2681_v50 = vld [vmem:[%s11966_s8 + $0x410] sm:$0xff]  ;;  %v2714_v61 = vld [vmem:[%s11966_s8 + $0x518] sm:$0xff] }
 0x97d   :  { %8296 = vmatpush3.bf16.msra.mxu1 %v8295_v23  ;;  %8328 = vmatpush3.bf16.msra.mxu0 %v8327_v24  ;;  %v9979_v45 = vpop.f32.mrb[30].mxu1  ;;  %v9981_v46 = vpop.f32.mrb[30].mxu0  ;;  %v1844_v23 = vrot.slane %v9781_v17, %v9990_v62  ;;  %v2696_v17 = vld [vmem:[%s11966_s8 + $0x488] sm:$0xff] }
 0x97e   :  { %v9992_v60 = vpop.f32.mrb[31].mxu1  ;;  %v9994_v63 = vpop.f32.mrb[31].mxu0  ;;  %8298 = vmatprep.subr.bf16.mxu1 %v8297_v29  ;;  %8330 = vmatprep.subr.bf16.mxu0 %v8329_v31  ;;  %v8337_v29 = vpack.c.bf16 %v2678_v0, %v2677_v12  ;;  %v2662_v31 = vld [vmem:[%s11966_s8 + $0x378] sm:$0xff]  ;;  %v8341_v53 = vpack.c.bf16 %v2696_v17, %v2695_v32  ;;  %v2729_v12 = vld [vmem:[%s11966_s8 + $0x590] sm:$0xff]  ;;  %v2540_v32 = vmax.f32 %v2132_v38, 0.0 }
 0x97f   :  { %v2201_v10 = vadd.f32 %v9858_v15, %v1844_v23  ;;  %v2730_v0 = vld [vmem:[%s11966_s8 + $0x598] sm:$0xff]  ;;  %v2209_v15 = vadd.f32 %v9895_v51, %v9842_v57  ;;  %v2207_v57 = vadd.f32 %v9885_v43, %v1844_v23  ;;  %v2713_v43 = vld [vmem:[%s11966_s8 + $0x510] sm:$0xff]  ;;  %v2699_v23 = vld [vmem:[%s11966_s8 + $0x4a0] sm:$0xff] }
 0x980   :  { %v2682_v51 = vld [vmem:[%s11966_s8 + $0x418] sm:$0xff]  ;;  %v2733_v38 = vld [vmem:[%s11966_s8 + $0x5b0] sm:$0xff] }
 0x981   :  { %8300 = vmatpush3.bf16.msra.mxu1 %v8299_v48  ;;  %8332 = vmatpush3.bf16.msra.mxu0 %v8331_v49  ;;  %v10016_v37 = vpop.f32.mrb[32].mxu1  ;;  %v10018_v13 = vpop.f32.mrb[32].mxu0  ;;  %v8307_v48 = vpack.c.bf16 %v2630_v18, %v2629_v16  ;;  %v8339_v49 = vpack.c.bf16 %v2662_v31, %v2661_v19  ;;  %v8343_v16 = vpack.c.bf16 %v2680_v40, %v2679_v39  ;;  %v2525_v31 = vmax.f32 %v2201_v10, 0.0 }
 0x982   :  { %v10031_v24 = vpop.f32.mrb[33].mxu1  ;;  %v10033_v26 = vpop.f32.mrb[33].mxu0  ;;  %8302 = vmatprep.subr.bf16.mxu1 %v8301_v21  ;;  %8334 = vmatprep.subr.bf16.mxu0 %v8333_v3  ;;  %v2712_v21 = vld [vmem:[%s11966_s8 + $0x508] sm:$0xff]  ;;  %v2697_v3 = vld [vmem:[%s11966_s8 + $0x490] sm:$0xff]  ;;  %v2542_v17 = vmax.f32 %v2209_v15, 0.0  ;;  %v2539_v39 = vmax.f32 %v2130_v47, 0.0 }
 0x983   :  { %v8375_v18 = vpack.c.bf16 %v2712_v21, %v2711_v55  ;;  %v8345_v19 = vpack.c.bf16 %v2698_v11, %v2697_v3  ;;  %v2541_v40 = vmax.f32 %v2207_v57, 0.0  ;;  %v2684_v55 = vld [vmem:[%s11966_s8 + $0x428] sm:$0xff]  ;;  %v2734_v15 = vld [vmem:[%s11966_s8 + $0x5b8] sm:$0xff]  ;;  %v2717_v47 = vld [vmem:[%s11966_s8 + $0x530] sm:$0xff] }
 0x984   :  { %v2716_v11 = vld [vmem:[%s11966_s8 + $0x528] sm:$0xff]  ;;  %v2718_v57 = vld [vmem:[%s11966_s8 + $0x538] sm:$0xff] }
 0x985   :  { %8304 = vmatpush3.bf16.msra.mxu1 %v8303_v1  ;;  %8336 = vmatpush3.bf16.msra.mxu0 %v8335_v14  ;;  %v10087_v1 = vrot.slane %v10053_v35, %v9060_v41  ;;  %v10091_v14 = vrot.slane %v10053_v35, %v9386_v54 }
 0x986   :  { %8306 = vmatprep.subr.bf16.mxu1 %v8305_v27  ;;  %8338 = vmatprep.subr.bf16.mxu0 %v8337_v29  ;;  %v8377_v27 = vpack.c.bf16 %v2730_v0, %v2729_v12  ;;  %v2523_v29 = vmax.f32 %v2124_v4, 0.0  ;;  %v2701_v12 = vld [vmem:[%s11966_s8 + $0x4b0] sm:$0xff]  ;;  %v2702_v0 = vld [vmem:[%s11966_s8 + $0x4b8] sm:$0xff] }
 0x987   :  { %v2280_v34 = vadd.f32 %v9925_v56, %v10087_v1  ;;  %v2357_v42 = vadd.f32 %v9927_v59, %v10091_v14  ;;  %v2700_v56 = vld [vmem:[%s11966_s8 + $0x4a8] sm:$0xff]  ;;  %v2731_v59 = vld [vmem:[%s11966_s8 + $0x5a0] sm:$0xff] }
 0x988   :  { %v8349_v4 = vpack.c.bf16 %v2700_v56, %v2699_v23  ;;  %v8381_v10 = vpack.c.bf16 %v2732_v33, %v2731_v59  ;;  %v2719_v59 = vld [vmem:[%s11966_s8 + $0x540] sm:$0xff]  ;;  %v2720_v33 = vld [vmem:[%s11966_s8 + $0x548] sm:$0xff] }
 0x989   :  { %8308 = vmatpush3.bf16.msra.mxu1 %v8307_v48  ;;  %8340 = vmatpush3.bf16.msra.mxu0 %v8339_v49  ;;  %v8347_v48 = vpack.c.bf16 %v2682_v51, %v2681_v50  ;;  %v8379_v49 = vpack.c.bf16 %v2714_v61, %v2713_v43  ;;  %v2528_v21 = vmax.f32 %v2280_v34, 0.0  ;;  %v2530_v3 = vmax.f32 %v2357_v42, 0.0  ;;  %v2703_v50 = vld [vmem:[%s11966_s8 + $0x4c0] sm:$0xff]  ;;  %v2704_v51 = vld [vmem:[%s11966_s8 + $0x4c8] sm:$0xff] }
 0x98a   :  { %8342 = vmatprep.subr.bf16.mxu1 %v8341_v53  ;;  %8374 = vmatprep.subr.bf16.mxu0 %v8373_v30  ;;  %v2683_v53 = vld [vmem:[%s11966_s8 + $0x420] sm:$0xff]  ;;  %v8387_v42 = vpack.c.bf16 %v2718_v57, %v2717_v47  ;;  %v2688_v61 = vld [vmem:[%s11966_s8 + $0x448] sm:$0xff]  ;;  %v8357_v23 = vpack.c.bf16 %v2704_v51, %v2703_v50  ;;  %v2709_v50 = vld [vmem:[%s11966_s8 + $0x4f0] sm:$0xff] }
 0x98b   :  { %v2715_v30 = vld [vmem:[%s11966_s8 + $0x520] sm:$0xff]  ;;  %v2724_v57 = vld [vmem:[%s11966_s8 + $0x568] sm:$0xff]  ;;  %v2710_v51 = vld [vmem:[%s11966_s8 + $0x4f8] sm:$0xff] }
 0x98c   :  { %3026 = vmatmul.mubr.f32.vlgmr.msra.gmra.mrb[38].mxu1 %v2523_v29  ;;  %3101 = vmatmul.mubr.f32.vlgmr.msra.gmra.mrb[38].mxu0 %v2525_v31  ;;  %v8353_v29 = vpack.c.bf16 %v2702_v0, %v2701_v12  ;;  %v8385_v31 = vpack.c.bf16 %v2734_v15, %v2733_v38  ;;  %v2687_v43 = vld [vmem:[%s11966_s8 + $0x440] sm:$0xff]  ;;  %v2708_v0 = vld [vmem:[%s11966_s8 + $0x4e8] sm:$0xff] }
 0x98d   :  { %3030 = vmatprep.mubr.f32.mxu1 %v2540_v32  ;;  %3105 = vmatprep.mubr.f32.mxu0 %v2542_v17  ;;  %v2735_v32 = vld [vmem:[%s11966_s8 + $0x5c0] sm:$0xff]  ;;  %v2736_v17 = vld [vmem:[%s11966_s8 + $0x5c8] sm:$0xff] }
 0x98e   :  { %8344 = vmatpush3.bf16.msra.mxu1 %v8343_v16  ;;  %8376 = vmatpush3.bf16.msra.mxu0 %v8375_v18  ;;  %v8351_v16 = vpack.c.bf16 %v2684_v55, %v2683_v53  ;;  %v8383_v18 = vpack.c.bf16 %v2716_v11, %v2715_v30  ;;  %v8389_v56 = vpack.c.bf16 %v2736_v17, %v2735_v32  ;;  %v2721_v30 = vld [vmem:[%s11966_s8 + $0x550] sm:$0xff]  ;;  %v2722_v11 = vld [vmem:[%s11966_s8 + $0x558] sm:$0xff]  ;;  %v2707_v12 = vld [vmem:[%s11966_s8 + $0x4e0] sm:$0xff] }
 0x98f   :  { %8346 = vmatprep.subr.bf16.mxu1 %v8345_v19  ;;  %8378 = vmatprep.subr.bf16.mxu0 %v8377_v27  ;;  %v2685_v19 = vld [vmem:[%s11966_s8 + $0x430] sm:$0xff]  ;;  %v2686_v27 = vld [vmem:[%s11966_s8 + $0x438] sm:$0xff]  ;;  %v8359_v53 = vpack.c.bf16 %v2688_v61, %v2687_v43  ;;  %v8391_v55 = vpack.c.bf16 %v2720_v33, %v2719_v59  ;;  %v2739_v38 = vld [vmem:[%s11966_s8 + $0x5e0] sm:$0xff]  ;;  %v1860_v59 = vrot.slane %v10053_v35, %v9381_v8 }
 0x990   :  { %3031 = vmatmul.mubr.f32.gmra.mrb[40].mxu1 %v2539_v39  ;;  %3106 = vmatmul.mubr.f32.gmra.mrb[40].mxu0 %v2541_v40  ;;  %v8355_v34 = vpack.c.bf16 %v2686_v27, %v2685_v19  ;;  %v2705_v39 = vld [vmem:[%s11966_s8 + $0x4d0] sm:$0xff]  ;;  %v2706_v40 = vld [vmem:[%s11966_s8 + $0x4d8] sm:$0xff]  ;;  %v2740_v15 = vld [vmem:[%s11966_s8 + $0x5e8] sm:$0xff]  ;;  %v8369_v33 = vpack.c.bf16 %v2710_v51, %v2709_v50 }
 0x991   :  { %3175 = vmatprep.mubr.f32.mxu1 %v2528_v21  ;;  %3250 = vmatprep.mubr.f32.mxu0 %v2530_v3  ;;  %v2689_v21 = vld [vmem:[%s11966_s8 + $0x450] sm:$0xff]  ;;  %v2690_v3 = vld [vmem:[%s11966_s8 + $0x458] sm:$0xff]  ;;  %v2691_v19 = vld [vmem:[%s11966_s8 + $0x460] sm:$0xff] }
 0x992   :  { %8348 = vmatpush3.bf16.msra.mxu1 %v8347_v48  ;;  %8380 = vmatpush3.bf16.msra.mxu0 %v8379_v49  ;;  %v2737_v48 = vld [vmem:[%s11966_s8 + $0x5d0] sm:$0xff]  ;;  %v2738_v49 = vld [vmem:[%s11966_s8 + $0x5d8] sm:$0xff]  ;;  %v2692_v27 = vld [vmem:[%s11966_s8 + $0x468] sm:$0xff] }
 0x993   :  { %8350 = vmatprep.subr.bf16.mxu1 %v8349_v4  ;;  %8382 = vmatprep.subr.bf16.mxu0 %v8381_v10  ;;  %v8361_v4 = vpack.c.bf16 %v2706_v40, %v2705_v39  ;;  %v8393_v10 = vpack.c.bf16 %v2738_v49, %v2737_v48  ;;  %v2723_v47 = vld [vmem:[%s11966_s8 + $0x560] sm:$0xff]  ;;  %v2741_v32 = vld [vmem:[%s11966_s8 + $0x5f0] sm:$0xff]  ;;  %v2742_v17 = vld [vmem:[%s11966_s8 + $0x5f8] sm:$0xff] }
 0x994   :  { %v8399_v43 = vpack.c.bf16 %v2724_v57, %v2723_v47  ;;  %v2693_v61 = vld [vmem:[%s11966_s8 + $0x470] sm:$0xff]  ;;  %v8401_v39 = vpack.c.bf16 %v2742_v17, %v2741_v32  ;;  %v2726_v40 = vld [vmem:[%s11966_s8 + $0x578] sm:$0xff]  ;;  %v2759_v48 = vld [vmem:[%s11966_s8 + $0x680] sm:$0xff] }
 0x995   :  { %v2760_v49 = vld [vmem:[%s11966_s8 + $0x688] sm:$0xff] }
 0x996   :  { %8352 = vmatpush3.bf16.msra.mxu1 %v8351_v16  ;;  %8384 = vmatpush3.bf16.msra.mxu0 %v8383_v18  ;;  %v8363_v16 = vpack.c.bf16 %v2690_v3, %v2689_v21  ;;  %v8395_v18 = vpack.c.bf16 %v2722_v11, %v2721_v30  ;;  %v2743_v21 = vld [vmem:[%s11966_s8 + $0x600] sm:$0xff]  ;;  %v2744_v3 = vld [vmem:[%s11966_s8 + $0x608] sm:$0xff]  ;;  %v8405_v30 = vpack.c.bf16 %v2760_v49, %v2759_v48 }
 0x997   :  { %8354 = vmatprep.subr.bf16.mxu1 %v8353_v29  ;;  %8386 = vmatprep.subr.bf16.mxu0 %v8385_v31  ;;  %v8365_v29 = vpack.c.bf16 %v2708_v0, %v2707_v12  ;;  %v8397_v31 = vpack.c.bf16 %v2740_v15, %v2739_v38  ;;  %v2775_v11 = vld [vmem:[%s11966_s8 + $0x700] sm:$0xff]  ;;  %v2776_v12 = vld [vmem:[%s11966_s8 + $0x708] sm:$0xff]  ;;  %v2761_v0 = vld [vmem:[%s11966_s8 + $0x690] sm:$0xff]  ;;  %v2355_v15 = vadd.f32 %v9917_v9, %v1860_v59 }
 0x998   :  { %v2363_v9 = vadd.f32 %v9959_v28, %v10091_v14  ;;  %v8407_v47 = vpack.c.bf16 %v2744_v3, %v2743_v21  ;;  %v8439_v57 = vpack.c.bf16 %v2776_v12, %v2775_v11  ;;  %v2361_v28 = vadd.f32 %v9949_v22, %v1860_v59  ;;  %v2746_v14 = vld [vmem:[%s11966_s8 + $0x618] sm:$0xff]  ;;  %v2777_v22 = vld [vmem:[%s11966_s8 + $0x710] sm:$0xff]  ;;  %v2747_v48 = vld [vmem:[%s11966_s8 + $0x620] sm:$0xff] }
 0x999   :  { %v2529_v17 = vmax.f32 %v2355_v15, 0.0  ;;  %v2748_v49 = vld [vmem:[%s11966_s8 + $0x628] sm:$0xff]  ;;  %v2766_v11 = vld [vmem:[%s11966_s8 + $0x6b8] sm:$0xff]  ;;  %v2797_v12 = vld [vmem:[%s11966_s8 + $0x7b0] sm:$0xff] }
 0x99a   :  { %8356 = vmatpush3.bf16.msra.mxu1 %v8355_v34  ;;  %8388 = vmatpush3.bf16.msra.mxu0 %v8387_v42  ;;  %v1852_v34 = vrot.slane %v10053_v35, %v9050_v36  ;;  %v8367_v42 = vpack.c.bf16 %v2692_v27, %v2691_v19  ;;  %v2793_v19 = vld [vmem:[%s11966_s8 + $0x790] sm:$0xff]  ;;  %v2794_v27 = vld [vmem:[%s11966_s8 + $0x798] sm:$0xff] }
 0x99b   :  { %8358 = vmatprep.subr.bf16.mxu1 %v8357_v23  ;;  %8390 = vmatprep.subr.bf16.mxu0 %v8389_v56  ;;  %v2694_v23 = vld [vmem:[%s11966_s8 + $0x478] sm:$0xff]  ;;  %v2725_v56 = vld [vmem:[%s11966_s8 + $0x570] sm:$0xff]  ;;  %v8441_v51 = vpack.c.bf16 %v2794_v27, %v2793_v19 }
 0x99c   :  { %v2278_v38 = vadd.f32 %v9915_v5, %v1852_v34  ;;  %v2286_v5 = vadd.f32 %v9957_v58, %v10087_v1  ;;  %v2284_v58 = vadd.f32 %v9947_v20, %v1852_v34  ;;  %v2745_v1 = vld [vmem:[%s11966_s8 + $0x610] sm:$0xff]  ;;  %v2778_v34 = vld [vmem:[%s11966_s8 + $0x718] sm:$0xff] }
 0x99e   :  { %8360 = vmatpush3.bf16.msra.mxu1 %v8359_v53  ;;  %8392 = vmatpush3.bf16.msra.mxu0 %v8391_v55  ;;  %v2791_v53 = vld [vmem:[%s11966_s8 + $0x780] sm:$0xff]  ;;  %v2792_v55 = vld [vmem:[%s11966_s8 + $0x788] sm:$0xff]  ;;  %v2527_v32 = vmax.f32 %v2278_v38, 0.0  ;;  %v2543_v59 = vmax.f32 %v2284_v58, 0.0  ;;  %v8415_v38 = vpack.c.bf16 %v2748_v49, %v2747_v48 }
 0x99f   :  { %8362 = vmatprep.subr.bf16.mxu1 %v8361_v4  ;;  %8394 = vmatprep.subr.bf16.mxu0 %v8393_v10  ;;  %v8371_v4 = vpack.c.bf16 %v2694_v23, %v2693_v61  ;;  %v8403_v10 = vpack.c.bf16 %v2726_v40, %v2725_v56  ;;  %v2763_v23 = vld [vmem:[%s11966_s8 + $0x6a0] sm:$0xff]  ;;  %v2796_v56 = vld [vmem:[%s11966_s8 + $0x7a8] sm:$0xff]  ;;  %v8443_v40 = vpack.c.bf16 %v2778_v34, %v2777_v22  ;;  %v2801_v22 = vld [vmem:[%s11966_s8 + $0x7d0] sm:$0xff] }
 0x9a0   :  { %v2751_v58 = vld [vmem:[%s11966_s8 + $0x640] sm:$0xff]  ;;  %v2802_v34 = vld [vmem:[%s11966_s8 + $0x7d8] sm:$0xff]  ;;  %v2772_v49 = vld [vmem:[%s11966_s8 + $0x6e8] sm:$0xff] }
 0x9a1   :  { %v2771_v48 = vld [vmem:[%s11966_s8 + $0x6e0] sm:$0xff] }
 0x9a2   :  { %8364 = vmatpush3.bf16.msra.mxu1 %v8363_v16  ;;  %8396 = vmatpush3.bf16.msra.mxu0 %v8395_v18  ;;  %v8437_v16 = vpack.c.bf16 %v2792_v55, %v2791_v53  ;;  %v2762_v18 = vld [vmem:[%s11966_s8 + $0x698] sm:$0xff] }
 0x9a3   :  { %8366 = vmatprep.subr.bf16.mxu1 %v8365_v29  ;;  %8398 = vmatprep.subr.bf16.mxu0 %v8397_v31  ;;  %v10303_v29 = vrot.slane %v10053_v35, %v9798_v25  ;;  %v10307_v31 = vrot.slane %v10053_v35, %v9819_v44  ;;  %v8409_v50 = vpack.c.bf16 %v2762_v18, %v2761_v0  ;;  %v2798_v0 = vld [vmem:[%s11966_s8 + $0x7b8] sm:$0xff] }
 0x9a4   :  { %v2750_v18 = vld [vmem:[%s11966_s8 + $0x638] sm:$0xff]  ;;  %v8449_v27 = vpack.c.bf16 %v2798_v0, %v2797_v12  ;;  %v2787_v12 = vld [vmem:[%s11966_s8 + $0x760] sm:$0xff]  ;;  %v2788_v0 = vld [vmem:[%s11966_s8 + $0x768] sm:$0xff] }
 0x9a5   :  { %v2434_v61 = vadd.f32 %v9992_v60, %v10303_v29  ;;  %v2511_v20 = vadd.f32 %v9994_v63, %v10307_v31  ;;  %v2764_v60 = vld [vmem:[%s11966_s8 + $0x6a8] sm:$0xff]  ;;  %v2795_v63 = vld [vmem:[%s11966_s8 + $0x7a0] sm:$0xff] }
 0x9a6   :  { %8368 = vmatpush3.bf16.msra.mxu1 %v8367_v42  ;;  %8400 = vmatpush3.bf16.msra.mxu0 %v8399_v43  ;;  %v2544_v42 = vmax.f32 %v2286_v5, 0.0  ;;  %v2546_v43 = vmax.f32 %v2363_v9, 0.0  ;;  %v8413_v21 = vpack.c.bf16 %v2764_v60, %v2763_v23  ;;  %v8445_v3 = vpack.c.bf16 %v2796_v56, %v2795_v63  ;;  %v2781_v5 = vld [vmem:[%s11966_s8 + $0x730] sm:$0xff]  ;;  %v2782_v9 = vld [vmem:[%s11966_s8 + $0x738] sm:$0xff] }
 0x9a7   :  { %8370 = vmatprep.subr.bf16.mxu1 %v8369_v33  ;;  %8402 = vmatprep.subr.bf16.mxu0 %v8401_v39  ;;  %v2545_v33 = vmax.f32 %v2361_v28, 0.0  ;;  %v8411_v39 = vpack.c.bf16 %v2746_v14, %v2745_v1  ;;  %v2532_v53 = vmax.f32 %v2434_v61, 0.0  ;;  %v2534_v55 = vmax.f32 %v2511_v20, 0.0  ;;  %v2752_v28 = vld [vmem:[%s11966_s8 + $0x648] sm:$0xff]  ;;  %v2769_v61 = vld [vmem:[%s11966_s8 + $0x6d0] sm:$0xff]  ;;  %v2770_v20 = vld [vmem:[%s11966_s8 + $0x6d8] sm:$0xff] }
 0x9a8   :  { %v8423_v23 = vpack.c.bf16 %v2752_v28, %v2751_v58  ;;  %v2753_v63 = vld [vmem:[%s11966_s8 + $0x650] sm:$0xff]  ;;  %v2754_v56 = vld [vmem:[%s11966_s8 + $0x658] sm:$0xff] }
 0x9aa   :  { %8372 = vmatpush3.bf16.msra.mxu1 %v8371_v4  ;;  %8404 = vmatpush3.bf16.msra.mxu0 %v8403_v10  ;;  %v2779_v4 = vld [vmem:[%s11966_s8 + $0x720] sm:$0xff]  ;;  %v2780_v10 = vld [vmem:[%s11966_s8 + $0x728] sm:$0xff] }
 0x9ab   :  { %8406 = vmatprep.subr.bf16.mxu1 %v8405_v30  ;;  %8438 = vmatprep.subr.bf16.mxu0 %v8437_v16  ;;  %v2765_v30 = vld [vmem:[%s11966_s8 + $0x6b0] sm:$0xff]  ;;  %v8447_v15 = vpack.c.bf16 %v2780_v10, %v2779_v4  ;;  %v2755_v4 = vld [vmem:[%s11966_s8 + $0x660] sm:$0xff]  ;;  %v2756_v10 = vld [vmem:[%s11966_s8 + $0x668] sm:$0xff] }
 0x9ac   :  { %v2749_v16 = vld [vmem:[%s11966_s8 + $0x630] sm:$0xff]  ;;  %v8417_v19 = vpack.c.bf16 %v2766_v11, %v2765_v30  ;;  %v8429_v30 = vpack.c.bf16 %v2772_v49, %v2771_v48 }
 0x9ad   :  { %3176 = vmatmul.mubr.f32.vlgmr.msra.gmra.mrb[42].mxu1 %v2527_v32  ;;  %3251 = vmatmul.mubr.f32.vlgmr.msra.gmra.mrb[42].mxu0 %v2529_v17  ;;  %v8419_v32 = vpack.c.bf16 %v2750_v18, %v2749_v16  ;;  %v8451_v17 = vpack.c.bf16 %v2782_v9, %v2781_v5  ;;  %v2805_v16 = vld [vmem:[%s11966_s8 + $0x7f0] sm:$0xff]  ;;  %v2806_v18 = vld [vmem:[%s11966_s8 + $0x7f8] sm:$0xff]  ;;  %v8463_v5 = vpack.c.bf16 %v2788_v0, %v2787_v12 }
 0x9ae   :  { %3180 = vmatprep.mubr.f32.mxu1 %v2544_v42  ;;  %3255 = vmatprep.mubr.f32.mxu0 %v2546_v43  ;;  %v2783_v42 = vld [vmem:[%s11966_s8 + $0x740] sm:$0xff]  ;;  %v2784_v43 = vld [vmem:[%s11966_s8 + $0x748] sm:$0xff]  ;;  %v2757_v9 = vld [vmem:[%s11966_s8 + $0x670] sm:$0xff] }
 0x9af   :  { %8408 = vmatpush3.bf16.msra.mxu1 %v8407_v47  ;;  %8440 = vmatpush3.bf16.msra.mxu0 %v8439_v57  ;;  %v2767_v47 = vld [vmem:[%s11966_s8 + $0x6c0] sm:$0xff]  ;;  %v2768_v57 = vld [vmem:[%s11966_s8 + $0x6c8] sm:$0xff]  ;;  %v8455_v60 = vpack.c.bf16 %v2784_v43, %v2783_v42  ;;  %v2517_v42 = vadd.f32 %v10033_v26, %v10307_v31 }
 0x9b0   :  { %8410 = vmatprep.subr.bf16.mxu1 %v8409_v50  ;;  %8442 = vmatprep.subr.bf16.mxu0 %v8441_v51  ;;  %v2799_v50 = vld [vmem:[%s11966_s8 + $0x7c0] sm:$0xff]  ;;  %v2800_v51 = vld [vmem:[%s11966_s8 + $0x7c8] sm:$0xff]  ;;  %v8421_v1 = vpack.c.bf16 %v2768_v57, %v2767_v47  ;;  %v1876_v47 = vrot.slane %v10053_v35, %v9990_v62 }
 0x9b1   :  { %3181 = vmatmul.mubr.f32.gmra.mrb[44].mxu1 %v2543_v59  ;;  %3256 = vmatmul.mubr.f32.gmra.mrb[44].mxu0 %v2545_v33  ;;  %v8453_v14 = vpack.c.bf16 %v2800_v51, %v2799_v50  ;;  %v8425_v59 = vpack.c.bf16 %v2770_v20, %v2769_v61  ;;  %v8457_v33 = vpack.c.bf16 %v2802_v34, %v2801_v22  ;;  %v2758_v51 = vld [vmem:[%s11966_s8 + $0x678] sm:$0xff] }
 0x9b2   :  { %3325 = vmatprep.mubr.f32.mxu1 %v2532_v53  ;;  %3400 = vmatprep.mubr.f32.mxu0 %v2534_v55  ;;  %v2803_v53 = vld [vmem:[%s11966_s8 + $0x7e0] sm:$0xff]  ;;  %v2804_v55 = vld [vmem:[%s11966_s8 + $0x7e8] sm:$0xff]  ;;  %v8465_v50 = vpack.c.bf16 %v2806_v18, %v2805_v16  ;;  %v8435_v58 = vpack.c.bf16 %v2758_v51, %v2757_v9  ;;  %v2515_v22 = vadd.f32 %v10018_v13, %v1876_v47 }
 0x9b3   :  { %8412 = vmatpush3.bf16.msra.mxu1 %v8411_v39  ;;  %8444 = vmatpush3.bf16.msra.mxu0 %v8443_v40  ;;  %v2785_v39 = vld [vmem:[%s11966_s8 + $0x750] sm:$0xff]  ;;  %v2786_v40 = vld [vmem:[%s11966_s8 + $0x758] sm:$0xff]  ;;  %v8461_v11 = vpack.c.bf16 %v2804_v55, %v2803_v53 }
 0x9b4   :  { %8414 = vmatprep.subr.bf16.mxu1 %v8413_v21  ;;  %8446 = vmatprep.subr.bf16.mxu0 %v8445_v3  ;;  %v8427_v21 = vpack.c.bf16 %v2754_v56, %v2753_v63  ;;  %v8459_v3 = vpack.c.bf16 %v2786_v40, %v2785_v39 }
 0x9b7   :  { %8416 = vmatpush3.bf16.msra.mxu1 %v8415_v38  ;;  %8448 = vmatpush3.bf16.msra.mxu0 %v8447_v15  ;;  %v2773_v38 = vld [vmem:[%s11966_s8 + $0x6f0] sm:$0xff]  ;;  %v2774_v15 = vld [vmem:[%s11966_s8 + $0x6f8] sm:$0xff] }
 0x9b8   :  { %8418 = vmatprep.subr.bf16.mxu1 %v8417_v19  ;;  %8450 = vmatprep.subr.bf16.mxu0 %v8449_v27  ;;  %v1868_v19 = vrot.slane %v10053_v35, %v9294_v2  ;;  %v8431_v27 = vpack.c.bf16 %v2756_v10, %v2755_v4  ;;  %v8433_v57 = vpack.c.bf16 %v2774_v15, %v2773_v38 }
 0x9ba   :  { %v2432_v28 = vadd.f32 %v9979_v45, %v1868_v19  ;;  %v2438_v20 = vadd.f32 %v10016_v37, %v1868_v19  ;;  %v10489_v37 = vld [vmem:[%s11960_s2] sm:$0xff] }
 0x9bb   :  { %8420 = vmatpush3.bf16.msra.mxu1 %v8419_v32  ;;  %8452 = vmatpush3.bf16.msra.mxu0 %v8451_v17  ;;  %v2789_v32 = vld [vmem:[%s11966_s8 + $0x770] sm:$0xff]  ;;  %v2790_v17 = vld [vmem:[%s11966_s8 + $0x778] sm:$0xff]  ;;  %v2810_v13 = vrot.slane %v10489_v37, %v9798_v25 }
 0x9bc   :  { %8422 = vmatprep.subr.bf16.mxu1 %v8421_v1  ;;  %8454 = vmatprep.subr.bf16.mxu0 %v8453_v14  ;;  %v8467_v35 = vpack.c.bf16 %v2790_v17, %v2789_v32  ;;  %v2509_v1 = vadd.f32 %v9981_v46, %v1876_v47  ;;  %v2440_v14 = vadd.f32 %v10031_v24, %v10303_v29  ;;  %v2531_v43 = vmax.f32 %v2432_v28, 0.0 }
 0x9bd   :  { %v2550_v46 = vmax.f32 %v2517_v42, 0.0  ;;  %v2547_v24 = vmax.f32 %v2438_v20, 0.0  ;;  %v2549_v29 = vmax.f32 %v2515_v22, 0.0 }
 0x9be   :  { %v2533_v61 = vmax.f32 %v2509_v1, 0.0  ;;  %v2548_v45 = vmax.f32 %v2440_v14, 0.0 }
 0x9bf   :  { %8424 = vmatpush3.bf16.msra.mxu1 %v8423_v23  ;;  %8456 = vmatpush3.bf16.msra.mxu0 %v8455_v60 }
 0x9c0   :  { %8426 = vmatprep.subr.bf16.mxu1 %v8425_v59  ;;  %8458 = vmatprep.subr.bf16.mxu0 %v8457_v33 }
 0x9c3   :  { %8428 = vmatpush3.bf16.msra.mxu1 %v8427_v21  ;;  %8460 = vmatpush3.bf16.msra.mxu0 %v8459_v3 }
 0x9c4   :  { %8430 = vmatprep.subr.bf16.mxu1 %v8429_v30  ;;  %8462 = vmatprep.subr.bf16.mxu0 %v8461_v11 }
 0x9c7   :  { %8432 = vmatpush3.bf16.msra.mxu1 %v8431_v27  ;;  %8464 = vmatpush3.bf16.msra.mxu0 %v8463_v5 }
 0x9c8   :  { %8434 = vmatprep.subr.bf16.mxu1 %v8433_v57  ;;  %8466 = vmatprep.subr.bf16.mxu0 %v8465_v50 }
 0x9cb   :  { %8436 = vmatpush3.bf16.msra.mxu1 %v8435_v58  ;;  %8468 = vmatpush3.bf16.msra.mxu0 %v8467_v35 }
 0x9cc   :  { %8047 = vmatprep.subr.mxu0 %v8955_v52 }
 0x9ce   :  { %3326 = vmatmul.mubr.f32.vlgmr.msra.gmra.mrb[46].mxu1 %v2531_v43  ;;  %3401 = vmatmul.mubr.f32.vlgmr.msra.gmra.mrb[46].mxu0 %v2533_v61 }
 0x9cf   :  { %3330 = vmatprep.mubr.f32.mxu1 %v2548_v45  ;;  %3405 = vmatprep.mubr.f32.mxu0 %v2550_v46 }
 0x9d2   :  { %3331 = vmatmul.mubr.f32.gmra.mrb[48].mxu1 %v2547_v24  ;;  %3406 = vmatmul.mubr.f32.gmra.mrb[48].mxu0 %v2549_v29 }
 0x9d3   :  { %8049 = vmatprep.mubr.msk.f32.mxu0 %vm8956_vm5, %v8955_v52 }
 0xa3f   :  { %v7309_v26 = vpop.f32.mrb[34].mxu1  ;;  %v7347_v31 = vpop.f32.mrb[34].mxu0 }
 0xa40   :  { %v7310_v34 = vpop.f32.mrb[35].mxu1  ;;  %v7348_v23 = vpop.f32.mrb[35].mxu0 }
 0xa41   :  { %v7311_v60 = vadd.f32 %v7310_v34, %v7309_v26  ;;  %v7349_v63 = vadd.f32 %v7348_v23, %v7347_v31 }
 0xa43   :  { %v2878_v56 = vadd.f32 %v7311_v60, %v2810_v13  ;;  %v7312_v59 = vpop.f32.mrb[36].mxu1  ;;  %v7350_v33 = vpop.f32.mrb[36].mxu0 }
 0xa44   :  { %v7313_v39 = vpop.f32.mrb[37].mxu1  ;;  %v7351_v40 = vpop.f32.mrb[37].mxu0 }
 0xa45   :  { %v2953_v48 = vadd.f32 %v7349_v63, %v2878_v56  ;;  %v7314_v49 = vadd.f32 %v7313_v39, %v7312_v59  ;;  %v7352_v53 = vadd.f32 %v7351_v40, %v7350_v33 }
 0xa47   :  { %v2883_v55 = vadd.f32 %v7314_v49, %v2810_v13 }
 0xa49   :  { %v2958_v21 = vadd.f32 %v7352_v53, %v2883_v55 }
 0xa5f   :  { %v7385_v3 = vpop.f32.mrb[38].mxu1  ;;  %v7423_v4 = vpop.f32.mrb[38].mxu0 }
 0xa60   :  { %v7386_v10 = vpop.f32.mrb[39].mxu1  ;;  %v7424_v30 = vpop.f32.mrb[39].mxu0 }
 0xa61   :  { %v7387_v11 = vadd.f32 %v7386_v10, %v7385_v3  ;;  %v7425_v12 = vadd.f32 %v7424_v30, %v7423_v4 }
 0xa63   :  { %v3028_v0 = vadd.f32 %v7387_v11, %v2953_v48  ;;  %v7388_v38 = vpop.f32.mrb[40].mxu1  ;;  %v7426_v15 = vpop.f32.mrb[40].mxu0 }
 0xa64   :  { %v7389_v16 = vpop.f32.mrb[41].mxu1  ;;  %v7427_v18 = vpop.f32.mrb[41].mxu0 }
 0xa65   :  { %v3103_v19 = vadd.f32 %v7425_v12, %v3028_v0  ;;  %v7390_v27 = vadd.f32 %v7389_v16, %v7388_v38  ;;  %v7428_v5 = vadd.f32 %v7427_v18, %v7426_v15  ;;  %v6857_v15 = vld [vmem:[%s11963_s5 + $0x20] sm:$0xff]  ;;  %v6858_v16 = vld [vmem:[%s11963_s5 + $0x28] sm:$0xff]  ;;  %v6859_v18 = vld [vmem:[%s11963_s5 + $0x30] sm:$0xff] }
 0xa67   :  { %v3033_v9 = vadd.f32 %v7390_v27, %v2958_v21  ;;  %v6860_v27 = vld [vmem:[%s11963_s5 + $0x38] sm:$0xff] }
 0xa69   :  { %v3108_v47 = vadd.f32 %v7428_v5, %v3033_v9  ;;  %v8473_v5 = vpack.c.bf16 %v6860_v27, %v6859_v18 }
 0xa80   :  { %v7461_v57 = vpop.f32.mrb[42].mxu1  ;;  %v7499_v50 = vpop.f32.mrb[42].mxu0 }
 0xa81   :  { %v7462_v51 = vpop.f32.mrb[43].mxu1  ;;  %v7500_v32 = vpop.f32.mrb[43].mxu0 }
 0xa82   :  { %v7463_v17 = vadd.f32 %v7462_v51, %v7461_v57  ;;  %v7501_v58 = vadd.f32 %v7500_v32, %v7499_v50 }
 0xa84   :  { %v3178_v35 = vadd.f32 %v7463_v17, %v3103_v19  ;;  %v7464_v28 = vpop.f32.mrb[44].mxu1  ;;  %v7502_v1 = vpop.f32.mrb[44].mxu0  ;;  %v8469_v19 = vpack.c.bf16 %v6858_v16, %v6857_v15  ;;  %v8922_v16 = vld [vmem:[%s11959_s1] ss:$0 sm:$0xff] }
 0xa85   :  { %v7465_v14 = vpop.f32.mrb[45].mxu1  ;;  %v7503_v42 = vpop.f32.mrb[45].mxu0 }
 0xa86   :  { %v3253_v43 = vadd.f32 %v7501_v58, %v3178_v35  ;;  %v7466_v61 = vadd.f32 %v7465_v14, %v7464_v28  ;;  %v7504_v20 = vadd.f32 %v7503_v42, %v7502_v1  ;;  %8470 = vmatprep.subr.bf16.mxu1 %v8469_v19 }
 0xa87   :  { %8472 = vmatpush3.bf16.msra.mxu1 %v8469_v19 }
 0xa88   :  { %v3183_v22 = vadd.f32 %v7466_v61, %v3108_v47  ;;  %8474 = vmatprep.subr.bf16.mxu1 %v8473_v5 }
 0xa8a   :  { %v3258_v45 = vadd.f32 %v7504_v20, %v3183_v22  ;;  %v3436_v22 = vrot.slane %v10489_v37, %v9990_v62 }
 0xa8b   :  { %8476 = vmatpush3.bf16.msra.mxu1 %v8473_v5 }
 0xa8c   :  { %8042 = vmatprep.subr.mxu1 %v8955_v52 }
 0xaa1   :  { %v7537_v46 = vpop.f32.mrb[46].mxu1  ;;  %v7575_v24 = vpop.f32.mrb[46].mxu0 }
 0xaa2   :  { %v7538_v29 = vpop.f32.mrb[47].mxu1  ;;  %v7576_v26 = vpop.f32.mrb[47].mxu0 }
 0xaa3   :  { %v7539_v31 = vadd.f32 %v7538_v29, %v7537_v46  ;;  %v7577_v13 = vadd.f32 %v7576_v26, %v7575_v24  ;;  %v3462_v46 = vrot.slane %v10489_v37, %v9819_v44 }
 0xaa5   :  { %v3328_v34 = vadd.f32 %v7539_v31, %v3253_v43  ;;  %v7540_v23 = vpop.f32.mrb[48].mxu1  ;;  %v7578_v60 = vpop.f32.mrb[48].mxu0 }
 0xaa6   :  { %v7541_v63 = vpop.f32.mrb[49].mxu1  ;;  %v7579_v56 = vpop.f32.mrb[49].mxu0 }
 0xaa7   :  { %v3403_v59 = vadd.f32 %v7577_v13, %v3328_v34  ;;  %v7542_v33 = vadd.f32 %v7541_v63, %v7540_v23  ;;  %v7580_v39 = vadd.f32 %v7579_v56, %v7578_v60  ;;  %v6862_v60 = vld [vmem:[%s11961_s3 + $0x1] ss:$0 sm:$0xff] }
 0xaa9   :  { %v10494_v40 = vadd.f32 %v3403_v59, %v9302_v7  ;;  %v3333_v48 = vadd.f32 %v7542_v33, %v3258_v45 }
 0xaab   :  { %v3408_v49 = vadd.f32 %v7580_v39, %v3333_v48  ;;  %v3413_v53 = vsel %vm45_vm0, %v10494_v40, 0.0 }
 0xaac   :  { %3414 = vadd.xlane.f32.xlu0 %v3413_v53 }
 0xaad   :  { %v10499_v55 = vadd.f32 %v3408_v49, %v9299_v6 }
 0xaaf   :  { %v3416_v21 = vsel %vm45_vm0, %v10499_v55, 0.0 }
 0xab0   :  { %3417 = vadd.xlane.f32.xlu1 %v3416_v21 }
 0xb39   :  { %v3415_v3 = vpop.xlane.xlu0 %3414 }
 0xb3a   :  { %v3419_v4 = vmul.f32 0.03125, %v3415_v3 }
 0xb3c   :  { %v3421_v10 = vsub.f32 %v10494_v40, %v3419_v4 }
 0xb3d   :  { %v3418_v30 = vpop.xlane.xlu1 %3417 }
 0xb3e   :  { %v3420_v7 = vmul.f32 0.03125, %v3418_v30  ;;  %v3423_v11 = vmul.f32 %v3421_v10, %v3421_v10  ;;  %v3437_v45 = vmul.f32 %v3436_v22, %v3421_v10 }
 0xb40   :  { %v3422_v12 = vsub.f32 %v10499_v55, %v3420_v7  ;;  %v3425_v0 = vsel %vm45_vm0, %v3423_v11, 0.0 }
 0xb41   :  { %3426 = vadd.xlane.f32.xlu0 %v3425_v0 }
 0xb42   :  { %v3424_v38 = vmul.f32 %v3422_v12, %v3422_v12  ;;  %v3438_v26 = vmul.f32 %v3436_v22, %v3422_v12 }
 0xb44   :  { %v3428_v6 = vsel %vm45_vm0, %v3424_v38, 0.0 }
 0xb45   :  { %3429 = vadd.xlane.f32.xlu1 %v3428_v6 }
 0xbce   :  { %v3427_v9 = vpop.xlane.xlu0 %3426 }
 0xbcf   :  { %v3431_v47 = vmul.f32 0.032258064, %v3427_v9 }
 0xbd1   :  { %8865 = vrsqrt.f32 %v3431_v47  ;;  %vm3441_vm13 = vcmp.eq.f32.partialorder %v3431_v47, inf  ;;  %v3444_v17 = vand.u32 2147483648, %v3431_v47  ;;  %vm3443_vm14 = vcmp.eq.f32.partialorder %v3431_v47, 0.0 }
 0xbd2   :  { %v3430_v57 = vpop.xlane.xlu1 %3429 }
 0xbd3   :  { %v3432_v50 = vmul.f32 0.032258064, %v3430_v57 }
 0xbd5   :  { %8867 = vrsqrt.f32 %v3432_v50  ;;  %vm3448_vm15 = vcmp.eq.f32.partialorder %v3432_v50, inf  ;;  %v3451_v42 = vand.u32 2147483648, %v3432_v50  ;;  %vm3450_vm1 = vcmp.eq.f32.partialorder %v3432_v50, 0.0 }
 0xbdb   :  { %v8866_v51 = vpop.eup %8865 }
 0xbdc   :  { %v3440_v32 = vmul.f32 %v8866_v51, %v3431_v47 }
 0xbde   :  { %v3442_v58 = vsel %vm3441_vm13, %v3431_v47, %v3440_v32  ;;  %v8923_v47 = vld [vmem:[%s11959_s1 + $0x1] ss:$0 sm:$0xff] }
 0xbdf   :  { %v8868_v35 = vpop.eup %8867  ;;  %v3445_v28 = vsel %vm3443_vm14, %v3444_v17, %v3442_v58 }
 0xbe0   :  { %v3447_v1 = vmul.f32 %v8868_v35, %v3432_v50  ;;  %v3453_v14 = vadd.f32 1e-06, %v3445_v28 }
 0xbe2   :  { %v3449_v43 = vsel %vm3448_vm15, %v3432_v50, %v3447_v1  ;;  %8869 = vrcp.f32 %v3453_v14  ;;  %v8924_v1 = vld [vmem:[%s11959_s1 + $0x3] ss:$0 sm:$0xff] }
 0xbe3   :  { %v3452_v61 = vsel %vm3450_vm1, %v3451_v42, %v3449_v43 }
 0xbe4   :  { %v3454_v20 = vadd.f32 1e-06, %v3452_v61  ;;  %v8925_v61 = vld [vmem:[%s11959_s1 + $0x2] ss:$0 sm:$0xff] }
 0xbe6   :  { %8871 = vrcp.f32 %v3454_v20 }
 0xbec   :  { %v8870_v24 = vpop.eup %8869 }
 0xbed   :  { %v3456_v29 = vmul.f32 %v8870_v24, %v3437_v45 }
 0xbef   :  { %v3463_v31 = vadd.f32 %v3462_v46, %v3456_v29 }
 0xbf0   :  { %v8872_v13 = vpop.eup %8871 }
 0xbf1   :  { %v3458_v34 = vmul.f32 %v8872_v13, %v3438_v26  ;;  %8039 = vmatprep.mubr.msk.f32.mxu1 %vm45_vm0, %v3463_v31  ;;  %v8926_v13 = vld [vmem:[%s11959_s1 + $0x4] ss:$0 sm:$0xff] }
 0xbf3   :  { %v3464_v23 = vadd.f32 %v3462_v46, %v3458_v34 }
 0xbf5   :  { %8040 = vmatmul.mubr.msk.f32.vlgmr.msra.gmra.mrb[50].mxu1 %vm45_vm0, %v3464_v23 }
 0xbf6   :  { %8044 = vmatprep.mubr.msk.f32.mxu1 %vm8956_vm5, %v8955_v52 }
 0xcc8   :  { %v8041_v63 = vpop.f32.mrb[50].mxu1 }
 0xcc9   :  { %v10531_v37 = vadd.f32 %v8041_v63, %v6862_v60  ;;  %v3550_v56 = vpop.f32.mrb[51].mxu1  ;;  %v8927_v63 = vld [vmem:[%s11959_s1 + $0x5] ss:$0 sm:$0xff] }
 0xcca   :  { %v10533_v59 = vadd.f32 %v6862_v60, %v3550_v56 }
 0xccb   :  { %3563 = vrot.lane.b32.xlu1 %v10531_v37, %s8957_s24 }
 0xccc   :  { %3561 = vrot.lane.b32.xlu0 %v10533_v59, %s8957_s24 }
 0xccf   :  { %3565 = vrot.lane.b32.xlu1 %v10533_v59, %s8958_s25 }
 0xcd0   :  { %3569 = vrot.lane.b32.xlu0 %v10533_v59, %s8959_s26 }
 0xcd3   :  { %3567 = vrot.lane.b32.xlu1 %v10531_v37, %s8958_s25 }
 0xcd4   :  { %3573 = vrot.lane.b32.xlu0 %v10533_v59, %s8960_s27 }
 0xcd7   :  { %3571 = vrot.lane.b32.xlu1 %v10531_v37, %s8959_s26 }
 0xcdb   :  { %3649 = vrot.lane.b32.xlu1 %v10531_v37, %s8960_s27 }
 0xd3d   :  { %v10551_v33 = vpop.permute.xlu1 %3563 }
 0xd3e   :  { %3801 = vrot.lane.b32.xlu1 %v10551_v33, %s8960_s27  ;;  %v10555_v39 = vpop.permute.xlu0 %3561 }
 0xd3f   :  { %3725 = vrot.lane.b32.xlu0 %v10555_v39, %s8960_s27 }
 0xd41   :  { %v10559_v48 = vpop.permute.xlu1 %3565 }
 0xd42   :  { %v10561_v49 = vpop.permute.xlu0 %3569 }
 0xd43   :  { %3877 = vrot.lane.b32.xlu0 %v10559_v48, %s8960_s27 }
 0xd45   :  { %v10565_v53 = vpop.permute.xlu1 %3567 }
 0xd46   :  { %3953 = vrot.lane.b32.xlu1 %v10565_v53, %s8960_s27  ;;  %v3574_v21 = vpop.permute.xlu0 %3573 }
 0xd47   :  { %4029 = vrot.lane.b32.xlu0 %v10561_v49, %s8960_s27  ;;  %8043 = vmatpush3.xpose.msk.msra.mxu1 %vm207_vm6, %v3574_v21 }
 0xd48   :  { %8052 = vmatprep.subr.mxu1 %v8955_v52 }
 0xd49   :  { %v10573_v3 = vpop.permute.xlu1 %3571 }
 0xd4a   :  { %4105 = vrot.lane.b32.xlu1 %v10573_v3, %s8960_s27  ;;  %8045 = vmatmul.mubr.msk.f32.vlgmr.msra.gmra.mrb[52].mxu1 %vm207_vm6, %v10533_v59 }
 0xd4b   :  { %8054 = vmatprep.mubr.msk.f32.mxu1 %vm8956_vm5, %v8955_v52 }
 0xd4d   :  { %v3650_v4 = vpop.permute.xlu1 %3649 }
 0xd4e   :  { %8048 = vmatpush3.xpose.msk.msra.mxu0 %vm207_vm6, %v3650_v4 }
 0xd4f   :  { %8057 = vmatprep.subr.mxu0 %v8955_v52 }
 0xd51   :  { %8050 = vmatmul.mubr.msk.f32.vlgmr.msra.gmra.mrb[50].mxu0 %vm207_vm6, %v10531_v37 }
 0xd52   :  { %8059 = vmatprep.mubr.msk.f32.mxu0 %vm8956_vm5, %v8955_v52 }
 0xdb0   :  { %v3802_v10 = vpop.permute.xlu1 %3801 }
 0xdb1   :  { %8058 = vmatpush3.xpose.msk.msra.mxu0 %vm207_vm6, %v3802_v10  ;;  %v3726_v30 = vpop.permute.xlu0 %3725 }
 0xdb2   :  { %8053 = vmatpush3.xpose.msk.msra.mxu1 %vm207_vm6, %v3726_v30  ;;  %8067 = vmatprep.subr.mxu0 %v8955_v52 }
 0xdb3   :  { %8062 = vmatprep.subr.mxu1 %v8955_v52 }
 0xdb4   :  { %8060 = vmatmul.mubr.msk.f32.vlgmr.msra.gmra.mrb[52].mxu0 %vm207_vm6, %v10551_v33 }
 0xdb5   :  { %8055 = vmatmul.mubr.msk.f32.vlgmr.msra.gmra.mrb[54].mxu1 %vm207_vm6, %v10555_v39  ;;  %v3878_v7 = vpop.permute.xlu0 %3877  ;;  %8069 = vmatprep.mubr.msk.f32.mxu0 %vm8956_vm5, %v8955_v52 }
 0xdb6   :  { %8063 = vmatpush3.xpose.msk.msra.mxu1 %vm207_vm6, %v3878_v7  ;;  %8064 = vmatprep.mubr.msk.f32.mxu1 %vm8956_vm5, %v8955_v52 }
 0xdb7   :  { %8072 = vmatprep.subr.mxu1 %v8955_v52 }
 0xdb8   :  { %v3954_v11 = vpop.permute.xlu1 %3953 }
 0xdb9   :  { %8065 = vmatmul.mubr.msk.f32.vlgmr.msra.gmra.mrb[56].mxu1 %vm207_vm6, %v10559_v48  ;;  %8068 = vmatpush3.xpose.msk.msra.mxu0 %vm207_vm6, %v3954_v11  ;;  %v4030_v12 = vpop.permute.xlu0 %4029  ;;  %v8928_v11 = vld [vmem:[%s11959_s1 + $0x6] ss:$0 sm:$0xff] }
 0xdba   :  { %8073 = vmatpush3.xpose.msk.msra.mxu1 %vm207_vm6, %v4030_v12  ;;  %8077 = vmatprep.subr.mxu0 %v8955_v52 }
 0xdbb   :  { %8074 = vmatprep.mubr.msk.f32.mxu1 %vm8956_vm5, %v8955_v52  ;;  %8082 = vmatprep.subr.mxu1 %v8955_v52 }
 0xdbc   :  { %8070 = vmatmul.mubr.msk.f32.vlgmr.msra.gmra.mrb[54].mxu0 %vm207_vm6, %v10565_v53  ;;  %v4106_v0 = vpop.permute.xlu1 %4105 }
 0xdbd   :  { %8075 = vmatmul.mubr.msk.f32.vlgmr.msra.gmra.mrb[58].mxu1 %vm207_vm6, %v10561_v49  ;;  %8078 = vmatpush3.xpose.msk.msra.mxu0 %vm207_vm6, %v4106_v0  ;;  %v8929_v0 = vld [vmem:[%s11959_s1 + $0x7] ss:$0 sm:$0xff] }
 0xdbe   :  { %8079 = vmatprep.mubr.msk.f32.mxu0 %vm8956_vm5, %v8955_v52  ;;  %8087 = vmatprep.subr.mxu0 %v8955_v52 }
 0xdbf   :  { %8084 = vmatprep.mubr.msk.f32.mxu1 %vm8956_vm5, %v8955_v52 }
 0xdc0   :  { %8080 = vmatmul.mubr.msk.f32.vlgmr.msra.gmra.mrb[56].mxu0 %vm207_vm6, %v10573_v3 }
 0xdc1   :  { %8089 = vmatprep.mubr.msk.f32.mxu0 %vm8956_vm5, %v8955_v52 }
 0xe1d   :  { %v3645_v38 = vpop.f32.mrb[52].mxu1 }
 0xe1e   :  { %v4181_v6 = vmul.f32 0.35355338, %v3645_v38  ;;  %v8046_v15 = vpop.f32.mrb[53].mxu1 }
 0xe20   :  { %v4189_v18 = vadd.f32 %v8922_v16, %v4181_v6 }
 0xe22   :  { %v4197_v19 = vsel %vm207_vm6, %v4189_v18, -inf }
 0xe23   :  { %4198 = vmax.xlane.f32.xlu0 %v4197_v19 }
 0xe24   :  { %v3721_v27 = vpop.f32.mrb[50].mxu0 }
 0xe25   :  { %v4182_v5 = vmul.f32 0.35355338, %v3721_v27  ;;  %v8051_v9 = vpop.f32.mrb[51].mxu0 }
 0xe27   :  { %v4190_v57 = vadd.f32 %v8923_v47, %v4182_v5 }
 0xe29   :  { %v4200_v50 = vsel %vm207_vm6, %v4190_v57, -inf }
 0xe2a   :  { %4201 = vmax.xlane.f32.xlu1 %v4200_v50 }
 0xe87   :  { %v3873_v51 = vpop.f32.mrb[52].mxu0 }
 0xe88   :  { %v4184_v32 = vmul.f32 0.35355338, %v3873_v51  ;;  %v3797_v17 = vpop.f32.mrb[54].mxu1  ;;  %v8061_v58 = vpop.f32.mrb[53].mxu0 }
 0xe89   :  { %v4183_v35 = vmul.f32 0.35355338, %v3797_v17  ;;  %v8056_v28 = vpop.f32.mrb[55].mxu1 }
 0xe8a   :  { %v4192_v14 = vadd.f32 %v8924_v1, %v4184_v32 }
 0xe8b   :  { %v4191_v20 = vadd.f32 %v8925_v61, %v4183_v35 }
 0xe8c   :  { %v3949_v42 = vpop.f32.mrb[56].mxu1  ;;  %v4206_v43 = vsel %vm207_vm6, %v4192_v14, -inf }
 0xe8d   :  { %v4185_v22 = vmul.f32 0.35355338, %v3949_v42  ;;  %4207 = vmax.xlane.f32.xlu0 %v4206_v43  ;;  %v8066_v45 = vpop.f32.mrb[57].mxu1  ;;  %v4203_v31 = vsel %vm207_vm6, %v4191_v20, -inf }
 0xe8f   :  { %v4025_v46 = vpop.f32.mrb[54].mxu0  ;;  %v4193_v34 = vadd.f32 %v8926_v13, %v4185_v22 }
 0xe90   :  { %v4186_v24 = vmul.f32 0.35355338, %v4025_v46  ;;  %v8071_v29 = vpop.f32.mrb[55].mxu0  ;;  %v4101_v26 = vpop.f32.mrb[58].mxu1 }
 0xe91   :  { %v4187_v23 = vmul.f32 0.35355338, %v4101_v26  ;;  %4204 = vmax.xlane.f32.xlu0 %v4203_v31  ;;  %v8076_v60 = vpop.f32.mrb[59].mxu1  ;;  %v4209_v7 = vsel %vm207_vm6, %v4193_v34, -inf }
 0xe92   :  { %v4194_v56 = vadd.f32 %v8927_v63, %v4186_v24 }
 0xe93   :  { %v4177_v21 = vpop.f32.mrb[56].mxu0  ;;  %v4195_v12 = vadd.f32 %v8928_v11, %v4187_v23 }
 0xe94   :  { %v4188_v4 = vmul.f32 0.35355338, %v4177_v21  ;;  %v8081_v10 = vpop.f32.mrb[57].mxu0  ;;  %v4212_v30 = vsel %vm207_vm6, %v4194_v56, -inf }
 0xe95   :  { %4213 = vmax.xlane.f32.xlu1 %v4212_v30  ;;  %4210 = vmax.xlane.f32.xlu0 %v4209_v7  ;;  %v4215_v15 = vsel %vm207_vm6, %v4195_v12, -inf }
 0xe96   :  { %v4196_v38 = vadd.f32 %v8929_v0, %v4188_v4 }
 0xe98   :  { %v4218_v6 = vsel %vm207_vm6, %v4196_v38, -inf }
 0xe99   :  { %4219 = vmax.xlane.f32.xlu1 %v4218_v6  ;;  %4216 = vmax.xlane.f32.xlu0 %v4215_v15 }
 0xeaa   :  { %4361 = vrot.lane.b32.xlu1 %v10531_v37, %s8961_s22 }
 0xeae   :  { %4437 = vrot.lane.b32.xlu1 %v10555_v39, %s8961_s22 }
 0xeaf   :  { %4285 = vrot.lane.b32.xlu0 %v10533_v59, %s8961_s22 }
 0xeb0   :  { %v4199_v16 = vpop.xlane.xlu0 %4198 }
 0xeb1   :  { %v4221_v19 = vsub.f32 %v4189_v18, %v4199_v16 }
 0xeb2   :  { %4513 = vrot.lane.b32.xlu1 %v10551_v33, %s8961_s22 }
 0xeb3   :  { %4589 = vrot.lane.b32.xlu0 %v10559_v48, %s8961_s22  ;;  %v4229_v27 = vmul.f32 1.442695, %v4221_v19 }
 0xeb5   :  { %8873 = vpow2.f32 %v4229_v27 }
 0xeb6   :  { %4665 = vrot.lane.b32.xlu1 %v10565_v53, %s8961_s22 }
 0xeb7   :  { %v4202_v5 = vpop.xlane.xlu1 %4201 }
 0xeb8   :  { %v4222_v37 = vsub.f32 %v4190_v57, %v4202_v5 }
 0xeba   :  { %v4231_v9 = vmul.f32 1.442695, %v4222_v37 }
 0xebc   :  { %8875 = vpow2.f32 %v4231_v9 }
 0xebf   :  { %v10667_v39 = vpop.eup %8873 }
 0xec0   :  { %v4245_v59 = vsel %vm207_vm6, %v10667_v39, 0.0 }
 0xec6   :  { %v10671_v33 = vpop.eup %8875 }
 0xec7   :  { %v4248_v48 = vsel %vm207_vm6, %v10671_v33, 0.0 }
 0xed2   :  { %4246 = vadd.xlane.f32.xlu0 %v4245_v59 }
 0xeda   :  { %4249 = vadd.xlane.f32.xlu1 %v4248_v48 }
 0xf1a   :  { %v4208_v53 = vpop.xlane.xlu0 %4207 }
 0xf1b   :  { %v4224_v18 = vsub.f32 %v4192_v14, %v4208_v53 }
 0xf1d   :  { %v4235_v47 = vmul.f32 1.442695, %v4224_v18 }
 0xf1e   :  { %v4205_v50 = vpop.xlane.xlu0 %4204 }
 0xf1f   :  { %8877 = vpow2.f32 %v4235_v47  ;;  %v4223_v57 = vsub.f32 %v4191_v20, %v4205_v50 }
 0xf21   :  { %v4233_v51 = vmul.f32 1.442695, %v4223_v57 }
 0xf22   :  { %v4214_v32 = vpop.xlane.xlu1 %4213  ;;  %v4211_v17 = vpop.xlane.xlu0 %4210 }
 0xf23   :  { %8879 = vpow2.f32 %v4233_v51  ;;  %v4226_v58 = vsub.f32 %v4194_v56, %v4214_v32  ;;  %v4225_v35 = vsub.f32 %v4193_v34, %v4211_v17 }
 0xf25   :  { %v4239_v28 = vmul.f32 1.442695, %v4226_v58  ;;  %v4237_v1 = vmul.f32 1.442695, %v4225_v35 }
 0xf26   :  { %v4220_v42 = vpop.xlane.xlu1 %4219  ;;  %v4217_v43 = vpop.xlane.xlu0 %4216 }
 0xf27   :  { %8881 = vpow2.f32 %v4239_v28  ;;  %v4228_v61 = vsub.f32 %v4196_v38, %v4220_v42  ;;  %v4227_v22 = vsub.f32 %v4195_v12, %v4217_v43  ;;  %v6889_v43 = vld [vmem:[%s11964_s6 + $0x20] sm:$0xff] }
 0xf28   :  { %8883 = vpow2.f32 %v4237_v1 }
 0xf29   :  { %v8878_v45 = vpop.eup %8877  ;;  %v4243_v14 = vmul.f32 1.442695, %v4228_v61  ;;  %v4241_v46 = vmul.f32 1.442695, %v4227_v22  ;;  %v6890_v61 = vld [vmem:[%s11964_s6 + $0x28] sm:$0xff] }
 0xf2a   :  { %v4362_v24 = vpop.permute.xlu1 %4361  ;;  %v4286_v29 = vpop.permute.xlu0 %4285  ;;  %v4254_v20 = vsel %vm207_vm6, %v8878_v45, 0.0  ;;  %v8477_v22 = vpack.c.bf16 %v6890_v61, %v6889_v43  ;;  %v6895_v43 = vld [vmem:[%s11965_s7 + $0x200] sm:$0xff] }
 0xf2b   :  { %8885 = vpow2.f32 %v4243_v14  ;;  %8088 = vmatpush3.msra.mxu0 %v4362_v24  ;;  %4255 = vadd.xlane.f32.xlu1 %v4254_v20  ;;  %v6892_v14 = vld [vmem:[%s11964_s6 + $0x38] sm:$0xff]  ;;  %v6911_v61 = vld [vmem:[%s11965_s7 + $0x280] sm:$0xff] }
 0xf2c   :  { %8887 = vpow2.f32 %v4241_v46  ;;  %8083 = vmatpush3.msra.mxu1 %v4286_v29  ;;  %8097 = vmatprep.subr.mxu0 %v8955_v52 }
 0xf2d   :  { %v8880_v26 = vpop.eup %8879  ;;  %8092 = vmatprep.subr.mxu1 %v8955_v52 }
 0xf2e   :  { %v4251_v31 = vsel %vm207_vm6, %v8880_v26, 0.0  ;;  %v4438_v10 = vpop.permute.xlu1 %4437  ;;  %v4590_v30 = vpop.permute.xlu0 %4589 }
 0xf2f   :  { %4252 = vadd.xlane.f32.xlu0 %v4251_v31 }
 0xf31   :  { %v8882_v13 = vpop.eup %8881 }
 0xf32   :  { %v8884_v34 = vpop.eup %8883  ;;  %v4260_v23 = vsel %vm207_vm6, %v8882_v13, 0.0  ;;  %v4514_v7 = vpop.permute.xlu1 %4513 }
 0xf33   :  { %4261 = vadd.xlane.f32.xlu1 %v4260_v23  ;;  %v4257_v60 = vsel %vm207_vm6, %v8884_v34, 0.0 }
 0xf34   :  { %4258 = vadd.xlane.f32.xlu0 %v4257_v60 }
 0xf35   :  { %v10681_v63 = vpop.eup %8885 }
 0xf36   :  { %v10683_v56 = vpop.eup %8887  ;;  %v4266_v21 = vsel %vm207_vm6, %v10681_v63, 0.0  ;;  %v4666_v12 = vpop.permute.xlu1 %4665 }
 0xf37   :  { %4267 = vadd.xlane.f32.xlu1 %v4266_v21  ;;  %v4263_v4 = vsel %vm207_vm6, %v10683_v56, 0.0 }
 0xf38   :  { %4264 = vadd.xlane.f32.xlu0 %v4263_v4 }
 0xf48   :  { %4817 = vrot.lane.b32.xlu1 %v10573_v3, %s8961_s22 }
 0xf4e   :  { %4741 = vrot.lane.b32.xlu0 %v10561_v49, %s8961_s22 }
 0xf5f   :  { %v4247_v11 = vpop.xlane.xlu0 %4246 }
 0xf60   :  { %8889 = vrcp.f32 %v4247_v11 }
 0xf67   :  { %v4250_v0 = vpop.xlane.xlu1 %4249 }
 0xf68   :  { %8891 = vrcp.f32 %v4250_v0 }
 0xf6a   :  { %v8890_v38 = vpop.eup %8889 }
 0xf6b   :  { %v4277_v6 = vmul.f32 %v8890_v38, %v10667_v39 }
 0xf6d   :  { %8085 = vmatmul.mubr.msk.f32.vlgmr.msra.gmra.mrb[60].mxu1 %vm207_vm6, %v4277_v6 }
 0xf6e   :  { %8093 = vmatpush3.msra.mxu1 %v4438_v10  ;;  %8094 = vmatprep.mubr.msk.f32.mxu1 %vm8956_vm5, %v8955_v52 }
 0xf6f   :  { %8102 = vmatprep.subr.mxu1 %v8955_v52 }
 0xf72   :  { %v8892_v49 = vpop.eup %8891 }
 0xf73   :  { %v4278_v3 = vmul.f32 %v8892_v49, %v10671_v33 }
 0xf75   :  { %8090 = vmatmul.mubr.msk.f32.vlgmr.msra.gmra.mrb[58].mxu0 %vm207_vm6, %v4278_v3 }
 0xf76   :  { %8098 = vmatpush3.msra.mxu0 %v4514_v7  ;;  %8099 = vmatprep.mubr.msk.f32.mxu0 %vm8956_vm5, %v8955_v52 }
 0xf77   :  { %8107 = vmatprep.subr.mxu0 %v8955_v52 }
 0xfb8   :  { %v4256_v15 = vpop.xlane.xlu1 %4255 }
 0xfb9   :  { %8893 = vrcp.f32 %v4256_v15 }
 0xfbc   :  { %v4253_v16 = vpop.xlane.xlu0 %4252 }
 0xfbd   :  { %8895 = vrcp.f32 %v4253_v16  ;;  %v10752_v16 = vld [vmem:[%s11960_s2 + $0x8] sm:$0x3f] }
 0xfc0   :  { %v4262_v19 = vpop.xlane.xlu1 %4261 }
 0xfc1   :  { %8897 = vrcp.f32 %v4262_v19  ;;  %v4259_v27 = vpop.xlane.xlu0 %4258  ;;  %v4931_v19 = vrot.slane %v10752_v16, %v9381_v8 }
 0xfc2   :  { %8899 = vrcp.f32 %v4259_v27 }
 0xfc3   :  { %v8894_v5 = vpop.eup %8893 }
 0xfc4   :  { %v4280_v37 = vmul.f32 %v8894_v5, %v8878_v45  ;;  %v4268_v9 = vpop.xlane.xlu1 %4267  ;;  %v6891_v45 = vld [vmem:[%s11964_s6 + $0x30] sm:$0xff] }
 0xfc5   :  { %8901 = vrcp.f32 %v4268_v9  ;;  %v4265_v39 = vpop.xlane.xlu0 %4264  ;;  %v8481_v46 = vpack.c.bf16 %v6892_v14, %v6891_v45  ;;  %v8487_v45 = vpack.c.bf16 %v6911_v61, %v6895_v43  ;;  %v6897_v14 = vld [vmem:[%s11965_s7 + $0x210] sm:$0xff]  ;;  %v6934_v43 = vld [vmem:[%s11965_s7 + $0x338] sm:$0xff] }
 0xfc6   :  { %8903 = vrcp.f32 %v4265_v39  ;;  %8100 = vmatmul.mubr.msk.f32.vlgmr.msra.gmra.mrb[60].mxu0 %vm207_vm6, %v4280_v37  ;;  %v6950_v61 = vld [vmem:[%s11965_s7 + $0x3b8] sm:$0xff] }
 0xfc7   :  { %v8896_v59 = vpop.eup %8895  ;;  %8108 = vmatpush3.msra.mxu0 %v4666_v12  ;;  %8109 = vmatprep.mubr.msk.f32.mxu0 %vm8956_vm5, %v8955_v52 }
 0xfc8   :  { %v4279_v33 = vmul.f32 %v8896_v59, %v8880_v26  ;;  %8117 = vmatprep.subr.mxu0 %v8955_v52  ;;  %v4818_v50 = vpop.permute.xlu1 %4817 }
 0xfc9   :  { %v4742_v51 = vpop.permute.xlu0 %4741 }
 0xfca   :  { %8095 = vmatmul.mubr.msk.f32.vlgmr.msra.gmra.mrb[62].mxu1 %vm207_vm6, %v4279_v33 }
 0xfcb   :  { %v8898_v48 = vpop.eup %8897  ;;  %8103 = vmatpush3.msra.mxu1 %v4590_v30  ;;  %8104 = vmatprep.mubr.msk.f32.mxu1 %vm8956_vm5, %v8955_v52 }
 0xfcc   :  { %v8900_v53 = vpop.eup %8899  ;;  %v4282_v18 = vmul.f32 %v8898_v48, %v8882_v13  ;;  %8112 = vmatprep.subr.mxu1 %v8955_v52 }
 0xfcd   :  { %v4281_v47 = vmul.f32 %v8900_v53, %v8884_v34 }
 0xfce   :  { %8110 = vmatmul.mubr.msk.f32.vlgmr.msra.gmra.mrb[62].mxu0 %vm207_vm6, %v4282_v18 }
 0xfcf   :  { %v8902_v57 = vpop.eup %8901  ;;  %8105 = vmatmul.mubr.msk.f32.vlgmr.msra.gmra.mrb[64].mxu1 %vm207_vm6, %v4281_v47  ;;  %8118 = vmatpush3.msra.mxu0 %v4818_v50 }
 0xfd0   :  { %v8904_v32 = vpop.eup %8903  ;;  %v4284_v17 = vmul.f32 %v8902_v57, %v10681_v63  ;;  %8113 = vmatpush3.msra.mxu1 %v4742_v51  ;;  %8114 = vmatprep.mubr.msk.f32.mxu1 %vm8956_vm5, %v8955_v52 }
 0xfd1   :  { %v4283_v58 = vmul.f32 %v8904_v32, %v10683_v56  ;;  %8119 = vmatprep.mubr.msk.f32.mxu0 %vm8956_vm5, %v8955_v52  ;;  %8478 = vmatprep.subr.bf16.mxu1 %v8477_v22 }
 0xfd2   :  { %8120 = vmatmul.mubr.msk.f32.vlgmr.msra.gmra.mrb[64].mxu0 %vm207_vm6, %v4284_v17 }
 0xfd3   :  { %8115 = vmatmul.mubr.msk.f32.vlgmr.msra.gmra.mrb[66].mxu1 %vm207_vm6, %v4283_v58  ;;  %5287 = vmatprep.mubr.f32.mxu0 %v8955_v52  ;;  %v6896_v58 = vld [vmem:[%s11965_s7 + $0x208] sm:$0xff] }
 0xfd4   :  { %8480 = vmatpush3.bf16.msra.mxu1 %v8477_v22 }
 0xfd5   :  { %8482 = vmatprep.subr.bf16.mxu1 %v8481_v46 }
 0xfd8   :  { %8484 = vmatpush3.bf16.msra.mxu1 %v8481_v46  ;;  %v6913_v46 = vld [vmem:[%s11965_s7 + $0x290] sm:$0xff] }
0x1040   :  { %v4357_v35 = vpop.f32.mrb[60].mxu1 }
0x1041   :  { %v8086_v28 = vpop.f32.mrb[61].mxu1 }
0x1042   :  { %v6898_v28 = vld [vmem:[%s11965_s7 + $0x218] sm:$0xff] }
0x1048   :  { %v4433_v1 = vpop.f32.mrb[58].mxu0 }
0x1049   :  { %v8091_v42 = vpop.f32.mrb[59].mxu0 }
0x104a   :  { %v6914_v42 = vld [vmem:[%s11965_s7 + $0x298] sm:$0xff] }
0x104b   :  { %v8493_v22 = vpack.c.bf16 %v6914_v42, %v6898_v28  ;;  %v6917_v28 = vld [vmem:[%s11965_s7 + $0x2b0] sm:$0xff]  ;;  %v6932_v42 = vld [vmem:[%s11965_s7 + $0x328] sm:$0xff] }
0x104d   :  { %8494 = vmatprep.subr.bf16.mxu1 %v8493_v22 }
0x1099   :  { %v4585_v24 = vpop.f32.mrb[60].mxu0 }
0x109a   :  { %4897 = vrot.lane.b32.xlu1 %v4585_v24, %s8962_s13  ;;  %v8101_v29 = vpop.f32.mrb[61].mxu0  ;;  %v8495_v24 = vpack.c.bf16 %v6913_v46, %v6897_v14  ;;  %v6931_v14 = vld [vmem:[%s11965_s7 + $0x320] sm:$0xff] }
0x109b   :  { %v6928_v29 = vld [vmem:[%s11965_s7 + $0x308] sm:$0xff] }
0x109d   :  { %v4509_v20 = vpop.f32.mrb[62].mxu1 }
0x109e   :  { %4895 = vrot.lane.b32.xlu0 %v4509_v20, %s8962_s13  ;;  %v8096_v26 = vpop.f32.mrb[63].mxu1  ;;  %v6944_v20 = vld [vmem:[%s11965_s7 + $0x388] sm:$0xff] }
0x109f   :  { %v6930_v26 = vld [vmem:[%s11965_s7 + $0x318] sm:$0xff] }
0x10a1   :  { %v4737_v31 = vpop.f32.mrb[62].mxu0 }
0x10a2   :  { %v4661_v13 = vpop.f32.mrb[64].mxu1  ;;  %4905 = vrot.lane.b32.xlu1 %v4737_v31, %s8963_s14  ;;  %v8111_v34 = vpop.f32.mrb[63].mxu0  ;;  %v8489_v31 = vpack.c.bf16 %v6944_v20, %v6928_v29  ;;  %v6947_v29 = vld [vmem:[%s11965_s7 + $0x3a0] sm:$0xff]  ;;  %v6933_v20 = vld [vmem:[%s11965_s7 + $0x330] sm:$0xff] }
0x10a3   :  { %4903 = vrot.lane.b32.xlu0 %v4661_v13, %s8963_s14  ;;  %v8106_v23 = vpop.f32.mrb[65].mxu1  ;;  %v6946_v13 = vld [vmem:[%s11965_s7 + $0x398] sm:$0xff]  ;;  %v6927_v34 = vld [vmem:[%s11965_s7 + $0x300] sm:$0xff] }
0x10a4   :  { %v6943_v23 = vld [vmem:[%s11965_s7 + $0x380] sm:$0xff] }
0x10a5   :  { %v4889_v60 = vpop.f32.mrb[64].mxu0 }
0x10a6   :  { %v4813_v63 = vpop.f32.mrb[66].mxu1  ;;  %4913 = vrot.lane.b32.xlu1 %v4889_v60, %s8964_s15  ;;  %v8121_v56 = vpop.f32.mrb[65].mxu0  ;;  %v8497_v60 = vpack.c.bf16 %v6946_v13, %v6930_v26  ;;  %v6949_v26 = vld [vmem:[%s11965_s7 + $0x3b0] sm:$0xff] }
0x10a7   :  { %4911 = vrot.lane.b32.xlu0 %v4813_v63, %s8964_s15  ;;  %v8116_v21 = vpop.f32.mrb[67].mxu1  ;;  %v8491_v63 = vpack.c.bf16 %v6943_v23, %v6927_v34  ;;  %v6929_v56 = vld [vmem:[%s11965_s7 + $0x310] sm:$0xff]  ;;  %v8513_v34 = vpack.c.bf16 %v6950_v61, %v6934_v43  ;;  %v6942_v43 = vld [vmem:[%s11965_s7 + $0x378] sm:$0xff] }
0x10a8   :  { %v6945_v21 = vld [vmem:[%s11965_s7 + $0x390] sm:$0xff]  ;;  %v6958_v61 = vld [vmem:[%s11965_s7 + $0x3f8] sm:$0xff] }
0x110c   :  { %v4898_v4 = vpop.permute.xlu1 %4897 }
0x110d   :  { %v4918_v11 = vsel %vm207_vm6, %v4433_v1, %v4898_v4  ;;  %v8499_v4 = vpack.c.bf16 %v6945_v21, %v6929_v56  ;;  %v6922_v56 = vld [vmem:[%s11965_s7 + $0x2d8] sm:$0xff]  ;;  %v8507_v21 = vpack.c.bf16 %v6947_v29, %v6931_v14  ;;  %v6939_v14 = vld [vmem:[%s11965_s7 + $0x360] sm:$0xff]  ;;  %v6941_v29 = vld [vmem:[%s11965_s7 + $0x370] sm:$0xff] }
0x1110   :  { %v4896_v10 = vpop.permute.xlu0 %4895 }
0x1111   :  { %v4917_v12 = vsel %vm207_vm6, %v4357_v35, %v4896_v10  ;;  %v6912_v35 = vld [vmem:[%s11965_s7 + $0x288] sm:$0xff] }
0x1112   :  { %v8485_v1 = vpack.c.bf16 %v6912_v35, %v6896_v58  ;;  %v6900_v10 = vld [vmem:[%s11965_s7 + $0x228] sm:$0xff]  ;;  %v6915_v58 = vld [vmem:[%s11965_s7 + $0x2a0] sm:$0xff]  ;;  %v6901_v35 = vld [vmem:[%s11965_s7 + $0x230] sm:$0xff] }
0x1114   :  { %v4906_v30 = vpop.permute.xlu1 %4905  ;;  %8486 = vmatprep.subr.bf16.mxu0 %v8485_v1 }
0x1115   :  { %v4904_v7 = vpop.permute.xlu0 %4903  ;;  %v4920_v0 = vsel %vm1600_vm7, %v4918_v11, %v4906_v30  ;;  %8488 = vmatpush1.bf16.msra.mxu0 %v8487_v45  ;;  %v6916_v30 = vld [vmem:[%s11965_s7 + $0x2a8] sm:$0xff]  ;;  %v8511_v45 = vpack.c.bf16 %v6917_v28, %v6901_v35  ;;  %v6909_v35 = vld [vmem:[%s11965_s7 + $0x270] sm:$0xff] }
0x1116   :  { %v4919_v6 = vsel %vm1600_vm7, %v4917_v12, %v4904_v7  ;;  %8490 = vmatprep.subr.bf16.mxu0 %v8489_v31  ;;  %v6902_v7 = vld [vmem:[%s11965_s7 + $0x238] sm:$0xff]  ;;  %v8501_v11 = vpack.c.bf16 %v6916_v30, %v6900_v10  ;;  %v6903_v10 = vld [vmem:[%s11965_s7 + $0x240] sm:$0xff]  ;;  %v6925_v28 = vld [vmem:[%s11965_s7 + $0x2f0] sm:$0xff] }
0x1117   :  { %v6918_v12 = vld [vmem:[%s11965_s7 + $0x2b8] sm:$0xff] }
0x1118   :  { %v4914_v38 = vpop.permute.xlu1 %4913 }
0x1119   :  { %v4922_v49 = vsel %vm1603_vm8, %v4920_v0, %v4914_v38  ;;  %v4912_v3 = vpop.permute.xlu0 %4911  ;;  %8492 = vmatpush1.bf16.msra.mxu0 %v8491_v63  ;;  %v8509_v0 = vpack.c.bf16 %v6918_v12, %v6902_v7  ;;  %v6906_v63 = vld [vmem:[%s11965_s7 + $0x258] sm:$0xff]  ;;  %v6919_v7 = vld [vmem:[%s11965_s7 + $0x2c0] sm:$0xff]  ;;  %v6921_v12 = vld [vmem:[%s11965_s7 + $0x2d0] sm:$0xff] }
0x111a   :  { %v4921_v15 = vsel %vm1603_vm8, %v4919_v6, %v4912_v3  ;;  %8502 = vmatprep.subr.bf16.mxu0 %v8501_v11  ;;  %v6905_v11 = vld [vmem:[%s11965_s7 + $0x250] sm:$0xff] }
0x111b   :  { %8130 = vmatprep.mubr.msk.f32.mxu1 %vm45_vm0, %v4921_v15 }
0x111c   :  { %8131 = vmatmul.mubr.msk.f32.vlgmr.msra.gmra.mrb[68].mxu1 %vm45_vm0, %v4922_v49 }
0x111d   :  { %5364 = vmatprep.mubr.f32.mxu1 %v8955_v52  ;;  %8496 = vmatpush1.bf16.msra.mxu1 %v8495_v24 }
0x111e   :  { %8498 = vmatprep.subr.bf16.mxu1 %v8497_v60  ;;  %v6920_v60 = vld [vmem:[%s11965_s7 + $0x2c8] sm:$0xff] }
0x1121   :  { %8500 = vmatpush1.bf16.msra.mxu1 %v8499_v4  ;;  %v8515_v4 = vpack.c.bf16 %v6949_v26, %v6933_v20  ;;  %v6957_v20 = vld [vmem:[%s11965_s7 + $0x3f0] sm:$0xff] }
0x1122   :  { %8510 = vmatprep.subr.bf16.mxu1 %v8509_v0 }
0x11ef   :  { %v8132_v27 = vpop.f32.mrb[68].mxu1 }
0x11f0   :  { %v5010_v5 = vadd.f32 %v8132_v27, %v4931_v19  ;;  %v5004_v37 = vpop.f32.mrb[69].mxu1 }
0x11f1   :  { %v5005_v9 = vadd.f32 %v5004_v37, %v4931_v19 }
0x11f2   :  { %v10757_v39 = vadd.f32 %v5010_v5, %v10499_v55 }
0x11f3   :  { %v10760_v59 = vadd.f32 %v5005_v9, %v10494_v40 }
0x11f4   :  { %v5018_v33 = vsel %vm45_vm0, %v10757_v39, 0.0 }
0x11f5   :  { %5019 = vadd.xlane.f32.xlu1 %v5018_v33  ;;  %v5015_v48 = vsel %vm45_vm0, %v10760_v59, 0.0 }
0x11f6   :  { %5016 = vadd.xlane.f32.xlu0 %v5015_v48 }
0x1282   :  { %v5020_v53 = vpop.xlane.xlu1 %5019 }
0x1283   :  { %v5022_v18 = vmul.f32 0.03125, %v5020_v53  ;;  %v5017_v47 = vpop.xlane.xlu0 %5016 }
0x1284   :  { %v5021_v50 = vmul.f32 0.03125, %v5017_v47 }
0x1285   :  { %v10767_v57 = vsub.f32 %v10757_v39, %v5022_v18 }
0x1286   :  { %v10770_v55 = vsub.f32 %v10760_v59, %v5021_v50 }
0x1287   :  { %v5026_v32 = vmul.f32 %v10767_v57, %v10767_v57 }
0x1288   :  { %v5025_v40 = vmul.f32 %v10770_v55, %v10770_v55 }
0x1289   :  { %v5030_v17 = vsel %vm45_vm0, %v5026_v32, 0.0  ;;  %v5064_v32 = vrot.slane %v10752_v16, %v9060_v41 }
0x128a   :  { %v5027_v51 = vsel %vm45_vm0, %v5025_v40, 0.0  ;;  %v5038_v40 = vrot.slane %v10752_v16, %v9050_v36 }
0x128b   :  { %5028 = vadd.xlane.f32.xlu0 %v5027_v51  ;;  %v6899_v51 = vld [vmem:[%s11965_s7 + $0x220] sm:$0xff] }
0x128c   :  { %v8503_v22 = vpack.c.bf16 %v6915_v58, %v6899_v51  ;;  %v5040_v46 = vmul.f32 %v5038_v40, %v10767_v57  ;;  %v6904_v57 = vld [vmem:[%s11965_s7 + $0x248] sm:$0xff]  ;;  %v6923_v58 = vld [vmem:[%s11965_s7 + $0x2e0] sm:$0xff] }
0x128d   :  { %v8517_v0 = vpack.c.bf16 %v6920_v60, %v6904_v57  ;;  %v7025_v57 = vld [vmem:[%s11966_s8 + $0x980] sm:$0xff] }
0x128f   :  { %5031 = vadd.xlane.f32.xlu0 %v5030_v17  ;;  %v5039_v17 = vmul.f32 %v5038_v40, %v10770_v55  ;;  %v6948_v55 = vld [vmem:[%s11965_s7 + $0x3a8] sm:$0xff]  ;;  %v6926_v40 = vld [vmem:[%s11965_s7 + $0x2f8] sm:$0xff] }
0x1290   :  { %v8505_v13 = vpack.c.bf16 %v6948_v55, %v6932_v42  ;;  %v6956_v55 = vld [vmem:[%s11965_s7 + $0x3e8] sm:$0xff] }
0x1318   :  { %v5029_v38 = vpop.xlane.xlu0 %5028 }
0x1319   :  { %v5033_v6 = vmul.f32 0.032258064, %v5029_v38  ;;  %v8525_v38 = vpack.c.bf16 %v6922_v56, %v6906_v63  ;;  %v8547_v63 = vpack.c.bf16 %v6957_v20, %v6941_v29  ;;  %v6977_v56 = vld [vmem:[%s11966_s8 + $0x800] sm:$0xff]  ;;  %v7034_v20 = vld [vmem:[%s11966_s8 + $0x9c8] sm:$0xff] }
0x131a   :  { %v7033_v29 = vld [vmem:[%s11966_s8 + $0x9c0] sm:$0xff] }
0x131b   :  { %8905 = vrsqrt.f32 %v5033_v6  ;;  %vm5043_vm2 = vcmp.eq.f32.partialorder %v5033_v6, inf  ;;  %v5046_v27 = vand.u32 2147483648, %v5033_v6  ;;  %vm5045_vm3 = vcmp.eq.f32.partialorder %v5033_v6, 0.0 }
0x131c   :  { %v5032_v49 = vpop.xlane.xlu0 %5031 }
0x131d   :  { %v5034_v3 = vmul.f32 0.032258064, %v5032_v49  ;;  %v6952_v49 = vld [vmem:[%s11965_s7 + $0x3c8] sm:$0xff] }
0x131f   :  { %8907 = vrsqrt.f32 %v5034_v3  ;;  %vm5050_vm4 = vcmp.eq.f32.partialorder %v5034_v3, inf  ;;  %v5053_v53 = vand.u32 2147483648, %v5034_v3  ;;  %vm5052_vm5 = vcmp.eq.f32.partialorder %v5034_v3, 0.0 }
0x1325   :  { %v8906_v15 = vpop.eup %8905 }
0x1326   :  { %v5042_v19 = vmul.f32 %v8906_v15, %v5033_v6  ;;  %v6954_v15 = vld [vmem:[%s11965_s7 + $0x3d8] sm:$0xff] }
0x1328   :  { %v5044_v5 = vsel %vm5043_vm2, %v5033_v6, %v5042_v19  ;;  %v6936_v6 = vld [vmem:[%s11965_s7 + $0x348] sm:$0xff]  ;;  %v8519_v19 = vpack.c.bf16 %v6919_v7, %v6903_v10  ;;  %v7009_v7 = vld [vmem:[%s11966_s8 + $0x900] sm:$0xff] }
0x1329   :  { %v8908_v37 = vpop.eup %8907  ;;  %v5047_v9 = vsel %vm5045_vm3, %v5046_v27, %v5044_v5  ;;  %v8527_v27 = vpack.c.bf16 %v6921_v12, %v6905_v11  ;;  %v6935_v5 = vld [vmem:[%s11965_s7 + $0x340] sm:$0xff]  ;;  %v7010_v11 = vld [vmem:[%s11966_s8 + $0x908] sm:$0xff]  ;;  %v6995_v12 = vld [vmem:[%s11966_s8 + $0x890] sm:$0xff] }
0x132a   :  { %v5055_v33 = vadd.f32 1e-06, %v5047_v9  ;;  %v5049_v48 = vmul.f32 %v8908_v37, %v5034_v3  ;;  %v6951_v37 = vld [vmem:[%s11965_s7 + $0x3c0] sm:$0xff]  ;;  %v6937_v9 = vld [vmem:[%s11965_s7 + $0x350] sm:$0xff] }
0x132b   :  { %v8523_v51 = vpack.c.bf16 %v6951_v37, %v6935_v5  ;;  %v7011_v37 = vld [vmem:[%s11966_s8 + $0x910] sm:$0xff] }
0x132c   :  { %8909 = vrcp.f32 %v5055_v33  ;;  %v5051_v18 = vsel %vm5050_vm4, %v5034_v3, %v5049_v48  ;;  %v6938_v3 = vld [vmem:[%s11965_s7 + $0x358] sm:$0xff]  ;;  %v6953_v33 = vld [vmem:[%s11965_s7 + $0x3d0] sm:$0xff]  ;;  %v8521_v48 = vpack.c.bf16 %v6952_v49, %v6936_v6 }
0x132d   :  { %v5054_v47 = vsel %vm5052_vm5, %v5053_v53, %v5051_v18  ;;  %v8529_v53 = vpack.c.bf16 %v6954_v15, %v6938_v3  ;;  %v6908_v18 = vld [vmem:[%s11965_s7 + $0x268] sm:$0xff]  ;;  %v7028_v6 = vld [vmem:[%s11966_s8 + $0x998] sm:$0xff]  ;;  %v8583_v3 = vpack.c.bf16 %v7010_v11, %v7009_v7  ;;  %v6979_v15 = vld [vmem:[%s11966_s8 + $0x810] sm:$0xff] }
0x132e   :  { %v5056_v50 = vadd.f32 1e-06, %v5054_v47  ;;  %v6924_v47 = vld [vmem:[%s11965_s7 + $0x2e8] sm:$0xff] }
0x1330   :  { %8911 = vrcp.f32 %v5056_v50  ;;  %v6910_v50 = vld [vmem:[%s11965_s7 + $0x278] sm:$0xff] }
0x1331   :  { %v8541_v42 = vpack.c.bf16 %v6926_v40, %v6910_v50  ;;  %v6981_v50 = vld [vmem:[%s11966_s8 + $0x820] sm:$0xff]  ;;  %v6982_v40 = vld [vmem:[%s11966_s8 + $0x828] sm:$0xff] }
0x1336   :  { %v8910_v1 = vpop.eup %8909 }
0x1337   :  { %v5058_v16 = vmul.f32 %v8910_v1, %v5039_v17  ;;  %v6907_v17 = vld [vmem:[%s11965_s7 + $0x260] sm:$0xff]  ;;  %v8533_v1 = vpack.c.bf16 %v6924_v47, %v6908_v18  ;;  %v7030_v18 = vld [vmem:[%s11966_s8 + $0x9a8] sm:$0xff] }
0x1339   :  { %v10871_v24 = vadd.f32 %v5064_v32, %v5058_v16  ;;  %v6940_v16 = vld [vmem:[%s11965_s7 + $0x368] sm:$0xff] }
0x133a   :  { %v8912_v31 = vpop.eup %8911  ;;  %v8537_v26 = vpack.c.bf16 %v6956_v55, %v6940_v16  ;;  %v6984_v55 = vld [vmem:[%s11966_s8 + $0x838] sm:$0xff] }
0x133b   :  { %v5060_v23 = vmul.f32 %v8912_v31, %v5040_v46  ;;  %6961 = vmatmul.mubr.msk.f32.vlgmr.msra.gmra.mrb[66].mxu0 %vm45_vm0, %v10871_v24  ;;  %6963 = vmatmul.mubr.msk.f32.vlgmr.msra.gmra.mrb[70].mxu1 %vm45_vm0, %v10871_v24  ;;  %v6955_v46 = vld [vmem:[%s11965_s7 + $0x3e0] sm:$0xff]  ;;  %v8545_v31 = vpack.c.bf16 %v6958_v61, %v6942_v43 }
0x133c   :  { %8504 = vmatpush1.bf16.msra.mxu0 %v8503_v22  ;;  %8512 = vmatpush1.bf16.msra.mxu1 %v8511_v45  ;;  %v8535_v22 = vpack.c.bf16 %v6923_v58, %v6907_v17  ;;  %v8543_v45 = vpack.c.bf16 %v6925_v28, %v6909_v35  ;;  %v8539_v60 = vpack.c.bf16 %v6955_v46, %v6939_v14  ;;  %v7014_v17 = vld [vmem:[%s11966_s8 + $0x928] sm:$0xff]  ;;  %v6999_v58 = vld [vmem:[%s11966_s8 + $0x8b0] sm:$0xff]  ;;  %v7000_v35 = vld [vmem:[%s11966_s8 + $0x8b8] sm:$0xff] }
0x133d   :  { %5293 = vmatprep.mubr.f32.mxu0 %v8955_v52  ;;  %5370 = vmatprep.mubr.f32.mxu1 %v8955_v52  ;;  %v10903_v30 = vadd.f32 %v5064_v32, %v5060_v23  ;;  %v8531_v32 = vpack.c.bf16 %v6953_v33, %v6937_v9  ;;  %v7026_v23 = vld [vmem:[%s11966_s8 + $0x988] sm:$0xff]  ;;  %v7012_v9 = vld [vmem:[%s11966_s8 + $0x918] sm:$0xff]  ;;  %v6997_v33 = vld [vmem:[%s11966_s8 + $0x8a0] sm:$0xff]  ;;  %v8561_v43 = vpack.c.bf16 %v7000_v35, %v6999_v58 }
0x133e   :  { %8506 = vmatprep.subr.bf16.mxu0 %v8505_v13  ;;  %8514 = vmatprep.subr.bf16.mxu1 %v8513_v34  ;;  %v6993_v13 = vld [vmem:[%s11966_s8 + $0x880] sm:$0xff]  ;;  %v6994_v34 = vld [vmem:[%s11966_s8 + $0x888] sm:$0xff]  ;;  %v8581_v10 = vpack.c.bf16 %v7026_v23, %v7025_v57  ;;  %v7031_v28 = vld [vmem:[%s11966_s8 + $0x9b0] sm:$0xff]  ;;  %v8597_v23 = vpack.c.bf16 %v7034_v20, %v7033_v29 }
0x133f   :  { %6962 = vmatmul.mubr.msk.f32.gmra.mrb[68].mxu0 %vm45_vm0, %v10903_v30  ;;  %6964 = vmatmul.mubr.msk.f32.gmra.mrb[72].mxu1 %vm45_vm0, %v10903_v30  ;;  %v7001_v14 = vld [vmem:[%s11966_s8 + $0x8c0] sm:$0xff]  ;;  %v7002_v46 = vld [vmem:[%s11966_s8 + $0x8c8] sm:$0xff]  ;;  %v7040_v58 = vld [vmem:[%s11966_s8 + $0x9f8] sm:$0xff] }
0x1340   :  { %8508 = vmatpush1.bf16.msra.mxu0 %v8507_v21  ;;  %8516 = vmatpush1.bf16.msra.mxu1 %v8515_v4  ;;  %v6978_v21 = vld [vmem:[%s11966_s8 + $0x808] sm:$0xff]  ;;  %v8549_v4 = vpack.c.bf16 %v6994_v34, %v6993_v13  ;;  %v6985_v13 = vld [vmem:[%s11966_s8 + $0x840] sm:$0xff]  ;;  %v8565_v57 = vpack.c.bf16 %v7002_v46, %v7001_v14  ;;  %v6991_v35 = vld [vmem:[%s11966_s8 + $0x870] sm:$0xff] }
0x1341   :  { %5441 = vmatprep.mubr.f32.mxu0 %v8955_v52  ;;  %5518 = vmatprep.mubr.f32.mxu1 %v8955_v52  ;;  %v8551_v49 = vpack.c.bf16 %v6978_v21, %v6977_v56  ;;  %v6986_v34 = vld [vmem:[%s11966_s8 + $0x848] sm:$0xff]  ;;  %v7003_v56 = vld [vmem:[%s11966_s8 + $0x8d0] sm:$0xff]  ;;  %v7004_v21 = vld [vmem:[%s11966_s8 + $0x8d8] sm:$0xff] }
0x1342   :  { %8518 = vmatprep.subr.bf16.mxu0 %v8517_v0  ;;  %8526 = vmatprep.subr.bf16.mxu1 %v8525_v38  ;;  %v6996_v0 = vld [vmem:[%s11966_s8 + $0x898] sm:$0xff]  ;;  %v7027_v38 = vld [vmem:[%s11966_s8 + $0x990] sm:$0xff]  ;;  %v8567_v7 = vpack.c.bf16 %v6986_v34, %v6985_v13  ;;  %v7090_v14 = vld [vmem:[%s11966_s8 + $0xb88] sm:$0xff] }
0x1343   :  { %6965 = vmatmul.mubr.msk.f32.vlgmr.msra.gmra.mrb[70].mxu0 %vm45_vm0, %v10871_v24  ;;  %6967 = vmatmul.mubr.msk.f32.vlgmr.msra.gmra.mrb[74].mxu1 %vm45_vm0, %v10871_v24  ;;  %v8585_v5 = vpack.c.bf16 %v7028_v6, %v7027_v38  ;;  %v8569_v38 = vpack.c.bf16 %v7004_v21, %v7003_v56  ;;  %v11233_v29 = vld [vmem:[%s11962_s4 + $0x10] sm:$0xff]  ;;  %v7041_v34 = vld [vmem:[%s11966_s8 + $0xa00] sm:$0xff]  ;;  %v7074_v56 = vld [vmem:[%s11966_s8 + $0xb08] sm:$0xff] }
0x1344   :  { %8520 = vmatpush1.bf16.msra.mxu0 %v8519_v19  ;;  %8528 = vmatpush1.bf16.msra.mxu1 %v8527_v27  ;;  %v6980_v19 = vld [vmem:[%s11966_s8 + $0x818] sm:$0xff]  ;;  %v8553_v27 = vpack.c.bf16 %v6996_v0, %v6995_v12  ;;  %v6987_v12 = vld [vmem:[%s11966_s8 + $0x850] sm:$0xff]  ;;  %v5140_v20 = vrot.slane %v11233_v29, %v9050_v36  ;;  %v5152_v13 = vrot.slane %v11233_v29, %v9386_v54 }
0x1345   :  { %5447 = vmatprep.mubr.f32.mxu0 %v8955_v52  ;;  %5524 = vmatprep.mubr.f32.mxu1 %v8955_v52  ;;  %v8555_v47 = vpack.c.bf16 %v6980_v19, %v6979_v15  ;;  %v6988_v0 = vld [vmem:[%s11966_s8 + $0x858] sm:$0xff]  ;;  %v7005_v15 = vld [vmem:[%s11966_s8 + $0x8e0] sm:$0xff]  ;;  %v7006_v19 = vld [vmem:[%s11966_s8 + $0x8e8] sm:$0xff] }
0x1346   :  { %8522 = vmatprep.subr.bf16.mxu0 %v8521_v48  ;;  %8530 = vmatprep.subr.bf16.mxu1 %v8529_v53  ;;  %v6998_v48 = vld [vmem:[%s11966_s8 + $0x8a8] sm:$0xff]  ;;  %v7029_v53 = vld [vmem:[%s11966_s8 + $0x9a0] sm:$0xff]  ;;  %v7059_v21 = vld [vmem:[%s11966_s8 + $0xa90] sm:$0xff] }
0x1347   :  { %6966 = vmatmul.mubr.msk.f32.gmra.mrb[72].mxu0 %vm45_vm0, %v10903_v30  ;;  %6968 = vmatmul.mubr.msk.f32.gmra.mrb[76].mxu1 %vm45_vm0, %v10903_v30 }
0x1348   :  { %8524 = vmatpush1.bf16.msra.mxu0 %v8523_v51  ;;  %8532 = vmatpush1.bf16.msra.mxu1 %v8531_v32  ;;  %v8557_v51 = vpack.c.bf16 %v6998_v48, %v6997_v33  ;;  %v8589_v32 = vpack.c.bf16 %v7030_v18, %v7029_v53  ;;  %v6989_v33 = vld [vmem:[%s11966_s8 + $0x860] sm:$0xff]  ;;  %v8573_v48 = vpack.c.bf16 %v7006_v19, %v7005_v15  ;;  %v6990_v18 = vld [vmem:[%s11966_s8 + $0x868] sm:$0xff] }
0x1349   :  { %5595 = vmatprep.mubr.f32.mxu0 %v8955_v52  ;;  %5672 = vmatprep.mubr.f32.mxu1 %v8955_v52  ;;  %v11269_v19 = vrot.slane %v11233_v29, %v9798_v25 }
0x134a   :  { %8534 = vmatprep.subr.bf16.mxu0 %v8533_v1  ;;  %8542 = vmatprep.subr.bf16.mxu1 %v8541_v42  ;;  %v7032_v1 = vld [vmem:[%s11966_s8 + $0x9b8] sm:$0xff]  ;;  %v8559_v42 = vpack.c.bf16 %v6982_v40, %v6981_v50  ;;  %v8575_v50 = vpack.c.bf16 %v6990_v18, %v6989_v33 }
0x134b   :  { %6969 = vmatmul.mubr.msk.f32.vlgmr.msra.gmra.mrb[74].mxu0 %vm45_vm0, %v10871_v24  ;;  %6971 = vmatmul.mubr.msk.f32.vlgmr.msra.gmra.mrb[78].mxu1 %vm45_vm0, %v10871_v24  ;;  %v8593_v61 = vpack.c.bf16 %v7032_v1, %v7031_v28  ;;  %v6992_v28 = vld [vmem:[%s11966_s8 + $0x878] sm:$0xff] }
0x134c   :  { %8536 = vmatpush1.bf16.msra.mxu0 %v8535_v22  ;;  %8544 = vmatpush1.bf16.msra.mxu1 %v8543_v45  ;;  %v7015_v22 = vld [vmem:[%s11966_s8 + $0x930] sm:$0xff]  ;;  %v7016_v45 = vld [vmem:[%s11966_s8 + $0x938] sm:$0xff] }
0x134d   :  { %5601 = vmatprep.mubr.f32.mxu0 %v8955_v52  ;;  %5678 = vmatprep.mubr.f32.mxu1 %v8955_v52  ;;  %v7044_v18 = vld [vmem:[%s11966_s8 + $0xa18] sm:$0xff] }
0x134e   :  { %8538 = vmatprep.subr.bf16.mxu0 %v8537_v26  ;;  %8546 = vmatprep.subr.bf16.mxu1 %v8545_v31  ;;  %v8595_v31 = vpack.c.bf16 %v7016_v45, %v7015_v22  ;;  %v7089_v22 = vld [vmem:[%s11966_s8 + $0xb80] sm:$0xff] }
0x134f   :  { %6970 = vmatmul.mubr.msk.f32.gmra.mrb[76].mxu0 %vm45_vm0, %v10903_v30  ;;  %6972 = vmatmul.mubr.msk.f32.gmra.mrb[80].mxu1 %vm45_vm0, %v10903_v30  ;;  %v8645_v46 = vpack.c.bf16 %v7090_v14, %v7089_v22 }
0x1350   :  { %8540 = vmatpush1.bf16.msra.mxu0 %v8539_v60  ;;  %8548 = vmatpush1.bf16.msra.mxu1 %v8547_v63  ;;  %v7017_v60 = vld [vmem:[%s11966_s8 + $0x940] sm:$0xff]  ;;  %v7018_v63 = vld [vmem:[%s11966_s8 + $0x948] sm:$0xff] }
0x1351   :  { %5749 = vmatprep.mubr.f32.mxu0 %v8955_v52  ;;  %5826 = vmatprep.mubr.f32.mxu1 %v8955_v52  ;;  %v8599_v11 = vpack.c.bf16 %v7018_v63, %v7017_v60  ;;  %v7073_v63 = vld [vmem:[%s11966_s8 + $0xb00] sm:$0xff] }
0x1352   :  { %8550 = vmatprep.subr.bf16.mxu0 %v8549_v4  ;;  %8582 = vmatprep.subr.bf16.mxu1 %v8581_v10  ;;  %v7035_v4 = vld [vmem:[%s11966_s8 + $0x9d0] sm:$0xff]  ;;  %v7036_v10 = vld [vmem:[%s11966_s8 + $0x9d8] sm:$0xff]  ;;  %v8647_v15 = vpack.c.bf16 %v7074_v56, %v7073_v63  ;;  %v7078_v63 = vld [vmem:[%s11966_s8 + $0xb28] sm:$0xff] }
0x1353   :  { %6973 = vmatmul.mubr.msk.f32.vlgmr.msra.gmra.mrb[78].mxu0 %vm45_vm0, %v10871_v24  ;;  %6975 = vmatmul.mubr.msk.f32.vlgmr.msra.gmra.mrb[82].mxu1 %vm45_vm0, %v10871_v24  ;;  %v8587_v24 = vpack.c.bf16 %v7012_v9, %v7011_v37  ;;  %v8601_v6 = vpack.c.bf16 %v7036_v10, %v7035_v4  ;;  %v8571_v37 = vpack.c.bf16 %v6988_v0, %v6987_v12  ;;  %v7060_v12 = vld [vmem:[%s11966_s8 + $0xa98] sm:$0xff]  ;;  %v7091_v0 = vld [vmem:[%s11966_s8 + $0xb90] sm:$0xff] }
0x1354   :  { %5755 = vmatprep.mubr.f32.mxu0 %v8955_v52  ;;  %5832 = vmatprep.mubr.f32.mxu1 %v8955_v52  ;;  %v7013_v52 = vld [vmem:[%s11966_s8 + $0x920] sm:$0xff]  ;;  %v7063_v56 = vld [vmem:[%s11966_s8 + $0xab0] sm:$0xff] }
0x1355   :  { %8552 = vmatpush3.bf16.msra.mxu0 %v8551_v49  ;;  %8584 = vmatpush3.bf16.msra.mxu1 %v8583_v3  ;;  %v8591_v16 = vpack.c.bf16 %v7014_v17, %v7013_v52  ;;  %v7019_v49 = vld [vmem:[%s11966_s8 + $0x950] sm:$0xff]  ;;  %v7020_v3 = vld [vmem:[%s11966_s8 + $0x958] sm:$0xff] }
0x1356   :  { %8554 = vmatprep.subr.bf16.mxu0 %v8553_v27  ;;  %8586 = vmatprep.subr.bf16.mxu1 %v8585_v5  ;;  %v7037_v27 = vld [vmem:[%s11966_s8 + $0x9e0] sm:$0xff]  ;;  %v7038_v5 = vld [vmem:[%s11966_s8 + $0x9e8] sm:$0xff]  ;;  %v8603_v9 = vpack.c.bf16 %v7020_v3, %v7019_v49  ;;  %v7039_v52 = vld [vmem:[%s11966_s8 + $0x9f0] sm:$0xff] }
0x1357   :  { %6974 = vmatmul.mubr.msk.f32.gmra.mrb[80].mxu0 %vm45_vm0, %v10903_v30  ;;  %6976 = vmatmul.mubr.msk.f32.gmra.mrb[84].mxu1 %vm45_vm0, %v10903_v30  ;;  %v6983_v30 = vld [vmem:[%s11966_s8 + $0x830] sm:$0xff]  ;;  %v8605_v53 = vpack.c.bf16 %v7038_v5, %v7037_v27  ;;  %v8609_v1 = vpack.c.bf16 %v7040_v58, %v7039_v52  ;;  %v7061_v58 = vld [vmem:[%s11966_s8 + $0xaa0] sm:$0xff] }
0x1358   :  { %v8563_v26 = vpack.c.bf16 %v6984_v55, %v6983_v30  ;;  %v7024_v30 = vld [vmem:[%s11966_s8 + $0x978] sm:$0xff]  ;;  %v7043_v27 = vld [vmem:[%s11966_s8 + $0xa10] sm:$0xff] }
0x1359   :  { %8556 = vmatpush3.bf16.msra.mxu0 %v8555_v47  ;;  %8588 = vmatpush3.bf16.msra.mxu1 %v8587_v24  ;;  %v7021_v47 = vld [vmem:[%s11966_s8 + $0x960] sm:$0xff]  ;;  %v7022_v24 = vld [vmem:[%s11966_s8 + $0x968] sm:$0xff]  ;;  %v8619_v14 = vpack.c.bf16 %v7044_v18, %v7043_v27  ;;  %v7048_v27 = vld [vmem:[%s11966_s8 + $0xa38] sm:$0xff] }
0x135a   :  { %8558 = vmatprep.subr.bf16.mxu0 %v8557_v51  ;;  %8590 = vmatprep.subr.bf16.mxu1 %v8589_v32  ;;  %v8607_v40 = vpack.c.bf16 %v7022_v24, %v7021_v47  ;;  %v7007_v51 = vld [vmem:[%s11966_s8 + $0x8f0] sm:$0xff]  ;;  %v7008_v32 = vld [vmem:[%s11966_s8 + $0x8f8] sm:$0xff]  ;;  %v7065_v18 = vld [vmem:[%s11966_s8 + $0xac0] sm:$0xff] }
0x135b   :  { %v8577_v17 = vpack.c.bf16 %v7008_v32, %v7007_v51  ;;  %v7075_v47 = vld [vmem:[%s11966_s8 + $0xb10] sm:$0xff] }
0x135d   :  { %8560 = vmatpush3.bf16.msra.mxu0 %v8559_v42  ;;  %8592 = vmatpush3.bf16.msra.mxu1 %v8591_v16  ;;  %v8579_v42 = vpack.c.bf16 %v6992_v28, %v6991_v35  ;;  %v7023_v16 = vld [vmem:[%s11966_s8 + $0x970] sm:$0xff] }
0x135e   :  { %8562 = vmatprep.subr.bf16.mxu0 %v8561_v43  ;;  %8594 = vmatprep.subr.bf16.mxu1 %v8593_v61  ;;  %v8611_v55 = vpack.c.bf16 %v7024_v30, %v7023_v16  ;;  %v7057_v43 = vld [vmem:[%s11966_s8 + $0xa80] sm:$0xff]  ;;  %v7058_v61 = vld [vmem:[%s11966_s8 + $0xa88] sm:$0xff] }
0x135f   :  { %v8613_v45 = vpack.c.bf16 %v7058_v61, %v7057_v43  ;;  %v7093_v16 = vld [vmem:[%s11966_s8 + $0xba0] sm:$0xff]  ;;  %v7094_v30 = vld [vmem:[%s11966_s8 + $0xba8] sm:$0xff] }
0x1361   :  { %8564 = vmatpush3.bf16.msra.mxu0 %v8563_v26  ;;  %8596 = vmatpush3.bf16.msra.mxu1 %v8595_v31  ;;  %v5148_v26 = vrot.slane %v11233_v29, %v9381_v8  ;;  %v5144_v31 = vrot.slane %v11233_v29, %v9060_v41 }
0x1362   :  { %8566 = vmatprep.subr.bf16.mxu0 %v8565_v57  ;;  %8598 = vmatprep.subr.bf16.mxu1 %v8597_v23  ;;  %v7042_v57 = vld [vmem:[%s11966_s8 + $0xa08] sm:$0xff] }
0x1363   :  { %v8615_v3 = vpack.c.bf16 %v7042_v57, %v7041_v34 }
0x1365   :  { %8568 = vmatpush3.bf16.msra.mxu0 %v8567_v7  ;;  %8600 = vmatpush3.bf16.msra.mxu1 %v8599_v11 }
0x1366   :  { %8570 = vmatprep.subr.bf16.mxu0 %v8569_v38  ;;  %8602 = vmatprep.subr.bf16.mxu1 %v8601_v6  ;;  %v7092_v38 = vld [vmem:[%s11966_s8 + $0xb98] sm:$0xff] }
0x1369   :  { %8572 = vmatpush3.bf16.msra.mxu0 %v8571_v37  ;;  %8604 = vmatpush3.bf16.msra.mxu1 %v8603_v9 }
0x136a   :  { %8574 = vmatprep.subr.bf16.mxu0 %v8573_v48  ;;  %8606 = vmatprep.subr.bf16.mxu1 %v8605_v53  ;;  %v8617_v48 = vpack.c.bf16 %v7060_v12, %v7059_v21  ;;  %v8649_v53 = vpack.c.bf16 %v7092_v38, %v7091_v0 }
0x136d   :  { %8576 = vmatpush3.bf16.msra.mxu0 %v8575_v50  ;;  %8608 = vmatpush3.bf16.msra.mxu1 %v8607_v40 }
0x136e   :  { %8578 = vmatprep.subr.bf16.mxu0 %v8577_v17  ;;  %8610 = vmatprep.subr.bf16.mxu1 %v8609_v1  ;;  %v7076_v17 = vld [vmem:[%s11966_s8 + $0xb18] sm:$0xff]  ;;  %v11288_v1 = vrot.slane %v11233_v29, %v9819_v44 }
0x1371   :  { %8580 = vmatpush3.bf16.msra.mxu0 %v8579_v42  ;;  %8612 = vmatpush3.bf16.msra.mxu1 %v8611_v55  ;;  %v7062_v42 = vld [vmem:[%s11966_s8 + $0xaa8] sm:$0xff]  ;;  %v7045_v55 = vld [vmem:[%s11966_s8 + $0xa20] sm:$0xff] }
0x1372   :  { %8614 = vmatprep.subr.bf16.mxu0 %v8613_v45  ;;  %8646 = vmatprep.subr.bf16.mxu1 %v8645_v46  ;;  %v8651_v46 = vpack.c.bf16 %v7076_v17, %v7075_v47  ;;  %v7066_v47 = vld [vmem:[%s11966_s8 + $0xac8] sm:$0xff]  ;;  %v7049_v17 = vld [vmem:[%s11966_s8 + $0xa40] sm:$0xff] }
0x140e   :  { %v5289_v23 = vpop.f32.mrb[66].mxu0  ;;  %v5366_v60 = vpop.f32.mrb[70].mxu1 }
0x140f   :  { %v5290_v4 = vadd.f32 %v5289_v23, %v5140_v20  ;;  %v5367_v10 = vadd.f32 %v5366_v60, %v5148_v26  ;;  %v5291_v7 = vpop.f32.mrb[67].mxu0  ;;  %v5368_v11 = vpop.f32.mrb[71].mxu1  ;;  %v8621_v23 = vpack.c.bf16 %v7062_v42, %v7061_v58  ;;  %v8653_v60 = vpack.c.bf16 %v7094_v30, %v7093_v16  ;;  %v7050_v58 = vld [vmem:[%s11966_s8 + $0xa48] sm:$0xff]  ;;  %v7081_v30 = vld [vmem:[%s11966_s8 + $0xb40] sm:$0xff] }
0x1410   :  { %v5292_v6 = vadd.f32 %v5291_v7, %v5144_v31  ;;  %v5369_v49 = vadd.f32 %v5368_v11, %v5152_v13  ;;  %v7095_v7 = vld [vmem:[%s11966_s8 + $0xbb0] sm:$0xff]  ;;  %v7096_v11 = vld [vmem:[%s11966_s8 + $0xbb8] sm:$0xff]  ;;  %v8629_v42 = vpack.c.bf16 %v7066_v47, %v7065_v18  ;;  %v7085_v47 = vld [vmem:[%s11966_s8 + $0xb60] sm:$0xff] }
0x1411   :  { %v5839_v24 = vmax.f32 %v5290_v4, 0.0  ;;  %v5841_v50 = vmax.f32 %v5367_v10, 0.0  ;;  %v7064_v10 = vld [vmem:[%s11966_s8 + $0xab8] sm:$0xff] }
0x1412   :  { %v5840_v5 = vmax.f32 %v5292_v6, 0.0  ;;  %v5842_v37 = vmax.f32 %v5369_v49, 0.0  ;;  %v5295_v9 = vpop.f32.mrb[68].mxu0  ;;  %v5372_v33 = vpop.f32.mrb[72].mxu1 }
0x1413   :  { %v5296_v40 = vadd.f32 %v5295_v9, %v5140_v20  ;;  %v5373_v51 = vadd.f32 %v5372_v33, %v5148_v26  ;;  %v5297_v32 = vpop.f32.mrb[69].mxu0  ;;  %v5374_v52 = vpop.f32.mrb[73].mxu1  ;;  %v7046_v20 = vld [vmem:[%s11966_s8 + $0xa28] sm:$0xff]  ;;  %v7077_v26 = vld [vmem:[%s11966_s8 + $0xb20] sm:$0xff]  ;;  %v8625_v9 = vpack.c.bf16 %v7064_v10, %v7063_v56  ;;  %v8657_v33 = vpack.c.bf16 %v7096_v11, %v7095_v7 }
0x1414   :  { %v5298_v35 = vadd.f32 %v5297_v32, %v5144_v31  ;;  %v5375_v28 = vadd.f32 %v5374_v52, %v5152_v13  ;;  %6196 = vmatprep.mubr.f32.mxu0 %v5840_v5  ;;  %6271 = vmatprep.mubr.f32.mxu1 %v5842_v37  ;;  %v8623_v49 = vpack.c.bf16 %v7046_v20, %v7045_v55  ;;  %v7082_v55 = vld [vmem:[%s11966_s8 + $0xb48] sm:$0xff]  ;;  %v7069_v10 = vld [vmem:[%s11966_s8 + $0xae0] sm:$0xff] }
0x1415   :  { %6197 = vmatmul.mubr.f32.vlgmr.msra.gmra.mrb[82].mxu0 %v5839_v24  ;;  %6272 = vmatmul.mubr.f32.vlgmr.msra.gmra.mrb[86].mxu1 %v5841_v50  ;;  %v5855_v31 = vmax.f32 %v5296_v40, 0.0  ;;  %v5857_v13 = vmax.f32 %v5373_v51, 0.0  ;;  %v7097_v24 = vld [vmem:[%s11966_s8 + $0xbc0] sm:$0xff]  ;;  %v7098_v50 = vld [vmem:[%s11966_s8 + $0xbc8] sm:$0xff] }
0x1416   :  { %v5856_v43 = vmax.f32 %v5298_v35, 0.0  ;;  %v5858_v61 = vmax.f32 %v5375_v28, 0.0  ;;  %8616 = vmatpush3.bf16.msra.mxu0 %v8615_v3  ;;  %8648 = vmatpush3.bf16.msra.mxu1 %v8647_v15  ;;  %v11302_v22 = vpop.f32.mrb[70].mxu0  ;;  %v11304_v45 = vpop.f32.mrb[74].mxu1  ;;  %v8655_v3 = vpack.c.bf16 %v7078_v63, %v7077_v26  ;;  %v7047_v15 = vld [vmem:[%s11966_s8 + $0xa30] sm:$0xff]  ;;  %v8661_v16 = vpack.c.bf16 %v7098_v50, %v7097_v24  ;;  %v7070_v7 = vld [vmem:[%s11966_s8 + $0xae8] sm:$0xff] }
0x1417   :  { %v5445_v34 = vpop.f32.mrb[71].mxu0  ;;  %v5522_v57 = vpop.f32.mrb[75].mxu1  ;;  %8618 = vmatprep.subr.bf16.mxu0 %v8617_v48  ;;  %8650 = vmatprep.subr.bf16.mxu1 %v8649_v53  ;;  %v7079_v48 = vld [vmem:[%s11966_s8 + $0xb30] sm:$0xff]  ;;  %v7080_v53 = vld [vmem:[%s11966_s8 + $0xb38] sm:$0xff]  ;;  %v8627_v32 = vpack.c.bf16 %v7048_v27, %v7047_v15  ;;  %v7101_v11 = vld [vmem:[%s11966_s8 + $0xbe0] sm:$0xff] }
0x1418   :  { %v5446_v21 = vadd.f32 %v5445_v34, %v11269_v19  ;;  %v5523_v4 = vadd.f32 %v5522_v57, %v11288_v1  ;;  %6201 = vmatprep.mubr.f32.mxu0 %v5856_v43  ;;  %6276 = vmatprep.mubr.f32.mxu1 %v5858_v61  ;;  %v8659_v52 = vpack.c.bf16 %v7080_v53, %v7079_v48  ;;  %v7067_v43 = vld [vmem:[%s11966_s8 + $0xad0] sm:$0xff]  ;;  %v7068_v61 = vld [vmem:[%s11966_s8 + $0xad8] sm:$0xff]  ;;  %v7053_v27 = vld [vmem:[%s11966_s8 + $0xa60] sm:$0xff] }
0x1419   :  { %6202 = vmatmul.mubr.f32.gmra.mrb[84].mxu0 %v5855_v31  ;;  %6277 = vmatmul.mubr.f32.gmra.mrb[88].mxu1 %v5857_v13  ;;  %v8631_v31 = vpack.c.bf16 %v7050_v58, %v7049_v17  ;;  %v8663_v13 = vpack.c.bf16 %v7082_v55, %v7081_v30  ;;  %v7051_v34 = vld [vmem:[%s11966_s8 + $0xa50] sm:$0xff]  ;;  %v7052_v57 = vld [vmem:[%s11966_s8 + $0xa58] sm:$0xff]  ;;  %v8633_v63 = vpack.c.bf16 %v7068_v61, %v7067_v43  ;;  %v7086_v24 = vld [vmem:[%s11966_s8 + $0xb68] sm:$0xff] }
0x141a   :  { %v5844_v12 = vmax.f32 %v5446_v21, 0.0  ;;  %v5846_v0 = vmax.f32 %v5523_v4, 0.0  ;;  %8620 = vmatpush3.bf16.msra.mxu0 %v8619_v14  ;;  %8652 = vmatpush3.bf16.msra.mxu1 %v8651_v46  ;;  %v11329_v38 = vpop.f32.mrb[72].mxu0  ;;  %v11331_v6 = vpop.f32.mrb[76].mxu1  ;;  %v7099_v14 = vld [vmem:[%s11966_s8 + $0xbd0] sm:$0xff]  ;;  %v7100_v46 = vld [vmem:[%s11966_s8 + $0xbd8] sm:$0xff]  ;;  %v8637_v53 = vpack.c.bf16 %v7070_v7, %v7069_v10  ;;  %v5156_v58 = vrot.slane %v11233_v29, %v9294_v2 }
0x141b   :  { %v11339_v5 = vpop.f32.mrb[73].mxu0  ;;  %v11341_v37 = vpop.f32.mrb[77].mxu1  ;;  %8622 = vmatprep.subr.bf16.mxu0 %v8621_v23  ;;  %8654 = vmatprep.subr.bf16.mxu1 %v8653_v60  ;;  %v8665_v56 = vpack.c.bf16 %v7100_v46, %v7099_v14  ;;  %v7083_v21 = vld [vmem:[%s11966_s8 + $0xb50] sm:$0xff]  ;;  %v7084_v4 = vld [vmem:[%s11966_s8 + $0xb58] sm:$0xff]  ;;  %v8671_v55 = vpack.c.bf16 %v7086_v24, %v7085_v47  ;;  %v5164_v46 = vrot.slane %v11233_v29, %v9990_v62  ;;  %v7122_v29 = vld [vmem:[%s11966_s8 + $0xc88] sm:$0xff] }
0x141c   :  { %6346 = vmatprep.mubr.f32.mxu0 %v5844_v12  ;;  %6421 = vmatprep.mubr.f32.mxu1 %v5846_v0  ;;  %v7102_v12 = vld [vmem:[%s11966_s8 + $0xbe8] sm:$0xff]  ;;  %v8667_v15 = vpack.c.bf16 %v7084_v4, %v7083_v21  ;;  %v7071_v50 = vld [vmem:[%s11966_s8 + $0xaf0] sm:$0xff]  ;;  %v7104_v17 = vld [vmem:[%s11966_s8 + $0xbf8] sm:$0xff] }
0x141d   :  { %v8669_v18 = vpack.c.bf16 %v7102_v12, %v7101_v11  ;;  %v7055_v43 = vld [vmem:[%s11966_s8 + $0xa70] sm:$0xff]  ;;  %v7056_v61 = vld [vmem:[%s11966_s8 + $0xa78] sm:$0xff]  ;;  %v7153_v21 = vld [vmem:[%s11966_s8 + $0xd80] sm:$0xff]  ;;  %v5521_v47 = vadd.f32 %v11304_v45, %v5164_v46  ;;  %v5529_v45 = vadd.f32 %v11341_v37, %v11288_v1  ;;  %v5527_v1 = vadd.f32 %v11331_v6, %v5164_v46 }
0x141e   :  { %8624 = vmatpush3.bf16.msra.mxu0 %v8623_v49  ;;  %8656 = vmatpush3.bf16.msra.mxu1 %v8655_v3  ;;  %v11361_v40 = vpop.f32.mrb[74].mxu0  ;;  %v11363_v51 = vpop.f32.mrb[78].mxu1  ;;  %v8635_v3 = vpack.c.bf16 %v7052_v57, %v7051_v34  ;;  %v7087_v14 = vld [vmem:[%s11966_s8 + $0xb70] sm:$0xff]  ;;  %v7154_v4 = vld [vmem:[%s11966_s8 + $0xd88] sm:$0xff]  ;;  %v11496_v10 = vld [vmem:[%s11962_s4 + $0x18] sm:$0xff]  ;;  %v8643_v12 = vpack.c.bf16 %v7056_v61, %v7055_v43 }
0x141f   :  { %v11371_v35 = vpop.f32.mrb[75].mxu0  ;;  %v11373_v28 = vpop.f32.mrb[79].mxu1  ;;  %8626 = vmatprep.subr.bf16.mxu0 %v8625_v9  ;;  %8658 = vmatprep.subr.bf16.mxu1 %v8657_v33  ;;  %v7054_v9 = vld [vmem:[%s11966_s8 + $0xa68] sm:$0xff]  ;;  %v7105_v7 = vld [vmem:[%s11966_s8 + $0xc00] sm:$0xff]  ;;  %v8709_v24 = vpack.c.bf16 %v7154_v4, %v7153_v21  ;;  %v7139_v6 = vld [vmem:[%s11966_s8 + $0xd10] sm:$0xff]  ;;  %v5861_v4 = vmax.f32 %v5527_v1, 0.0 }
0x1420   :  { %v8639_v30 = vpack.c.bf16 %v7054_v9, %v7053_v27  ;;  %v7106_v11 = vld [vmem:[%s11966_s8 + $0xc08] sm:$0xff]  ;;  %v7137_v27 = vld [vmem:[%s11966_s8 + $0xd00] sm:$0xff] }
0x1421   :  { %v7138_v9 = vld [vmem:[%s11966_s8 + $0xd08] sm:$0xff]  ;;  %v7125_v46 = vld [vmem:[%s11966_s8 + $0xca0] sm:$0xff] }
0x1422   :  { %8628 = vmatpush3.bf16.msra.mxu0 %v8627_v32  ;;  %8660 = vmatpush3.bf16.msra.mxu1 %v8659_v52  ;;  %v11393_v20 = vpop.f32.mrb[76].mxu0  ;;  %v11395_v26 = vpop.f32.mrb[80].mxu1  ;;  %v7072_v32 = vld [vmem:[%s11966_s8 + $0xaf8] sm:$0xff]  ;;  %v7103_v52 = vld [vmem:[%s11966_s8 + $0xbf0] sm:$0xff]  ;;  %v8711_v43 = vpack.c.bf16 %v7138_v9, %v7137_v27  ;;  %v7130_v1 = vld [vmem:[%s11966_s8 + $0xcc8] sm:$0xff] }
0x1423   :  { %v11403_v23 = vpop.f32.mrb[77].mxu0  ;;  %v11405_v60 = vpop.f32.mrb[81].mxu1  ;;  %8630 = vmatprep.subr.bf16.mxu0 %v8629_v42  ;;  %8662 = vmatprep.subr.bf16.mxu1 %v8661_v16  ;;  %v8641_v34 = vpack.c.bf16 %v7072_v32, %v7071_v50  ;;  %v8673_v57 = vpack.c.bf16 %v7104_v17, %v7103_v52  ;;  %v7124_v50 = vld [vmem:[%s11966_s8 + $0xc98] sm:$0xff]  ;;  %v7155_v32 = vld [vmem:[%s11966_s8 + $0xd90] sm:$0xff]  ;;  %v11530_v17 = vrot.slane %v11496_v10, %v9060_v41 }
0x1424   :  { %v7156_v52 = vld [vmem:[%s11966_s8 + $0xd98] sm:$0xff]  ;;  %v7107_v41 = vld [vmem:[%s11966_s8 + $0xc10] sm:$0xff] }
0x1426   :  { %8632 = vmatpush3.bf16.msra.mxu0 %v8631_v31  ;;  %8664 = vmatpush3.bf16.msra.mxu1 %v8663_v13  ;;  %v11425_v0 = vpop.f32.mrb[78].mxu0  ;;  %v11427_v49 = vpop.f32.mrb[82].mxu1 }
0x1427   :  { %v11435_v33 = vpop.f32.mrb[79].mxu0  ;;  %v11437_v48 = vpop.f32.mrb[83].mxu1  ;;  %8634 = vmatprep.subr.bf16.mxu0 %v8633_v63  ;;  %8666 = vmatprep.subr.bf16.mxu1 %v8665_v56  ;;  %v7088_v63 = vld [vmem:[%s11966_s8 + $0xb78] sm:$0xff]  ;;  %v7121_v56 = vld [vmem:[%s11966_s8 + $0xc80] sm:$0xff] }
0x142a   :  { %8636 = vmatpush3.bf16.msra.mxu0 %v8635_v3  ;;  %8668 = vmatpush3.bf16.msra.mxu1 %v8667_v15  ;;  %v11459_v42 = vpop.f32.mrb[80].mxu0  ;;  %v11461_v16 = vpop.f32.mrb[84].mxu1  ;;  %v8675_v3 = vpack.c.bf16 %v7088_v63, %v7087_v14  ;;  %v8677_v15 = vpack.c.bf16 %v7122_v29, %v7121_v56  ;;  %v8713_v14 = vpack.c.bf16 %v7156_v52, %v7155_v32  ;;  %v5862_v63 = vmax.f32 %v5529_v45, 0.0  ;;  %v7158_v29 = vld [vmem:[%s11966_s8 + $0xda8] sm:$0xff]  ;;  %v7159_v32 = vld [vmem:[%s11966_s8 + $0xdb0] sm:$0xff]  ;;  %v7160_v52 = vld [vmem:[%s11966_s8 + $0xdb8] sm:$0xff] }
0x142b   :  { %v11474_v31 = vpop.f32.mrb[81].mxu0  ;;  %v11476_v13 = vpop.f32.mrb[85].mxu1  ;;  %8638 = vmatprep.subr.bf16.mxu0 %v8637_v53  ;;  %8670 = vmatprep.subr.bf16.mxu1 %v8669_v18  ;;  %v7123_v53 = vld [vmem:[%s11966_s8 + $0xc90] sm:$0xff]  ;;  %v5444_v18 = vadd.f32 %v11302_v22, %v5156_v58  ;;  %v5452_v22 = vadd.f32 %v11339_v5, %v11269_v19  ;;  %v5450_v19 = vadd.f32 %v11329_v38, %v5156_v58  ;;  %v7108_v5 = vld [vmem:[%s11966_s8 + $0xc18] sm:$0xff] }
0x142c   :  { %v8681_v61 = vpack.c.bf16 %v7124_v50, %v7123_v53  ;;  %v5600_v56 = vadd.f32 %v11371_v35, %v11530_v17  ;;  %v7140_v58 = vld [vmem:[%s11966_s8 + $0xd18] sm:$0xff]  ;;  %v7126_v35 = vld [vmem:[%s11966_s8 + $0xca8] sm:$0xff] }
0x142d   :  { %v5860_v37 = vmax.f32 %v5452_v22, 0.0  ;;  %v5859_v21 = vmax.f32 %v5450_v19, 0.0  ;;  %v8685_v9 = vpack.c.bf16 %v7126_v35, %v7125_v46  ;;  %v7128_v50 = vld [vmem:[%s11966_s8 + $0xcb8] sm:$0xff]  ;;  %v7129_v19 = vld [vmem:[%s11966_s8 + $0xcc0] sm:$0xff]  ;;  %v7146_v35 = vld [vmem:[%s11966_s8 + $0xd48] sm:$0xff] }
0x142e   :  { %8640 = vmatpush3.bf16.msra.mxu0 %v8639_v30  ;;  %8672 = vmatpush3.bf16.msra.mxu1 %v8671_v55  ;;  %v11534_v30 = vrot.slane %v11496_v10, %v9386_v54  ;;  %v8679_v55 = vpack.c.bf16 %v7106_v11, %v7105_v7  ;;  %v8683_v7 = vpack.c.bf16 %v7108_v5, %v7107_v41  ;;  %v7161_v41 = vld [vmem:[%s11966_s8 + $0xdc0] sm:$0xff]  ;;  %v7162_v5 = vld [vmem:[%s11966_s8 + $0xdc8] sm:$0xff] }
0x142f   :  { %8642 = vmatprep.subr.bf16.mxu0 %v8641_v34  ;;  %8674 = vmatprep.subr.bf16.mxu1 %v8673_v57  ;;  %v5843_v34 = vmax.f32 %v5444_v18, 0.0  ;;  %v5845_v57 = vmax.f32 %v5521_v47, 0.0  ;;  %v8715_v11 = vpack.c.bf16 %v7140_v58, %v7139_v6  ;;  %v7141_v18 = vld [vmem:[%s11966_s8 + $0xd20] sm:$0xff]  ;;  %v7142_v47 = vld [vmem:[%s11966_s8 + $0xd28] sm:$0xff]  ;;  %v8693_v6 = vpack.c.bf16 %v7130_v1, %v7129_v19  ;;  %v7167_v19 = vld [vmem:[%s11966_s8 + $0xdf0] sm:$0xff] }
0x1430   :  { %v5677_v38 = vadd.f32 %v11373_v28, %v11534_v30  ;;  %v7157_v28 = vld [vmem:[%s11966_s8 + $0xda0] sm:$0xff]  ;;  %v8719_v45 = vpack.c.bf16 %v7142_v47, %v7141_v18  ;;  %v8725_v58 = vpack.c.bf16 %v7162_v5, %v7161_v41  ;;  %v7134_v47 = vld [vmem:[%s11966_s8 + $0xce8] sm:$0xff]  ;;  %v7168_v1 = vld [vmem:[%s11966_s8 + $0xdf8] sm:$0xff]  ;;  %v5172_v41 = vrot.slane %v11496_v10, %v9050_v36 }
0x1431   :  { %v8717_v53 = vpack.c.bf16 %v7158_v29, %v7157_v28  ;;  %v7145_v46 = vld [vmem:[%s11966_s8 + $0xd40] sm:$0xff]  ;;  %v7131_v28 = vld [vmem:[%s11966_s8 + $0xcd0] sm:$0xff]  ;;  %v7132_v29 = vld [vmem:[%s11966_s8 + $0xcd8] sm:$0xff] }
0x1432   :  { %8644 = vmatpush3.bf16.msra.mxu0 %v8643_v12  ;;  %8676 = vmatpush3.bf16.msra.mxu1 %v8675_v3  ;;  %v7109_v12 = vld [vmem:[%s11966_s8 + $0xc20] sm:$0xff]  ;;  %v7110_v3 = vld [vmem:[%s11966_s8 + $0xc28] sm:$0xff]  ;;  %v5850_v27 = vmax.f32 %v5677_v38, 0.0 }
0x1433   :  { %8678 = vmatprep.subr.bf16.mxu0 %v8677_v15  ;;  %8710 = vmatprep.subr.bf16.mxu1 %v8709_v24  ;;  %v5848_v15 = vmax.f32 %v5600_v56, 0.0  ;;  %v7127_v24 = vld [vmem:[%s11966_s8 + $0xcb0] sm:$0xff]  ;;  %v8687_v22 = vpack.c.bf16 %v7110_v3, %v7109_v12  ;;  %v7113_v56 = vld [vmem:[%s11966_s8 + $0xc40] sm:$0xff]  ;;  %v7114_v38 = vld [vmem:[%s11966_s8 + $0xc48] sm:$0xff] }
0x1434   :  { %v7115_v12 = vld [vmem:[%s11966_s8 + $0xc50] sm:$0xff]  ;;  %v7116_v3 = vld [vmem:[%s11966_s8 + $0xc58] sm:$0xff]  ;;  %v7133_v18 = vld [vmem:[%s11966_s8 + $0xce0] sm:$0xff] }
0x1435   :  { %6347 = vmatmul.mubr.f32.vlgmr.msra.gmra.mrb[86].mxu0 %v5843_v34  ;;  %6422 = vmatmul.mubr.f32.vlgmr.msra.gmra.mrb[90].mxu1 %v5845_v57  ;;  %v7143_v34 = vld [vmem:[%s11966_s8 + $0xd30] sm:$0xff]  ;;  %v7144_v57 = vld [vmem:[%s11966_s8 + $0xd38] sm:$0xff] }
0x1436   :  { %6351 = vmatprep.mubr.f32.mxu0 %v5860_v37  ;;  %6426 = vmatprep.mubr.f32.mxu1 %v5862_v63  ;;  %v8723_v63 = vpack.c.bf16 %v7144_v57, %v7143_v34  ;;  %v7135_v34 = vld [vmem:[%s11966_s8 + $0xcf0] sm:$0xff]  ;;  %v7136_v57 = vld [vmem:[%s11966_s8 + $0xcf8] sm:$0xff] }
0x1437   :  { %8680 = vmatpush3.bf16.msra.mxu0 %v8679_v55  ;;  %8712 = vmatpush3.bf16.msra.mxu1 %v8711_v43  ;;  %v7111_v55 = vld [vmem:[%s11966_s8 + $0xc30] sm:$0xff]  ;;  %v7112_v43 = vld [vmem:[%s11966_s8 + $0xc38] sm:$0xff]  ;;  %v8705_v36 = vpack.c.bf16 %v7136_v57, %v7135_v34 }
0x1438   :  { %8682 = vmatprep.subr.bf16.mxu0 %v8681_v61  ;;  %8714 = vmatprep.subr.bf16.mxu1 %v8713_v14  ;;  %v8689_v61 = vpack.c.bf16 %v7128_v50, %v7127_v24  ;;  %v8721_v14 = vpack.c.bf16 %v7160_v52, %v7159_v32  ;;  %v8691_v37 = vpack.c.bf16 %v7112_v43, %v7111_v55  ;;  %v7165_v24 = vld [vmem:[%s11966_s8 + $0xde0] sm:$0xff]  ;;  %v7166_v50 = vld [vmem:[%s11966_s8 + $0xde8] sm:$0xff] }
0x1439   :  { %6352 = vmatmul.mubr.f32.gmra.mrb[88].mxu0 %v5859_v21  ;;  %6427 = vmatmul.mubr.f32.gmra.mrb[92].mxu1 %v5861_v4  ;;  %v7163_v21 = vld [vmem:[%s11966_s8 + $0xdd0] sm:$0xff]  ;;  %v7164_v4 = vld [vmem:[%s11966_s8 + $0xdd8] sm:$0xff]  ;;  %v8699_v32 = vpack.c.bf16 %v7116_v3, %v7115_v12  ;;  %v8701_v55 = vpack.c.bf16 %v7134_v47, %v7133_v18  ;;  %v8733_v43 = vpack.c.bf16 %v7166_v50, %v7165_v24  ;;  %v7201_v3 = vld [vmem:[%s11966_s8 + $0xf00] sm:$0xff] }
0x143a   :  { %6496 = vmatprep.mubr.f32.mxu0 %v5848_v15  ;;  %6571 = vmatprep.mubr.f32.mxu1 %v5850_v27  ;;  %v8697_v15 = vpack.c.bf16 %v7132_v29, %v7131_v28  ;;  %v8729_v27 = vpack.c.bf16 %v7164_v4, %v7163_v21  ;;  %v7186_v28 = vld [vmem:[%s11966_s8 + $0xe88] sm:$0xff]  ;;  %v7169_v21 = vld [vmem:[%s11966_s8 + $0xe00] sm:$0xff]  ;;  %v7188_v47 = vld [vmem:[%s11966_s8 + $0xe98] sm:$0xff] }
0x143b   :  { %8684 = vmatpush3.bf16.msra.mxu0 %v8683_v7  ;;  %8716 = vmatpush3.bf16.msra.mxu1 %v8715_v11  ;;  %v8695_v7 = vpack.c.bf16 %v7114_v38, %v7113_v56  ;;  %v8727_v11 = vpack.c.bf16 %v7146_v35, %v7145_v46  ;;  %v7120_v56 = vld [vmem:[%s11966_s8 + $0xc78] sm:$0xff]  ;;  %v7151_v38 = vld [vmem:[%s11966_s8 + $0xd70] sm:$0xff]  ;;  %v7185_v35 = vld [vmem:[%s11966_s8 + $0xe80] sm:$0xff] }
0x143c   :  { %8686 = vmatprep.subr.bf16.mxu0 %v8685_v9  ;;  %8718 = vmatprep.subr.bf16.mxu1 %v8717_v53  ;;  %v7147_v9 = vld [vmem:[%s11966_s8 + $0xd50] sm:$0xff]  ;;  %v7148_v53 = vld [vmem:[%s11966_s8 + $0xd58] sm:$0xff]  ;;  %v7218_v29 = vld [vmem:[%s11966_s8 + $0xf88] sm:$0xff]  ;;  %v8741_v12 = vpack.c.bf16 %v7186_v28, %v7185_v35 }
0x143d   :  { %v8731_v52 = vpack.c.bf16 %v7148_v53, %v7147_v9  ;;  %v7152_v46 = vld [vmem:[%s11966_s8 + $0xd78] sm:$0xff]  ;;  %v7170_v4 = vld [vmem:[%s11966_s8 + $0xe08] sm:$0xff]  ;;  %v5598_v9 = vadd.f32 %v11361_v40, %v5172_v41  ;;  %v7219_v24 = vld [vmem:[%s11966_s8 + $0xf90] sm:$0xff]  ;;  %v5606_v40 = vadd.f32 %v11403_v23, %v11530_v17  ;;  %v5604_v23 = vadd.f32 %v11393_v20, %v5172_v41 }
0x143e   :  { %v7220_v50 = vld [vmem:[%s11966_s8 + $0xf98] sm:$0xff]  ;;  %v7171_v17 = vld [vmem:[%s11966_s8 + $0xe10] sm:$0xff]  ;;  %v7222_v41 = vld [vmem:[%s11966_s8 + $0xfa8] sm:$0xff] }
0x143f   :  { %8688 = vmatpush3.bf16.msra.mxu0 %v8687_v22  ;;  %8720 = vmatpush3.bf16.msra.mxu1 %v8719_v45  ;;  %v7117_v22 = vld [vmem:[%s11966_s8 + $0xc60] sm:$0xff]  ;;  %v7118_v45 = vld [vmem:[%s11966_s8 + $0xc68] sm:$0xff] }
0x1440   :  { %8690 = vmatprep.subr.bf16.mxu0 %v8689_v61  ;;  %8722 = vmatprep.subr.bf16.mxu1 %v8721_v14  ;;  %v7149_v61 = vld [vmem:[%s11966_s8 + $0xd60] sm:$0xff]  ;;  %v7150_v14 = vld [vmem:[%s11966_s8 + $0xd68] sm:$0xff]  ;;  %v8703_v5 = vpack.c.bf16 %v7118_v45, %v7117_v22  ;;  %v8743_v22 = vpack.c.bf16 %v7170_v4, %v7169_v21  ;;  %v7192_v21 = vld [vmem:[%s11966_s8 + $0xeb8] sm:$0xff] }
0x1441   :  { %v7205_v28 = vld [vmem:[%s11966_s8 + $0xf20] sm:$0xff]  ;;  %v7223_v4 = vld [vmem:[%s11966_s8 + $0xfb0] sm:$0xff] }
0x1443   :  { %8692 = vmatpush3.bf16.msra.mxu0 %v8691_v37  ;;  %8724 = vmatpush3.bf16.msra.mxu1 %v8723_v63  ;;  %v8735_v37 = vpack.c.bf16 %v7150_v14, %v7149_v61  ;;  %v7119_v63 = vld [vmem:[%s11966_s8 + $0xc70] sm:$0xff]  ;;  %v5847_v61 = vmax.f32 %v5598_v9, 0.0 }
0x1444   :  { %8694 = vmatprep.subr.bf16.mxu0 %v8693_v6  ;;  %8726 = vmatprep.subr.bf16.mxu1 %v8725_v58  ;;  %v5180_v6 = vrot.slane %v11496_v10, %v9381_v8  ;;  %v8737_v58 = vpack.c.bf16 %v7168_v1, %v7167_v19  ;;  %v7217_v8 = vld [vmem:[%s11966_s8 + $0xf80] sm:$0xff]  ;;  %v7204_v19 = vld [vmem:[%s11966_s8 + $0xf18] sm:$0xff] }
0x1445   :  { %v8773_v18 = vpack.c.bf16 %v7218_v29, %v7217_v8  ;;  %v7189_v1 = vld [vmem:[%s11966_s8 + $0xea0] sm:$0xff]  ;;  %v7206_v8 = vld [vmem:[%s11966_s8 + $0xf28] sm:$0xff]  ;;  %v7191_v29 = vld [vmem:[%s11966_s8 + $0xeb0] sm:$0xff] }
0x1446   :  { %v5675_v53 = vadd.f32 %v11363_v51, %v5180_v6  ;;  %v5683_v51 = vadd.f32 %v11405_v60, %v11534_v30  ;;  %v5681_v60 = vadd.f32 %v11395_v26, %v5180_v6  ;;  %v5864_v30 = vmax.f32 %v5606_v40, 0.0  ;;  %v7203_v26 = vld [vmem:[%s11966_s8 + $0xf10] sm:$0xff]  ;;  %v7174_v6 = vld [vmem:[%s11966_s8 + $0xe28] sm:$0xff] }
0x1447   :  { %8696 = vmatpush3.bf16.msra.mxu0 %v8695_v7  ;;  %8728 = vmatpush3.bf16.msra.mxu1 %v8727_v11  ;;  %v8707_v7 = vpack.c.bf16 %v7120_v56, %v7119_v63  ;;  %v8739_v11 = vpack.c.bf16 %v7152_v46, %v7151_v38  ;;  %v8779_v56 = vpack.c.bf16 %v7204_v19, %v7203_v26  ;;  %v7173_v38 = vld [vmem:[%s11966_s8 + $0xe20] sm:$0xff]  ;;  %v7226_v40 = vld [vmem:[%s11966_s8 + $0xfc8] sm:$0xff]  ;;  %v7180_v26 = vld [vmem:[%s11966_s8 + $0xe58] sm:$0xff] }
0x1448   :  { %8698 = vmatprep.subr.bf16.mxu0 %v8697_v15  ;;  %8730 = vmatprep.subr.bf16.mxu1 %v8729_v27  ;;  %v7202_v15 = vld [vmem:[%s11966_s8 + $0xf08] sm:$0xff]  ;;  %v7187_v27 = vld [vmem:[%s11966_s8 + $0xe90] sm:$0xff]  ;;  %v5849_v14 = vmax.f32 %v5675_v53, 0.0  ;;  %v5866_v34 = vmax.f32 %v5683_v51, 0.0 }
0x1449   :  { %v8775_v45 = vpack.c.bf16 %v7202_v15, %v7201_v3  ;;  %v7175_v3 = vld [vmem:[%s11966_s8 + $0xe30] sm:$0xff]  ;;  %v7176_v15 = vld [vmem:[%s11966_s8 + $0xe38] sm:$0xff] }
0x144a   :  { %v7207_v53 = vld [vmem:[%s11966_s8 + $0xf30] sm:$0xff]  ;;  %v8755_v51 = vpack.c.bf16 %v7176_v15, %v7175_v3  ;;  %v5196_v15 = vrot.slane %v11496_v10, %v9990_v62 }
0x144b   :  { %8700 = vmatpush3.bf16.msra.mxu0 %v8699_v32  ;;  %8732 = vmatpush3.bf16.msra.mxu1 %v8731_v52  ;;  %v11746_v32 = vrot.slane %v11496_v10, %v9798_v25  ;;  %v11750_v52 = vrot.slane %v11496_v10, %v9819_v44  ;;  %v7172_v44 = vld [vmem:[%s11966_s8 + $0xe18] sm:$0xff]  ;;  %v7183_v3 = vld [vmem:[%s11966_s8 + $0xe70] sm:$0xff] }
0x144c   :  { %8702 = vmatprep.subr.bf16.mxu0 %v8701_v55  ;;  %8734 = vmatprep.subr.bf16.mxu1 %v8733_v43  ;;  %v8745_v55 = vpack.c.bf16 %v7188_v47, %v7187_v27  ;;  %v8777_v43 = vpack.c.bf16 %v7220_v50, %v7219_v24  ;;  %v8747_v63 = vpack.c.bf16 %v7172_v44, %v7171_v17  ;;  %v7193_v47 = vld [vmem:[%s11966_s8 + $0xec0] sm:$0xff]  ;;  %v7194_v24 = vld [vmem:[%s11966_s8 + $0xec8] sm:$0xff]  ;;  %v7196_v17 = vld [vmem:[%s11966_s8 + $0xed8] sm:$0xff] }
0x144d   :  { %v5754_v57 = vadd.f32 %v11435_v33, %v11746_v32  ;;  %v5831_v20 = vadd.f32 %v11437_v48, %v11750_v52  ;;  %v7190_v33 = vld [vmem:[%s11966_s8 + $0xea8] sm:$0xff]  ;;  %v7221_v48 = vld [vmem:[%s11966_s8 + $0xfa0] sm:$0xff]  ;;  %v8753_v27 = vpack.c.bf16 %v7192_v21, %v7191_v29  ;;  %v7227_v44 = vld [vmem:[%s11966_s8 + $0xfd0] sm:$0xff] }
0x144e   :  { %v8749_v46 = vpack.c.bf16 %v7190_v33, %v7189_v1  ;;  %v8781_v35 = vpack.c.bf16 %v7222_v41, %v7221_v48  ;;  %v7225_v50 = vld [vmem:[%s11966_s8 + $0xfc0] sm:$0xff]  ;;  %v7211_v33 = vld [vmem:[%s11966_s8 + $0xf50] sm:$0xff]  ;;  %v7212_v48 = vld [vmem:[%s11966_s8 + $0xf58] sm:$0xff] }
0x144f   :  { %8704 = vmatpush3.bf16.msra.mxu0 %v8703_v5  ;;  %8736 = vmatpush3.bf16.msra.mxu1 %v8735_v37  ;;  %v5863_v5 = vmax.f32 %v5604_v23, 0.0  ;;  %v5865_v37 = vmax.f32 %v5681_v60, 0.0  ;;  %v7210_v23 = vld [vmem:[%s11966_s8 + $0xf48] sm:$0xff]  ;;  %v7195_v60 = vld [vmem:[%s11966_s8 + $0xed0] sm:$0xff]  ;;  %v7197_v41 = vld [vmem:[%s11966_s8 + $0xee0] sm:$0xff] }
0x1450   :  { %8706 = vmatprep.subr.bf16.mxu0 %v8705_v36  ;;  %8738 = vmatprep.subr.bf16.mxu1 %v8737_v58  ;;  %v5852_v36 = vmax.f32 %v5754_v57, 0.0  ;;  %v5854_v58 = vmax.f32 %v5831_v20, 0.0  ;;  %v7179_v20 = vld [vmem:[%s11966_s8 + $0xe50] sm:$0xff]  ;;  %v8761_v19 = vpack.c.bf16 %v7196_v17, %v7195_v60  ;;  %v7200_v29 = vld [vmem:[%s11966_s8 + $0xef8] sm:$0xff] }
0x1451   :  { %v7231_v21 = vld [vmem:[%s11966_s8 + $0xff0] sm:$0xff] }
0x1453   :  { %8708 = vmatpush3.bf16.msra.mxu0 %v8707_v7  ;;  %8740 = vmatpush3.bf16.msra.mxu1 %v8739_v11  ;;  %v7224_v7 = vld [vmem:[%s11966_s8 + $0xfb8] sm:$0xff]  ;;  %v8751_v11 = vpack.c.bf16 %v7174_v6, %v7173_v38  ;;  %v8795_v38 = vpack.c.bf16 %v7212_v48, %v7211_v33  ;;  %v7181_v6 = vld [vmem:[%s11966_s8 + $0xe60] sm:$0xff] }
0x1454   :  { %8742 = vmatprep.subr.bf16.mxu0 %v8741_v12  ;;  %8774 = vmatprep.subr.bf16.mxu1 %v8773_v18  ;;  %v8783_v12 = vpack.c.bf16 %v7206_v8, %v7205_v28  ;;  %v8785_v9 = vpack.c.bf16 %v7224_v7, %v7223_v4  ;;  %v7208_v18 = vld [vmem:[%s11966_s8 + $0xf38] sm:$0xff]  ;;  %v7214_v28 = vld [vmem:[%s11966_s8 + $0xf68] sm:$0xff]  ;;  %v7199_v8 = vld [vmem:[%s11966_s8 + $0xef0] sm:$0xff]  ;;  %v5188_v7 = vrot.slane %v11496_v10, %v9294_v2 }
0x1455   :  { %v7232_v4 = vld [vmem:[%s11966_s8 + $0xff8] sm:$0xff] }
0x1456   :  { %6497 = vmatmul.mubr.f32.vlgmr.msra.gmra.mrb[90].mxu0 %v5847_v61  ;;  %6572 = vmatmul.mubr.f32.vlgmr.msra.gmra.mrb[94].mxu1 %v5849_v14  ;;  %v8789_v61 = vpack.c.bf16 %v7226_v40, %v7225_v50  ;;  %v7209_v14 = vld [vmem:[%s11966_s8 + $0xf40] sm:$0xff]  ;;  %v5752_v10 = vadd.f32 %v11425_v0, %v5188_v7  ;;  %v5829_v50 = vadd.f32 %v11427_v49, %v5196_v15 }
0x1457   :  { %6501 = vmatprep.mubr.f32.mxu0 %v5864_v30  ;;  %6576 = vmatprep.mubr.f32.mxu1 %v5866_v34  ;;  %v7228_v30 = vld [vmem:[%s11966_s8 + $0xfd8] sm:$0xff]  ;;  %v8791_v57 = vpack.c.bf16 %v7210_v23, %v7209_v14  ;;  %v5760_v40 = vadd.f32 %v11474_v31, %v11746_v32  ;;  %v11929_v32 = vld [vmem:[%s11960_s2 + $0x8] sm:$0x3f]  ;;  %s8965_s2 = smov [#allocation2]  }
0x1458   :  { %8744 = vmatpush3.bf16.msra.mxu0 %v8743_v22  ;;  %8776 = vmatpush3.bf16.msra.mxu1 %v8775_v45  ;;  %v8787_v22 = vpack.c.bf16 %v7208_v18, %v7207_v53  ;;  %v7177_v45 = vld [vmem:[%s11966_s8 + $0xe40] sm:$0xff]  ;;  %v8793_v1 = vpack.c.bf16 %v7228_v30, %v7227_v44  ;;  %v7184_v53 = vld [vmem:[%s11966_s8 + $0xe78] sm:$0xff]  ;;  %v7215_v18 = vld [vmem:[%s11966_s8 + $0xf70] sm:$0xff]  ;;  %s6793_s22 = sshll.u32 %s8965_s2, 4  ;;  %s6794_s22 = int_to_ptr.vmem [resolvable:$true] %s6793_s22 }
0x1459   :  { %8746 = vmatprep.subr.bf16.mxu0 %v8745_v55  ;;  %8778 = vmatprep.subr.bf16.mxu1 %v8777_v43  ;;  %v7178_v55 = vld [vmem:[%s11966_s8 + $0xe48] sm:$0xff]  ;;  %v8757_v43 = vpack.c.bf16 %v7194_v24, %v7193_v47  ;;  %v7216_v47 = vld [vmem:[%s11966_s8 + $0xf78] sm:$0xff]  ;;  %v8771_v24 = vpack.c.bf16 %v7184_v53, %v7183_v3  ;;  %s8931_s4 = scalar_lea.vmem %s6794_s22, 256  ;;  %p8936_p1 = scmp.lt.s32.totalorder %s6794_s22, %s6794_s22 }
0x145a   :  { %6502 = vmatmul.mubr.f32.gmra.mrb[92].mxu0 %v5863_v5  ;;  %6577 = vmatmul.mubr.f32.gmra.mrb[96].mxu1 %v5865_v37  ;;  %v8759_v34 = vpack.c.bf16 %v7178_v55, %v7177_v45  ;;  %v7198_v5 = vld [vmem:[%s11966_s8 + $0xee8] sm:$0xff]  ;;  %v7229_v37 = vld [vmem:[%s11966_s8 + $0xfe0] sm:$0xff]  ;;  %v8803_v62 = vpack.c.bf16 %v7216_v47, %v7215_v18  ;;  %v5853_v45 = vmax.f32 %v5829_v50, 0.0  ;;  %v5758_v55 = vadd.f32 %v11459_v42, %v5188_v7  ;;  %p8932_p0 = scmp.ne.s32.totalorder %s6794_s22, %s8931_s4  ;;  %p8937_p2 = scmp.lt.s32.totalorder %s8931_s4, %s8931_s4 }
0x145b   :  { %6646 = vmatprep.mubr.f32.mxu0 %v5852_v36  ;;  %6721 = vmatprep.mubr.f32.mxu1 %v5854_v58  ;;  %v7182_v36 = vld [vmem:[%s11966_s8 + $0xe68] sm:$0xff]  ;;  %v8765_v58 = vpack.c.bf16 %v7198_v5, %v7197_v41  ;;  %v6131_v42 = vrot.slane %v11929_v32, %v9386_v54 }
0x145c   :  { %8748 = vmatpush3.bf16.msra.mxu0 %v8747_v63  ;;  %8780 = vmatpush3.bf16.msra.mxu1 %v8779_v56  ;;  %v7230_v63 = vld [vmem:[%s11966_s8 + $0xfe8] sm:$0xff]  ;;  %v8763_v56 = vpack.c.bf16 %v7180_v26, %v7179_v20  ;;  %v5867_v49 = vmax.f32 %v5758_v55, 0.0  ;;  %p8938_p3 = por %p8937_p2, %p8936_p1 }
0x145d   :  { %8750 = vmatprep.subr.bf16.mxu0 %v8749_v46  ;;  %8782 = vmatprep.subr.bf16.mxu1 %v8781_v35  ;;  %v8797_v46 = vpack.c.bf16 %v7230_v63, %v7229_v37  ;;  %v7213_v35 = vld [vmem:[%s11966_s8 + $0xf60] sm:$0xff] }
0x145e   :  { %p8939_p4 = pnand %p8938_p3, %p8932_p0 }
0x1460   :  { %8752 = vmatpush3.bf16.msra.mxu0 %v8751_v11  ;;  %8784 = vmatpush3.bf16.msra.mxu1 %v8783_v12  ;;  %v8767_v11 = vpack.c.bf16 %v7182_v36, %v7181_v6  ;;  %v8799_v12 = vpack.c.bf16 %v7214_v28, %v7213_v35 }
0x1461   :  { %8754 = vmatprep.subr.bf16.mxu0 %v8753_v27  ;;  %8786 = vmatprep.subr.bf16.mxu1 %v8785_v9  ;;  %v8769_v27 = vpack.c.bf16 %v7200_v29, %v7199_v8  ;;  %v8801_v9 = vpack.c.bf16 %v7232_v4, %v7231_v21 }
0x1464   :  { %8756 = vmatpush3.bf16.msra.mxu0 %v8755_v51  ;;  %8788 = vmatpush3.bf16.msra.mxu1 %v8787_v22  ;;  %v5837_v51 = vadd.f32 %v11476_v13, %v11750_v52  ;;  %v5851_v22 = vmax.f32 %v5752_v10, 0.0 }
0x1465   :  { %8758 = vmatprep.subr.bf16.mxu0 %v8757_v43  ;;  %8790 = vmatprep.subr.bf16.mxu1 %v8789_v61  ;;  %v5835_v43 = vadd.f32 %v11461_v16, %v5196_v15  ;;  %v5868_v61 = vmax.f32 %v5760_v40, 0.0 }
0x1466   :  { %v5870_v0 = vmax.f32 %v5837_v51, 0.0 }
0x1467   :  { %v5869_v14 = vmax.f32 %v5835_v43, 0.0 }
0x1468   :  { %8760 = vmatpush3.bf16.msra.mxu0 %v8759_v34  ;;  %8792 = vmatpush3.bf16.msra.mxu1 %v8791_v57 }
0x1469   :  { %8762 = vmatprep.subr.bf16.mxu0 %v8761_v19  ;;  %8794 = vmatprep.subr.bf16.mxu1 %v8793_v1 }
0x146c   :  { %8764 = vmatpush3.bf16.msra.mxu0 %v8763_v56  ;;  %8796 = vmatpush3.bf16.msra.mxu1 %v8795_v38 }
0x146d   :  { %8766 = vmatprep.subr.bf16.mxu0 %v8765_v58  ;;  %8798 = vmatprep.subr.bf16.mxu1 %v8797_v46 }
0x1470   :  { %8768 = vmatpush3.bf16.msra.mxu0 %v8767_v11  ;;  %8800 = vmatpush3.bf16.msra.mxu1 %v8799_v12 }
0x1471   :  { %8770 = vmatprep.subr.bf16.mxu0 %v8769_v27  ;;  %8802 = vmatprep.subr.bf16.mxu1 %v8801_v9 }
0x1474   :  { %8772 = vmatpush3.bf16.msra.mxu0 %v8771_v24  ;;  %8804 = vmatpush3.bf16.msra.mxu1 %v8803_v62 }
0x1477   :  { %6647 = vmatmul.mubr.f32.vlgmr.msra.gmra.mrb[94].mxu0 %v5851_v22  ;;  %6722 = vmatmul.mubr.f32.vlgmr.msra.gmra.mrb[98].mxu1 %v5853_v45 }
0x1478   :  { %6651 = vmatprep.mubr.f32.mxu0 %v5868_v61  ;;  %6726 = vmatprep.mubr.f32.mxu1 %v5870_v0 }
0x147b   :  { %6652 = vmatmul.mubr.f32.gmra.mrb[96].mxu0 %v5867_v49  ;;  %6727 = vmatmul.mubr.f32.gmra.mrb[100].mxu1 %v5869_v14 }
0x14e8   :  { %v7657_v31 = vpop.f32.mrb[82].mxu0  ;;  %v7695_v13 = vpop.f32.mrb[86].mxu1 }
0x14e9   :  { %v7658_v16 = vpop.f32.mrb[83].mxu0  ;;  %v7696_v52 = vpop.f32.mrb[87].mxu1 }
0x14ea   :  { %v7659_v23 = vadd.f32 %v7658_v16, %v7657_v31  ;;  %v7697_v60 = vadd.f32 %v7696_v52, %v7695_v13 }
0x14ec   :  { %v6199_v17 = vadd.f32 %v7659_v23, %v6131_v42  ;;  %v7660_v44 = vpop.f32.mrb[84].mxu0  ;;  %v7698_v30 = vpop.f32.mrb[88].mxu1 }
0x14ed   :  { %v7661_v34 = vpop.f32.mrb[85].mxu0  ;;  %v7699_v57 = vpop.f32.mrb[89].mxu1 }
0x14ee   :  { %v6274_v20 = vadd.f32 %v7697_v60, %v6199_v17  ;;  %v7662_v26 = vadd.f32 %v7661_v34, %v7660_v44  ;;  %v7700_v19 = vadd.f32 %v7699_v57, %v7698_v30 }
0x14f0   :  { %v6204_v1 = vadd.f32 %v7662_v26, %v6131_v42 }
0x14f2   :  { %v6279_v33 = vadd.f32 %v7700_v19, %v6204_v1 }
0x1508   :  { %v7733_v48 = vpop.f32.mrb[86].mxu0  ;;  %v7771_v41 = vpop.f32.mrb[90].mxu1 }
0x1509   :  { %v7734_v5 = vpop.f32.mrb[87].mxu0  ;;  %v7772_v37 = vpop.f32.mrb[91].mxu1 }
0x150a   :  { %v7735_v63 = vadd.f32 %v7734_v5, %v7733_v48  ;;  %v7773_v54 = vadd.f32 %v7772_v37, %v7771_v41 }
0x150c   :  { %v6349_v56 = vadd.f32 %v7735_v63, %v6274_v20  ;;  %v7736_v38 = vpop.f32.mrb[88].mxu0  ;;  %v7774_v6 = vpop.f32.mrb[92].mxu1 }
0x150d   :  { %v7737_v36 = vpop.f32.mrb[89].mxu0  ;;  %v7775_v58 = vpop.f32.mrb[93].mxu1 }
0x150e   :  { %v6424_v46 = vadd.f32 %v7773_v54, %v6349_v56  ;;  %v7738_v35 = vadd.f32 %v7737_v36, %v7736_v38  ;;  %v7776_v28 = vadd.f32 %v7775_v58, %v7774_v6 }
0x1510   :  { %v6354_v8 = vadd.f32 %v7738_v35, %v6279_v33 }
0x1512   :  { %v6429_v29 = vadd.f32 %v7776_v28, %v6354_v8 }
0x1529   :  { %v7809_v21 = vpop.f32.mrb[90].mxu0  ;;  %v7847_v4 = vpop.f32.mrb[94].mxu1 }
0x152a   :  { %v7810_v7 = vpop.f32.mrb[91].mxu0  ;;  %v7848_v11 = vpop.f32.mrb[95].mxu1 }
0x152b   :  { %v7811_v12 = vadd.f32 %v7810_v7, %v7809_v21  ;;  %v7849_v3 = vadd.f32 %v7848_v11, %v7847_v4  ;;  %v6757_v4 = vrot.slane %v11929_v32, %v9294_v2  ;;  %v6783_v11 = vrot.slane %v11929_v32, %v9798_v25 }
0x152d   :  { %v6499_v15 = vadd.f32 %v7811_v12, %v6424_v46  ;;  %v7812_v27 = vpop.f32.mrb[92].mxu0  ;;  %v7850_v9 = vpop.f32.mrb[96].mxu1 }
0x152e   :  { %v7813_v53 = vpop.f32.mrb[93].mxu0  ;;  %v7851_v18 = vpop.f32.mrb[97].mxu1 }
0x152f   :  { %v6574_v47 = vadd.f32 %v7849_v3, %v6499_v15  ;;  %v7814_v24 = vadd.f32 %v7813_v53, %v7812_v27  ;;  %v7852_v62 = vadd.f32 %v7851_v18, %v7850_v9 }
0x1531   :  { %v6504_v10 = vadd.f32 %v7814_v24, %v6429_v29 }
0x1533   :  { %v6579_v50 = vadd.f32 %v7852_v62, %v6504_v10 }
0x154a   :  { %v7885_v40 = vpop.f32.mrb[94].mxu0  ;;  %v7923_v51 = vpop.f32.mrb[98].mxu1 }
0x154b   :  { %v7886_v22 = vpop.f32.mrb[95].mxu0  ;;  %v7924_v45 = vpop.f32.mrb[99].mxu1 }
0x154c   :  { %v7887_v55 = vadd.f32 %v7886_v22, %v7885_v40  ;;  %v7925_v43 = vadd.f32 %v7924_v45, %v7923_v51 }
0x154e   :  { %v6649_v61 = vadd.f32 %v7887_v55, %v6574_v47  ;;  %v7888_v0 = vpop.f32.mrb[96].mxu0  ;;  %v7926_v49 = vpop.f32.mrb[100].mxu1 }
0x154f   :  { %v7889_v14 = vpop.f32.mrb[97].mxu0  ;;  %v7927_v31 = vpop.f32.mrb[101].mxu1 }
0x1550   :  { %v6724_v13 = vadd.f32 %v7925_v43, %v6649_v61  ;;  %v7890_v42 = vadd.f32 %v7889_v14, %v7888_v0  ;;  %v7928_v16 = vadd.f32 %v7927_v31, %v7926_v49 }
0x1552   :  { %v6654_v52 = vadd.f32 %v7890_v42, %v6579_v50  ;;  %v6732_v23 = vadd.f32 %v6724_v13, %v10760_v59 }
0x1554   :  { %v6729_v60 = vadd.f32 %v7928_v16, %v6654_v52  ;;  %v6734_v17 = vsel %vm45_vm0, %v6732_v23, 0.0 }
0x1555   :  { %6735 = vadd.xlane.f32.xlu0 %v6734_v17 }
0x1556   :  { %v6733_v44 = vadd.f32 %v6729_v60, %v10757_v39 }
0x1558   :  { %v6737_v30 = vsel %vm45_vm0, %v6733_v44, 0.0 }
0x1559   :  { %6738 = vadd.xlane.f32.xlu1 %v6737_v30 }
0x15e2   :  { %v6736_v34 = vpop.xlane.xlu0 %6735 }
0x15e3   :  { %v6740_v57 = vmul.f32 0.03125, %v6736_v34 }
0x15e5   :  { %v6742_v20 = vsub.f32 %v6732_v23, %v6740_v57 }
0x15e6   :  { %v6739_v26 = vpop.xlane.xlu1 %6738 }
0x15e7   :  { %v6741_v19 = vmul.f32 0.03125, %v6739_v26  ;;  %v6744_v1 = vmul.f32 %v6742_v20, %v6742_v20  ;;  %v6758_v7 = vmul.f32 %v6757_v4, %v6742_v20 }
0x15e9   :  { %v6743_v33 = vsub.f32 %v6733_v44, %v6741_v19  ;;  %v6746_v48 = vsel %vm45_vm0, %v6744_v1, 0.0 }
0x15ea   :  { %6747 = vadd.xlane.f32.xlu0 %v6746_v48 }
0x15eb   :  { %v6745_v59 = vmul.f32 %v6743_v33, %v6743_v33  ;;  %v6759_v15 = vmul.f32 %v6757_v4, %v6743_v33 }
0x15ed   :  { %v6749_v41 = vsel %vm45_vm0, %v6745_v59, 0.0 }
0x15ee   :  { %6750 = vadd.xlane.f32.xlu1 %v6749_v41 }
0x1677   :  { %v6748_v5 = vpop.xlane.xlu0 %6747 }
0x1678   :  { %v6752_v37 = vmul.f32 0.032258064, %v6748_v5 }
0x167a   :  { %8913 = vrsqrt.f32 %v6752_v37  ;;  %vm6762_vm6 = vcmp.eq.f32.partialorder %v6752_v37, inf  ;;  %v6765_v38 = vand.u32 2147483648, %v6752_v37  ;;  %vm6764_vm7 = vcmp.eq.f32.partialorder %v6752_v37, 0.0 }
0x167b   :  { %v6751_v39 = vpop.xlane.xlu1 %6750 }
0x167c   :  { %v6753_v63 = vmul.f32 0.032258064, %v6751_v39 }
0x167e   :  { %8915 = vrsqrt.f32 %v6753_v63  ;;  %vm6769_vm8 = vcmp.eq.f32.partialorder %v6753_v63, inf  ;;  %v6772_v28 = vand.u32 2147483648, %v6753_v63  ;;  %vm6771_vm9 = vcmp.eq.f32.partialorder %v6753_v63, 0.0 }
0x1684   :  { %v8914_v54 = vpop.eup %8913 }
0x1685   :  { %v6761_v56 = vmul.f32 %v8914_v54, %v6752_v37 }
0x1687   :  { %v6763_v6 = vsel %vm6762_vm6, %v6752_v37, %v6761_v56 }
0x1688   :  { %v8916_v36 = vpop.eup %8915  ;;  %v6766_v58 = vsel %vm6764_vm7, %v6765_v38, %v6763_v6 }
0x1689   :  { %v6774_v46 = vadd.f32 1e-06, %v6766_v58  ;;  %v6768_v35 = vmul.f32 %v8916_v36, %v6753_v63 }
0x168b   :  { %8917 = vrcp.f32 %v6774_v46  ;;  %v6770_v8 = vsel %vm6769_vm8, %v6753_v63, %v6768_v35 }
0x168c   :  { %v6773_v29 = vsel %vm6771_vm9, %v6772_v28, %v6770_v8 }
0x168d   :  { %v6775_v21 = vadd.f32 1e-06, %v6773_v29 }
0x168f   :  { %8919 = vrcp.f32 %v6775_v21 }
0x1695   :  { %v8918_v12 = vpop.eup %8917 }
0x1696   :  { %v6777_v3 = vmul.f32 %v8918_v12, %v6758_v7 }
0x1698   :  { %v6784_v27 = vadd.f32 %v6783_v11, %v6777_v3 }
0x1699   :  { %v8920_v9 = vpop.eup %8919 }
0x169a   :  { %v6779_v53 = vmul.f32 %v8920_v9, %v6759_v15  ;;  %6786 = vst.msk [vmem:[#allocation2] sm:$0xff] %vm45_vm0, %v6784_v27 }
0x169c   :  { %v6785_v18 = vadd.f32 %v6783_v11, %v6779_v53 }
0x169e   :  { %6787 = vst.msk [vmem:[#allocation2 + $0x8] sm:$0xff] %vm45_vm0, %v6785_v18 }
0x169f   :  { %8942 = shalt.err (!%p8939_p4)
}
0x16a0   :  { %s8943_s5 = scalar_lea.hbm %s11967_s9, 256 }
0x16a1   :  { %p8944_p5 = scmp.ne.s32.totalorder %s11967_s9, %s8943_s5  ;;  %p8947_p6 = scmp.lt.u32.totalorder %s8943_s5, %s11967_s9 }
0x16a3   :  { %p8949_p7 = pnand %p8947_p6, %p8944_p5 }
0x16a5   :  { %8952 = shalt.err (!%p8949_p7)
}
0x16a6   :  { %s8966_s14 = smov 128  }
0x16a7   :  { %6799 = dma.vmem_to_hbm [thread:$0]  %s6794_s22, 256, %s11967_s9, [#allocation3], %s8966_s14, %s8966_s14, %s8962_s13  }
0x16a8   :  { %8953 = dma.done.wait [#allocation3], 256  }
0x16a9   :  { %8954 = vsyncadd [#allocation3], 4294967040 }
0x16aa   :  { %6803 = vsyncpa [#allocation3], 1 }

</bundles_post_ra>
